<compile_context>
chip_gen: v7x
topology: tpu7x:2x2x1
jax: 0.10.0
libtpu: 0.0.40
codegen_flags: <defaults>
</compile_context>

<pallas_src>
import functools
import numpy as np

import jax
import jax.numpy as jnp
from jax import lax
from jax.experimental import pallas as pl
from jax.experimental.pallas import tpu as pltpu


CFG = dict(
    conv_kernel=16,      # conv frontend receptive field (samples)
    conv_stride=8,       # conv frontend stride (samples)
    conv_kernel_pad=128, # im2col taps zero-padded to a lane-dense contraction
    conv_dim=128,        # conv frontend channels (lane-dense)
    hidden=128,          # transformer hidden size (enc_dim, lane-dense)
    heads=4,             # per-head dim = 32
    ffn=256,             # FFN inner size (lane-dense)
    layers=2,            # encoding_layer (simplified from 9)
    seg_pad=8,           # segment-slot padding (sublane multiple)
)


# ------------------------------ in-kernel helpers ----------------------------


def _ln(x, g, b, eps=1e-5):
    """LayerNorm over the last (lane) axis, f32 math."""
    mu = jnp.mean(x, axis=-1, keepdims=True)
    var = jnp.mean((x - mu) ** 2, axis=-1, keepdims=True)
    return (x - mu) * lax.rsqrt(var + eps) * g + b


# ------------------------- single fused forward kernel -----------------------


def _sylber_fused_kernel(B, T, nheads, nlayers,
                         # inputs
                         cols_ref, ats_ref, ast_ref,
                         convw_ref, convb_ref, fplg_ref, fplb_ref,
                         fpw_ref, fpb_ref, encg_ref, encb_ref,
                         qkvw_ref, qkvb_ref, ow_ref, ob_ref,
                         l1g_ref, l1b_ref, f1w_ref, f1b_ref,
                         f2w_ref, f2b_ref, l2g_ref, l2b_ref,
                         # outputs
                         h_ref, avg_ref, loss_ref,
                         # scratch
                         attn_scr):
    BT = B * T

    # ----- conv frontend as matmul + GELU + LN + feature projection + LN -----
    # All B*T rows go through every matmul together (M = B*T, not T).
    x = jnp.dot(cols_ref[...].astype(jnp.bfloat16), convw_ref[...],
                preferred_element_type=jnp.float32) + convb_ref[...]
    x = jax.nn.gelu(x, approximate=True)
    x = _ln(x, fplg_ref[...], fplb_ref[...])
    x = jnp.dot(x.astype(jnp.bfloat16), fpw_ref[...],
                preferred_element_type=jnp.float32) + fpb_ref[...]
    x = _ln(x, encg_ref[...], encb_ref[...])                       # (BT, D) f32

    D = x.shape[-1]
    hd = D // nheads
    scale = 1.0 / float(np.sqrt(hd))

    # ----- transformer layers: stacked (L, ...) weights, static unroll -------
    for l in range(nlayers):
        qkv = jnp.dot(x.astype(jnp.bfloat16), qkvw_ref[l],
                      preferred_element_type=jnp.float32) + qkvb_ref[l]  # (BT, 3D)
        # bf16 casts hoisted: one cast each for q / k / v (not per head).
        q = qkv[:, :D].astype(jnp.bfloat16)
        k = qkv[:, D:2 * D].astype(jnp.bfloat16)
        v = qkv[:, 2 * D:].astype(jnp.bfloat16)

        # Per-(batch, head) attention.  Head outputs land lane-contiguously in
        # a VMEM scratch so the output projection below is ONE K=128 matmul
        # over all B*T rows (no per-head folded projections / accumulate adds).
        for b in range(B):
            rows = slice(b * T, (b + 1) * T)
            for h in range(nheads):
                lanes = slice(h * hd, (h + 1) * hd)
                qh = q[rows, lanes]
                kh = k[rows, lanes]
                vh = v[rows, lanes]
                s = lax.dot_general(qh, kh, (((1,), (1,)), ((), ())),
                                    preferred_element_type=jnp.float32) * scale
                s = s - jnp.max(s, axis=-1, keepdims=True)
                p = jnp.exp(s)
                p = p * pl.reciprocal(jnp.sum(p, axis=-1, keepdims=True),
                                      approx=True)
                oh = jnp.dot(p.astype(jnp.bfloat16), vh,
                             preferred_element_type=jnp.float32)     # (T, hd)
                attn_scr[rows, lanes] = oh

        attn = jnp.dot(attn_scr[...].astype(jnp.bfloat16), ow_ref[l],
                       preferred_element_type=jnp.float32) + ob_ref[l]
        y = _ln(x + attn, l1g_ref[l], l1b_ref[l])                    # residual + LN1

        f = jnp.dot(y.astype(jnp.bfloat16), f1w_ref[l],
                    preferred_element_type=jnp.float32) + f1b_ref[l]
        f = jax.nn.gelu(f, approximate=True)
        f = jnp.dot(f.astype(jnp.bfloat16), f2w_ref[l],
                    preferred_element_type=jnp.float32) + f2b_ref[l]
        x = _ln(y + f, l2g_ref[l], l2b_ref[l])                       # residual + LN2

    # Student hidden states.  Teacher (EMA copy on first forward) == student.
    h_ref[...] = x

    # ----- segment mean-pool, scatter back to frames, distillation loss ------
    loss_acc = jnp.zeros((1, 1), jnp.float32)
    for b in range(B):
        rows = slice(b * T, (b + 1) * T)
        h_b = x[rows, :]                                             # (T, D) f32
        ast_b = ast_ref[b]                                           # (S, T) bf16 0/1
        ats_b = ats_ref[b]                                           # (T, S) bf16 0/1
        # per-segment sums: natural (S, T) @ (T, D) matmul (no transpose needed)
        seg_sum = jnp.dot(ast_b, h_b.astype(jnp.bfloat16),
                          preferred_element_type=jnp.float32)        # (S, D)
        counts = jnp.sum(ast_b.astype(jnp.float32), axis=-1, keepdims=True)
        # exact f32 division (not approx reciprocal): unbiased teacher averages
        mean = seg_sum / jnp.maximum(counts, 1.0)                    # (S, D)
        # scatter segment means back to frames; uncovered frames stay 0
        avg_b = jnp.dot(ats_b, mean.astype(jnp.bfloat16),
                        preferred_element_type=jnp.float32)          # (T, D)
        avg_ref[rows, :] = avg_b
        diff = h_b - avg_b
        loss_acc = loss_acc + jnp.sum(diff * diff)

    # == ((h - avg_target)**2).sum(-1).mean()   (single store, done once)
    loss_ref[...] = loss_acc * (1.0 / float(BT))


def sylber_fused_call(cols2d, ats, ast, p, cfg):
    BT, _ = cols2d.shape
    B, T, _ = ats.shape
    D = cfg["hidden"]

    operands = [
        cols2d, ats, ast,
        p["conv_w"], p["conv_b"], p["fp_ln_g"], p["fp_ln_b"],
        p["fp_w"], p["fp_b"], p["enc_ln_g"], p["enc_ln_b"],
        p["qkv_w"], p["qkv_b"], p["o_w"], p["o_b"],
        p["ln1_g"], p["ln1_b"], p["ff1_w"], p["ff1_b"],
        p["ff2_w"], p["ff2_b"], p["ln2_g"], p["ln2_b"],
    ]

    def full(a):
        nd = a.ndim
        return pl.BlockSpec(a.shape, lambda i, nd=nd: (0,) * nd)

    kernel = functools.partial(_sylber_fused_kernel, B, T,
                               cfg["heads"], cfg["layers"])

    # Everything fits comfortably in VMEM at these shapes; one kernel launch,
    # grid of 1.  (At real HuBERT sizes, reinstate a 'parallel' grid over T
    # tiles / batch and re-derive tiling for the 64 MiB VMEM of v7x.)
    h_flat, avg_flat, loss = pl.pallas_call(
        kernel,
        out_shape=(
            jax.ShapeDtypeStruct((BT, D), jnp.float32),
            jax.ShapeDtypeStruct((BT, D), jnp.float32),
            jax.ShapeDtypeStruct((1, 1), jnp.float32),
        ),
        grid=(1,),
        in_specs=[full(a) for a in operands],
        out_specs=(
            pl.BlockSpec((BT, D), lambda i: (0, 0)),
            pl.BlockSpec((BT, D), lambda i: (0, 0)),
            pl.BlockSpec((1, 1), lambda i: (0, 0)),
        ),
        scratch_shapes=[pltpu.VMEM((BT, D), jnp.float32)],
        compiler_params=pltpu.CompilerParams(
            dimension_semantics=("arbitrary",)),
    )(*operands)
    return h_flat, avg_flat, loss


# ----------------------- simplified HuBERT-style params ----------------------


def init_params(key, cfg):
    D, C = cfg["hidden"], cfg["conv_dim"]
    K, Kp = cfg["conv_kernel"], cfg["conv_kernel_pad"]
    F, L = cfg["ffn"], cfg["layers"]

    def dense(k, fi, fo):
        # matmul weights stored in bf16 (MXU-native, halves weight HBM traffic)
        return (jax.random.normal(k, (fi, fo), jnp.float32) * 0.02).astype(jnp.bfloat16)

    keys = iter(jax.random.split(key, 2 + 4 * L))

    # conv weight zero-padded on the contraction axis to a lane-dense 128
    conv_w = jnp.zeros((Kp, C), jnp.bfloat16).at[:K].set(dense(next(keys), K, C))

    p = {
        "conv_w": conv_w,
        "conv_b": jnp.zeros((1, C), jnp.float32),
        "fp_ln_g": jnp.ones((1, C), jnp.float32),
        "fp_ln_b": jnp.zeros((1, C), jnp.float32),
        "fp_w": dense(next(keys), C, D),
        "fp_b": jnp.zeros((1, D), jnp.float32),
        "enc_ln_g": jnp.ones((1, D), jnp.float32),
        "enc_ln_b": jnp.zeros((1, D), jnp.float32),
    }

    qkv_w, o_w, ff1_w, ff2_w = [], [], [], []
    for _ in range(L):
        qkv_w.append(dense(next(keys), D, 3 * D))
        o_w.append(dense(next(keys), D, D))
        ff1_w.append(dense(next(keys), D, F))
        ff2_w.append(dense(next(keys), F, D))

    # per-layer weights stacked with a leading L axis (single fused kernel call)
    p.update({
        "qkv_w": jnp.stack(qkv_w), "qkv_b": jnp.zeros((L, 1, 3 * D), jnp.float32),
        "o_w": jnp.stack(o_w),     "o_b": jnp.zeros((L, 1, D), jnp.float32),
        "ln1_g": jnp.ones((L, 1, D), jnp.float32),
        "ln1_b": jnp.zeros((L, 1, D), jnp.float32),
        "ff1_w": jnp.stack(ff1_w), "ff1_b": jnp.zeros((L, 1, F), jnp.float32),
        "ff2_w": jnp.stack(ff2_w), "ff2_b": jnp.zeros((L, 1, D), jnp.float32),
        "ln2_g": jnp.ones((L, 1, D), jnp.float32),
        "ln2_b": jnp.zeros((L, 1, D), jnp.float32),
    })
    return p


# ------------------------------- JAX-side glue --------------------------------


def im2col_1d_padded(x, kernel, stride, k_pad):
    """x: (B, T_wave) -> (B*T, k_pad) with taps zero-padded to a 128-wide lane-dense dim."""
    B, Tw = x.shape
    T = (Tw - kernel) // stride + 1
    idx = jnp.arange(T)[:, None] * stride + jnp.arange(kernel)[None, :]
    cols = x[:, idx]                                            # (B, T, K)
    cols = jnp.pad(cols, ((0, 0), (0, 0), (0, k_pad - kernel)))
    return cols.reshape(B * T, k_pad), T


def build_assignment(segments, T, seg_pad):
    """segments: list (per batch) of (s, e) frame ranges.
    Returns 0/1 bf16 assignment in BOTH orientations: (B, T, S) and (B, S, T),
    with S padded up to a multiple of `seg_pad`."""
    B = len(segments)
    S_max = max(1, max((len(s) for s in segments), default=1))
    S = ((S_max + seg_pad - 1) // seg_pad) * seg_pad
    A = np.zeros((B, T, S), dtype=np.float32)
    for b, segs in enumerate(segments):
        for si, (s, e) in enumerate(segs):
            A[b, s:e, si] = 1.0
    ats = jnp.asarray(A, jnp.bfloat16)                           # (B, T, S)
    ast = jnp.asarray(np.transpose(A, (0, 2, 1)), jnp.bfloat16)  # (B, S, T)
    return ats, ast


# ------------------------------- Sylber forward --------------------------------


@jax.jit
def sylber_forward(params, input_values, ats, ast):
    B = input_values.shape[0]
    D = CFG["hidden"]
    cols2d, T = im2col_1d_padded(input_values, CFG["conv_kernel"],
                                 CFG["conv_stride"], CFG["conv_kernel_pad"])

    # Student forward.  The EMA teacher is an exact copy of the student on the
    # first forward (ema_step with ema=None), so its hidden states are
    # numerically identical; reuse them under stop_gradient.
    # mask_prob=0.0 / min_mask_n=0 => mask_time_indices all False => no masking.
    h_flat, avg_flat, loss = sylber_fused_call(cols2d, ats, ast, params, CFG)

    hidden_states = h_flat.reshape(B, T, D)
    averaged_target = lax.stop_gradient(avg_flat.reshape(B, T, D))
    return {
        "distillation_loss": loss[0, 0],
        "speech_states": hidden_states,
        "teacher_speech_states": averaged_target,
    }


# ------------------------------------ main ------------------------------------


if __name__ == "__main__":
    key = jax.random.PRNGKey(0)
    k_param, k_wave = jax.random.split(key)

    params = init_params(k_param, CFG)

    B = 2
    T_frames = 16
    T_wave = CFG["conv_stride"] * (T_frames - 1) + CFG["conv_kernel"]   # 136
    input_values = jax.random.normal(k_wave, (B, T_wave), jnp.float32)

    # Pre-computed segments (frame-index ranges), as produced by get_segment on CPU.
    segments = [
        [(0, 3), (3, 7), (9, 13)],
        [(2, 6), (8, 16)],
    ]
    ats, ast = build_assignment(segments, T_frames, CFG["seg_pad"])

    out = sylber_forward(params, input_values, ats, ast)
    jax.block_until_ready(out["distillation_loss"])
    assert out["speech_states"].shape == (B, T_frames, CFG["hidden"])
    assert out["teacher_speech_states"].shape == (B, T_frames, CFG["hidden"])
    assert bool(jnp.isfinite(out["distillation_loss"]))
    print("KERNEL_OK")
</pallas_src>

<mosaic_0001>
module attributes {stable_mosaic.version = 11 : i64} {
  func.func @_sylber_fused_kernel(%arg0: i32, %arg1: memref<32x128xf32, #tpu.memory_space<vmem>>, %arg2: memref<2x16x8xbf16, #tpu.memory_space<vmem>>, %arg3: memref<2x8x16xbf16, #tpu.memory_space<vmem>>, %arg4: memref<128x128xbf16, #tpu.memory_space<vmem>>, %arg5: memref<1x128xf32, #tpu.memory_space<vmem>>, %arg6: memref<1x128xf32, #tpu.memory_space<vmem>>, %arg7: memref<1x128xf32, #tpu.memory_space<vmem>>, %arg8: memref<128x128xbf16, #tpu.memory_space<vmem>>, %arg9: memref<1x128xf32, #tpu.memory_space<vmem>>, %arg10: memref<1x128xf32, #tpu.memory_space<vmem>>, %arg11: memref<1x128xf32, #tpu.memory_space<vmem>>, %arg12: memref<2x128x384xbf16, #tpu.memory_space<vmem>>, %arg13: memref<2x1x384xf32, #tpu.memory_space<vmem>>, %arg14: memref<2x128x128xbf16, #tpu.memory_space<vmem>>, %arg15: memref<2x1x128xf32, #tpu.memory_space<vmem>>, %arg16: memref<2x1x128xf32, #tpu.memory_space<vmem>>, %arg17: memref<2x1x128xf32, #tpu.memory_space<vmem>>, %arg18: memref<2x128x256xbf16, #tpu.memory_space<vmem>>, %arg19: memref<2x1x256xf32, #tpu.memory_space<vmem>>, %arg20: memref<2x256x128xbf16, #tpu.memory_space<vmem>>, %arg21: memref<2x1x128xf32, #tpu.memory_space<vmem>>, %arg22: memref<2x1x128xf32, #tpu.memory_space<vmem>>, %arg23: memref<2x1x128xf32, #tpu.memory_space<vmem>>, %arg24: memref<32x128xf32, #tpu.memory_space<vmem>>, %arg25: memref<32x128xf32, #tpu.memory_space<vmem>>, %arg26: memref<1x1xf32, #tpu.memory_space<vmem>>, %arg27: memref<32x128xf32, #tpu.memory_space<vmem>>) attributes {dimension_semantics = [#tpu.dimension_semantics<arbitrary>], iteration_bounds = array<i64: 1>, scalar_prefetch = 0 : i64, scratch_operands = 1 : i64, tpu.core_type = #tpu.core_type<tc>, window_params = [{pipeline_mode = #tpu.pipeline_mode<synchronous>, transform_indices = @transform_0, window_bounds = array<i64: 32, 128>}, {pipeline_mode = #tpu.pipeline_mode<synchronous>, transform_indices = @transform_1, window_bounds = array<i64: 2, 16, 8>}, {pipeline_mode = #tpu.pipeline_mode<synchronous>, transform_indices = @transform_2, window_bounds = array<i64: 2, 8, 16>}, {pipeline_mode = #tpu.pipeline_mode<synchronous>, transform_indices = @transform_3, window_bounds = array<i64: 128, 128>}, {pipeline_mode = #tpu.pipeline_mode<synchronous>, transform_indices = @transform_4, window_bounds = array<i64: 1, 128>}, {pipeline_mode = #tpu.pipeline_mode<synchronous>, transform_indices = @transform_5, window_bounds = array<i64: 1, 128>}, {pipeline_mode = #tpu.pipeline_mode<synchronous>, transform_indices = @transform_6, window_bounds = array<i64: 1, 128>}, {pipeline_mode = #tpu.pipeline_mode<synchronous>, transform_indices = @transform_7, window_bounds = array<i64: 128, 128>}, {pipeline_mode = #tpu.pipeline_mode<synchronous>, transform_indices = @transform_8, window_bounds = array<i64: 1, 128>}, {pipeline_mode = #tpu.pipeline_mode<synchronous>, transform_indices = @transform_9, window_bounds = array<i64: 1, 128>}, {pipeline_mode = #tpu.pipeline_mode<synchronous>, transform_indices = @transform_10, window_bounds = array<i64: 1, 128>}, {pipeline_mode = #tpu.pipeline_mode<synchronous>, transform_indices = @transform_11, window_bounds = array<i64: 2, 128, 384>}, {pipeline_mode = #tpu.pipeline_mode<synchronous>, transform_indices = @transform_12, window_bounds = array<i64: 2, 1, 384>}, {pipeline_mode = #tpu.pipeline_mode<synchronous>, transform_indices = @transform_13, window_bounds = array<i64: 2, 128, 128>}, {pipeline_mode = #tpu.pipeline_mode<synchronous>, transform_indices = @transform_14, window_bounds = array<i64: 2, 1, 128>}, {pipeline_mode = #tpu.pipeline_mode<synchronous>, transform_indices = @transform_15, window_bounds = array<i64: 2, 1, 128>}, {pipeline_mode = #tpu.pipeline_mode<synchronous>, transform_indices = @transform_16, window_bounds = array<i64: 2, 1, 128>}, {pipeline_mode = #tpu.pipeline_mode<synchronous>, transform_indices = @transform_17, window_bounds = array<i64: 2, 128, 256>}, {pipeline_mode = #tpu.pipeline_mode<synchronous>, transform_indices = @transform_18, window_bounds = array<i64: 2, 1, 256>}, {pipeline_mode = #tpu.pipeline_mode<synchronous>, transform_indices = @transform_19, window_bounds = array<i64: 2, 256, 128>}, {pipeline_mode = #tpu.pipeline_mode<synchronous>, transform_indices = @transform_20, window_bounds = array<i64: 2, 1, 128>}, {pipeline_mode = #tpu.pipeline_mode<synchronous>, transform_indices = @transform_21, window_bounds = array<i64: 2, 1, 128>}, {pipeline_mode = #tpu.pipeline_mode<synchronous>, transform_indices = @transform_22, window_bounds = array<i64: 2, 1, 128>}, {pipeline_mode = #tpu.pipeline_mode<synchronous>, transform_indices = @transform_23, window_bounds = array<i64: 32, 128>}, {pipeline_mode = #tpu.pipeline_mode<synchronous>, transform_indices = @transform_24, window_bounds = array<i64: 32, 128>}, {pipeline_mode = #tpu.pipeline_mode<synchronous>, transform_indices = @transform_25, window_bounds = array<i64: 1, 1>}]} {
    %c0 = arith.constant 0 : index
    %c0_0 = arith.constant 0 : index
    %0 = vector.load %arg1[%c0, %c0_0] : memref<32x128xf32, #tpu.memory_space<vmem>>, vector<32x128xf32>
    %1 = arith.truncf %0 : vector<32x128xf32> to vector<32x128xbf16>
    %c0_1 = arith.constant 0 : index
    %c0_2 = arith.constant 0 : index
    %2 = vector.load %arg4[%c0_1, %c0_2] : memref<128x128xbf16, #tpu.memory_space<vmem>>, vector<128x128xbf16>
    %cst = arith.constant dense<0.000000e+00> : vector<32x128xf32>
    %3 = tpu.matmul %1, %2, %cst {dimension_numbers = #tpu.dot_dimension_numbers<[1], [0], [0], [1], [0, 0, 1, 1], [], []>} : vector<32x128xbf16>, vector<128x128xbf16>, vector<32x128xf32> -> vector<32x128xf32>
    %c0_3 = arith.constant 0 : index
    %c0_4 = arith.constant 0 : index
    %4 = vector.load %arg5[%c0_3, %c0_4] : memref<1x128xf32, #tpu.memory_space<vmem>>, vector<1x128xf32>
    %5 = vector.broadcast %4 : vector<1x128xf32> to vector<32x128xf32>
    %6 = arith.addf %3, %5 : vector<32x128xf32>
    %7 = arith.mulf %6, %6 : vector<32x128xf32>
    %8 = arith.mulf %6, %7 : vector<32x128xf32>
    %cst_5 = arith.constant 4.471500e-02 : f32
    %9 = vector.broadcast %cst_5 : f32 to vector<32x128xf32>
    %10 = arith.mulf %9, %8 : vector<32x128xf32>
    %11 = arith.addf %6, %10 : vector<32x128xf32>
    %cst_6 = arith.constant 0.797884583 : f32
    %12 = vector.broadcast %cst_6 : f32 to vector<32x128xf32>
    %13 = arith.mulf %12, %11 : vector<32x128xf32>
    %14 = math.tanh %13 : vector<32x128xf32>
    %cst_7 = arith.constant 1.000000e+00 : f32
    %15 = vector.broadcast %cst_7 : f32 to vector<32x128xf32>
    %16 = arith.addf %15, %14 : vector<32x128xf32>
    %cst_8 = arith.constant 5.000000e-01 : f32
    %17 = vector.broadcast %cst_8 : f32 to vector<32x128xf32>
    %18 = arith.mulf %17, %16 : vector<32x128xf32>
    %19 = arith.mulf %6, %18 : vector<32x128xf32>
    %c0_9 = arith.constant 0 : index
    %c0_10 = arith.constant 0 : index
    %20 = vector.load %arg6[%c0_9, %c0_10] : memref<1x128xf32, #tpu.memory_space<vmem>>, vector<1x128xf32>
    %c0_11 = arith.constant 0 : index
    %c0_12 = arith.constant 0 : index
    %21 = vector.load %arg7[%c0_11, %c0_12] : memref<1x128xf32, #tpu.memory_space<vmem>>, vector<1x128xf32>
    %cst_13 = arith.constant dense<0.000000e+00> : vector<32xf32>
    %22 = vector.multi_reduction <add>, %19, %cst_13 [1] : vector<32x128xf32> to vector<32xf32>
    %23 = vector.shape_cast %22 : vector<32xf32> to vector<32x1xf32>
    %cst_14 = arith.constant 1.280000e+02 : f32
    %24 = vector.broadcast %cst_14 : f32 to vector<32x1xf32>
    %25 = arith.divf %23, %24 : vector<32x1xf32>
    %26 = vector.broadcast %25 : vector<32x1xf32> to vector<32x128xf32>
    %27 = arith.subf %19, %26 : vector<32x128xf32>
    %28 = arith.mulf %27, %27 : vector<32x128xf32>
    %cst_15 = arith.constant dense<0.000000e+00> : vector<32xf32>
    %29 = vector.multi_reduction <add>, %28, %cst_15 [1] : vector<32x128xf32> to vector<32xf32>
    %30 = vector.shape_cast %29 : vector<32xf32> to vector<32x1xf32>
    %cst_16 = arith.constant 1.280000e+02 : f32
    %31 = vector.broadcast %cst_16 : f32 to vector<32x1xf32>
    %32 = arith.divf %30, %31 : vector<32x1xf32>
    %33 = vector.broadcast %25 : vector<32x1xf32> to vector<32x128xf32>
    %34 = arith.subf %19, %33 : vector<32x128xf32>
    %cst_17 = arith.constant 9.99999974E-6 : f32
    %35 = vector.broadcast %cst_17 : f32 to vector<32x1xf32>
    %36 = arith.addf %32, %35 : vector<32x1xf32>
    %37 = math.rsqrt %36 : vector<32x1xf32>
    %38 = vector.broadcast %37 : vector<32x1xf32> to vector<32x128xf32>
    %39 = arith.mulf %34, %38 : vector<32x128xf32>
    %40 = vector.broadcast %20 : vector<1x128xf32> to vector<32x128xf32>
    %41 = arith.mulf %39, %40 : vector<32x128xf32>
    %42 = vector.broadcast %21 : vector<1x128xf32> to vector<32x128xf32>
    %43 = arith.addf %41, %42 : vector<32x128xf32>
    %44 = arith.truncf %43 : vector<32x128xf32> to vector<32x128xbf16>
    %c0_18 = arith.constant 0 : index
    %c0_19 = arith.constant 0 : index
    %45 = vector.load %arg8[%c0_18, %c0_19] : memref<128x128xbf16, #tpu.memory_space<vmem>>, vector<128x128xbf16>
    %cst_20 = arith.constant dense<0.000000e+00> : vector<32x128xf32>
    %46 = tpu.matmul %44, %45, %cst_20 {dimension_numbers = #tpu.dot_dimension_numbers<[1], [0], [0], [1], [0, 0, 1, 1], [], []>} : vector<32x128xbf16>, vector<128x128xbf16>, vector<32x128xf32> -> vector<32x128xf32>
    %c0_21 = arith.constant 0 : index
    %c0_22 = arith.constant 0 : index
    %47 = vector.load %arg9[%c0_21, %c0_22] : memref<1x128xf32, #tpu.memory_space<vmem>>, vector<1x128xf32>
    %48 = vector.broadcast %47 : vector<1x128xf32> to vector<32x128xf32>
    %49 = arith.addf %46, %48 : vector<32x128xf32>
    %c0_23 = arith.constant 0 : index
    %c0_24 = arith.constant 0 : index
    %50 = vector.load %arg10[%c0_23, %c0_24] : memref<1x128xf32, #tpu.memory_space<vmem>>, vector<1x128xf32>
    %c0_25 = arith.constant 0 : index
    %c0_26 = arith.constant 0 : index
    %51 = vector.load %arg11[%c0_25, %c0_26] : memref<1x128xf32, #tpu.memory_space<vmem>>, vector<1x128xf32>
    %cst_27 = arith.constant dense<0.000000e+00> : vector<32xf32>
    %52 = vector.multi_reduction <add>, %49, %cst_27 [1] : vector<32x128xf32> to vector<32xf32>
    %53 = vector.shape_cast %52 : vector<32xf32> to vector<32x1xf32>
    %cst_28 = arith.constant 1.280000e+02 : f32
    %54 = vector.broadcast %cst_28 : f32 to vector<32x1xf32>
    %55 = arith.divf %53, %54 : vector<32x1xf32>
    %56 = vector.broadcast %55 : vector<32x1xf32> to vector<32x128xf32>
    %57 = arith.subf %49, %56 : vector<32x128xf32>
    %58 = arith.mulf %57, %57 : vector<32x128xf32>
    %cst_29 = arith.constant dense<0.000000e+00> : vector<32xf32>
    %59 = vector.multi_reduction <add>, %58, %cst_29 [1] : vector<32x128xf32> to vector<32xf32>
    %60 = vector.shape_cast %59 : vector<32xf32> to vector<32x1xf32>
    %cst_30 = arith.constant 1.280000e+02 : f32
    %61 = vector.broadcast %cst_30 : f32 to vector<32x1xf32>
    %62 = arith.divf %60, %61 : vector<32x1xf32>
    %63 = vector.broadcast %55 : vector<32x1xf32> to vector<32x128xf32>
    %64 = arith.subf %49, %63 : vector<32x128xf32>
    %cst_31 = arith.constant 9.99999974E-6 : f32
    %65 = vector.broadcast %cst_31 : f32 to vector<32x1xf32>
    %66 = arith.addf %62, %65 : vector<32x1xf32>
    %67 = math.rsqrt %66 : vector<32x1xf32>
    %68 = vector.broadcast %67 : vector<32x1xf32> to vector<32x128xf32>
    %69 = arith.mulf %64, %68 : vector<32x128xf32>
    %70 = vector.broadcast %50 : vector<1x128xf32> to vector<32x128xf32>
    %71 = arith.mulf %69, %70 : vector<32x128xf32>
    %72 = vector.broadcast %51 : vector<1x128xf32> to vector<32x128xf32>
    %73 = arith.addf %71, %72 : vector<32x128xf32>
    %74 = arith.truncf %73 : vector<32x128xf32> to vector<32x128xbf16>
    %c0_32 = arith.constant 0 : index
    %c0_33 = arith.constant 0 : index
    %c0_34 = arith.constant 0 : index
    %75 = vector.load %arg12[%c0_32, %c0_33, %c0_34] : memref<2x128x384xbf16, #tpu.memory_space<vmem>>, vector<1x128x384xbf16>
    %76 = vector.shape_cast %75 : vector<1x128x384xbf16> to vector<128x384xbf16>
    %cst_35 = arith.constant dense<0.000000e+00> : vector<32x384xf32>
    %77 = tpu.matmul %74, %76, %cst_35 {dimension_numbers = #tpu.dot_dimension_numbers<[1], [0], [0], [1], [0, 0, 1, 1], [], []>} : vector<32x128xbf16>, vector<128x384xbf16>, vector<32x384xf32> -> vector<32x384xf32>
    %c0_36 = arith.constant 0 : index
    %c0_37 = arith.constant 0 : index
    %c0_38 = arith.constant 0 : index
    %78 = vector.load %arg13[%c0_36, %c0_37, %c0_38] : memref<2x1x384xf32, #tpu.memory_space<vmem>>, vector<1x1x384xf32>
    %79 = vector.shape_cast %78 : vector<1x1x384xf32> to vector<1x384xf32>
    %80 = vector.broadcast %79 : vector<1x384xf32> to vector<32x384xf32>
    %81 = arith.addf %77, %80 : vector<32x384xf32>
    %82 = vector.extract_strided_slice %81 {offsets = [0, 0], sizes = [32, 128], strides = [1, 1]} : vector<32x384xf32> to vector<32x128xf32>
    %83 = arith.truncf %82 : vector<32x128xf32> to vector<32x128xbf16>
    %84 = vector.extract_strided_slice %81 {offsets = [0, 128], sizes = [32, 128], strides = [1, 1]} : vector<32x384xf32> to vector<32x128xf32>
    %85 = arith.truncf %84 : vector<32x128xf32> to vector<32x128xbf16>
    %86 = vector.extract_strided_slice %81 {offsets = [0, 256], sizes = [32, 128], strides = [1, 1]} : vector<32x384xf32> to vector<32x128xf32>
    %87 = arith.truncf %86 : vector<32x128xf32> to vector<32x128xbf16>
    %88 = vector.extract_strided_slice %83 {offsets = [0, 0], sizes = [16, 32], strides = [1, 1]} : vector<32x128xbf16> to vector<16x32xbf16>
    %89 = vector.extract_strided_slice %85 {offsets = [0, 0], sizes = [16, 32], strides = [1, 1]} : vector<32x128xbf16> to vector<16x32xbf16>
    %90 = vector.extract_strided_slice %87 {offsets = [0, 0], sizes = [16, 32], strides = [1, 1]} : vector<32x128xbf16> to vector<16x32xbf16>
    %cst_39 = arith.constant dense<0.000000e+00> : vector<16x16xf32>
    %91 = tpu.matmul %88, %89, %cst_39 {dimension_numbers = #tpu.dot_dimension_numbers<[1], [1], [0], [0], [0, 0, 1, 0], [], []>} : vector<16x32xbf16>, vector<16x32xbf16>, vector<16x16xf32> -> vector<16x16xf32>
    %cst_40 = arith.constant 0.176776692 : f32
    %92 = vector.broadcast %cst_40 : f32 to vector<16x16xf32>
    %93 = arith.mulf %91, %92 : vector<16x16xf32>
    %cst_41 = arith.constant dense<0xFF800000> : vector<16xf32>
    %94 = vector.multi_reduction <maximumf>, %93, %cst_41 [1] : vector<16x16xf32> to vector<16xf32>
    %95 = vector.shape_cast %94 : vector<16xf32> to vector<16x1xf32>
    %96 = vector.broadcast %95 : vector<16x1xf32> to vector<16x16xf32>
    %97 = arith.subf %93, %96 : vector<16x16xf32>
    %98 = math.exp %97 : vector<16x16xf32>
    %cst_42 = arith.constant dense<0.000000e+00> : vector<16xf32>
    %99 = vector.multi_reduction <add>, %98, %cst_42 [1] : vector<16x16xf32> to vector<16xf32>
    %100 = vector.shape_cast %99 : vector<16xf32> to vector<16x1xf32>
    %101 = tpu.reciprocal %100 {approx = true} : vector<16x1xf32> -> vector<16x1xf32>
    %102 = vector.broadcast %101 : vector<16x1xf32> to vector<16x16xf32>
    %103 = arith.mulf %98, %102 : vector<16x16xf32>
    %104 = arith.truncf %103 : vector<16x16xf32> to vector<16x16xbf16>
    %cst_43 = arith.constant dense<0.000000e+00> : vector<16x32xf32>
    %105 = tpu.matmul %104, %90, %cst_43 {dimension_numbers = #tpu.dot_dimension_numbers<[1], [0], [0], [1], [0, 0, 1, 1], [], []>} : vector<16x16xbf16>, vector<16x32xbf16>, vector<16x32xf32> -> vector<16x32xf32>
    %c0_44 = arith.constant 0 : index
    %c0_45 = arith.constant 0 : index
    %106 = vector.load %arg27[%c0_44, %c0_45] : memref<32x128xf32, #tpu.memory_space<vmem>>, vector<16x32xf32>
    tpu.vector_store %arg27[%c0_44, %c0_45], %105 {strides = array<i32>} : memref<32x128xf32, #tpu.memory_space<vmem>>, vector<16x32xf32>,
    %107 = vector.extract_strided_slice %83 {offsets = [0, 32], sizes = [16, 32], strides = [1, 1]} : vector<32x128xbf16> to vector<16x32xbf16>
    %108 = vector.extract_strided_slice %85 {offsets = [0, 32], sizes = [16, 32], strides = [1, 1]} : vector<32x128xbf16> to vector<16x32xbf16>
    %109 = vector.extract_strided_slice %87 {offsets = [0, 32], sizes = [16, 32], strides = [1, 1]} : vector<32x128xbf16> to vector<16x32xbf16>
    %cst_46 = arith.constant dense<0.000000e+00> : vector<16x16xf32>
    %110 = tpu.matmul %107, %108, %cst_46 {dimension_numbers = #tpu.dot_dimension_numbers<[1], [1], [0], [0], [0, 0, 1, 0], [], []>} : vector<16x32xbf16>, vector<16x32xbf16>, vector<16x16xf32> -> vector<16x16xf32>
    %cst_47 = arith.constant 0.176776692 : f32
    %111 = vector.broadcast %cst_47 : f32 to vector<16x16xf32>
    %112 = arith.mulf %110, %111 : vector<16x16xf32>
    %cst_48 = arith.constant dense<0xFF800000> : vector<16xf32>
    %113 = vector.multi_reduction <maximumf>, %112, %cst_48 [1] : vector<16x16xf32> to vector<16xf32>
    %114 = vector.shape_cast %113 : vector<16xf32> to vector<16x1xf32>
    %115 = vector.broadcast %114 : vector<16x1xf32> to vector<16x16xf32>
    %116 = arith.subf %112, %115 : vector<16x16xf32>
    %117 = math.exp %116 : vector<16x16xf32>
    %cst_49 = arith.constant dense<0.000000e+00> : vector<16xf32>
    %118 = vector.multi_reduction <add>, %117, %cst_49 [1] : vector<16x16xf32> to vector<16xf32>
    %119 = vector.shape_cast %118 : vector<16xf32> to vector<16x1xf32>
    %120 = tpu.reciprocal %119 {approx = true} : vector<16x1xf32> -> vector<16x1xf32>
    %121 = vector.broadcast %120 : vector<16x1xf32> to vector<16x16xf32>
    %122 = arith.mulf %117, %121 : vector<16x16xf32>
    %123 = arith.truncf %122 : vector<16x16xf32> to vector<16x16xbf16>
    %cst_50 = arith.constant dense<0.000000e+00> : vector<16x32xf32>
    %124 = tpu.matmul %123, %109, %cst_50 {dimension_numbers = #tpu.dot_dimension_numbers<[1], [0], [0], [1], [0, 0, 1, 1], [], []>} : vector<16x16xbf16>, vector<16x32xbf16>, vector<16x32xf32> -> vector<16x32xf32>
    %c0_51 = arith.constant 0 : index
    %c32 = arith.constant 32 : index
    %125 = vector.load %arg27[%c0_51, %c32] : memref<32x128xf32, #tpu.memory_space<vmem>>, vector<16x32xf32>
    tpu.vector_store %arg27[%c0_51, %c32], %124 {strides = array<i32>} : memref<32x128xf32, #tpu.memory_space<vmem>>, vector<16x32xf32>,
    %126 = vector.extract_strided_slice %83 {offsets = [0, 64], sizes = [16, 32], strides = [1, 1]} : vector<32x128xbf16> to vector<16x32xbf16>
    %127 = vector.extract_strided_slice %85 {offsets = [0, 64], sizes = [16, 32], strides = [1, 1]} : vector<32x128xbf16> to vector<16x32xbf16>
    %128 = vector.extract_strided_slice %87 {offsets = [0, 64], sizes = [16, 32], strides = [1, 1]} : vector<32x128xbf16> to vector<16x32xbf16>
    %cst_52 = arith.constant dense<0.000000e+00> : vector<16x16xf32>
    %129 = tpu.matmul %126, %127, %cst_52 {dimension_numbers = #tpu.dot_dimension_numbers<[1], [1], [0], [0], [0, 0, 1, 0], [], []>} : vector<16x32xbf16>, vector<16x32xbf16>, vector<16x16xf32> -> vector<16x16xf32>
    %cst_53 = arith.constant 0.176776692 : f32
    %130 = vector.broadcast %cst_53 : f32 to vector<16x16xf32>
    %131 = arith.mulf %129, %130 : vector<16x16xf32>
    %cst_54 = arith.constant dense<0xFF800000> : vector<16xf32>
    %132 = vector.multi_reduction <maximumf>, %131, %cst_54 [1] : vector<16x16xf32> to vector<16xf32>
    %133 = vector.shape_cast %132 : vector<16xf32> to vector<16x1xf32>
    %134 = vector.broadcast %133 : vector<16x1xf32> to vector<16x16xf32>
    %135 = arith.subf %131, %134 : vector<16x16xf32>
    %136 = math.exp %135 : vector<16x16xf32>
    %cst_55 = arith.constant dense<0.000000e+00> : vector<16xf32>
    %137 = vector.multi_reduction <add>, %136, %cst_55 [1] : vector<16x16xf32> to vector<16xf32>
    %138 = vector.shape_cast %137 : vector<16xf32> to vector<16x1xf32>
    %139 = tpu.reciprocal %138 {approx = true} : vector<16x1xf32> -> vector<16x1xf32>
    %140 = vector.broadcast %139 : vector<16x1xf32> to vector<16x16xf32>
    %141 = arith.mulf %136, %140 : vector<16x16xf32>
    %142 = arith.truncf %141 : vector<16x16xf32> to vector<16x16xbf16>
    %cst_56 = arith.constant dense<0.000000e+00> : vector<16x32xf32>
    %143 = tpu.matmul %142, %128, %cst_56 {dimension_numbers = #tpu.dot_dimension_numbers<[1], [0], [0], [1], [0, 0, 1, 1], [], []>} : vector<16x16xbf16>, vector<16x32xbf16>, vector<16x32xf32> -> vector<16x32xf32>
    %c0_57 = arith.constant 0 : index
    %c64 = arith.constant 64 : index
    %144 = vector.load %arg27[%c0_57, %c64] : memref<32x128xf32, #tpu.memory_space<vmem>>, vector<16x32xf32>
    tpu.vector_store %arg27[%c0_57, %c64], %143 {strides = array<i32>} : memref<32x128xf32, #tpu.memory_space<vmem>>, vector<16x32xf32>,
    %145 = vector.extract_strided_slice %83 {offsets = [0, 96], sizes = [16, 32], strides = [1, 1]} : vector<32x128xbf16> to vector<16x32xbf16>
    %146 = vector.extract_strided_slice %85 {offsets = [0, 96], sizes = [16, 32], strides = [1, 1]} : vector<32x128xbf16> to vector<16x32xbf16>
    %147 = vector.extract_strided_slice %87 {offsets = [0, 96], sizes = [16, 32], strides = [1, 1]} : vector<32x128xbf16> to vector<16x32xbf16>
    %cst_58 = arith.constant dense<0.000000e+00> : vector<16x16xf32>
    %148 = tpu.matmul %145, %146, %cst_58 {dimension_numbers = #tpu.dot_dimension_numbers<[1], [1], [0], [0], [0, 0, 1, 0], [], []>} : vector<16x32xbf16>, vector<16x32xbf16>, vector<16x16xf32> -> vector<16x16xf32>
    %cst_59 = arith.constant 0.176776692 : f32
    %149 = vector.broadcast %cst_59 : f32 to vector<16x16xf32>
    %150 = arith.mulf %148, %149 : vector<16x16xf32>
    %cst_60 = arith.constant dense<0xFF800000> : vector<16xf32>
    %151 = vector.multi_reduction <maximumf>, %150, %cst_60 [1] : vector<16x16xf32> to vector<16xf32>
    %152 = vector.shape_cast %151 : vector<16xf32> to vector<16x1xf32>
    %153 = vector.broadcast %152 : vector<16x1xf32> to vector<16x16xf32>
    %154 = arith.subf %150, %153 : vector<16x16xf32>
    %155 = math.exp %154 : vector<16x16xf32>
    %cst_61 = arith.constant dense<0.000000e+00> : vector<16xf32>
    %156 = vector.multi_reduction <add>, %155, %cst_61 [1] : vector<16x16xf32> to vector<16xf32>
    %157 = vector.shape_cast %156 : vector<16xf32> to vector<16x1xf32>
    %158 = tpu.reciprocal %157 {approx = true} : vector<16x1xf32> -> vector<16x1xf32>
    %159 = vector.broadcast %158 : vector<16x1xf32> to vector<16x16xf32>
    %160 = arith.mulf %155, %159 : vector<16x16xf32>
    %161 = arith.truncf %160 : vector<16x16xf32> to vector<16x16xbf16>
    %cst_62 = arith.constant dense<0.000000e+00> : vector<16x32xf32>
    %162 = tpu.matmul %161, %147, %cst_62 {dimension_numbers = #tpu.dot_dimension_numbers<[1], [0], [0], [1], [0, 0, 1, 1], [], []>} : vector<16x16xbf16>, vector<16x32xbf16>, vector<16x32xf32> -> vector<16x32xf32>
    %c0_63 = arith.constant 0 : index
    %c96 = arith.constant 96 : index
    %163 = vector.load %arg27[%c0_63, %c96] : memref<32x128xf32, #tpu.memory_space<vmem>>, vector<16x32xf32>
    tpu.vector_store %arg27[%c0_63, %c96], %162 {strides = array<i32>} : memref<32x128xf32, #tpu.memory_space<vmem>>, vector<16x32xf32>,
    %164 = vector.extract_strided_slice %83 {offsets = [16, 0], sizes = [16, 32], strides = [1, 1]} : vector<32x128xbf16> to vector<16x32xbf16>
    %165 = vector.extract_strided_slice %85 {offsets = [16, 0], sizes = [16, 32], strides = [1, 1]} : vector<32x128xbf16> to vector<16x32xbf16>
    %166 = vector.extract_strided_slice %87 {offsets = [16, 0], sizes = [16, 32], strides = [1, 1]} : vector<32x128xbf16> to vector<16x32xbf16>
    %cst_64 = arith.constant dense<0.000000e+00> : vector<16x16xf32>
    %167 = tpu.matmul %164, %165, %cst_64 {dimension_numbers = #tpu.dot_dimension_numbers<[1], [1], [0], [0], [0, 0, 1, 0], [], []>} : vector<16x32xbf16>, vector<16x32xbf16>, vector<16x16xf32> -> vector<16x16xf32>
    %cst_65 = arith.constant 0.176776692 : f32
    %168 = vector.broadcast %cst_65 : f32 to vector<16x16xf32>
    %169 = arith.mulf %167, %168 : vector<16x16xf32>
    %cst_66 = arith.constant dense<0xFF800000> : vector<16xf32>
    %170 = vector.multi_reduction <maximumf>, %169, %cst_66 [1] : vector<16x16xf32> to vector<16xf32>
    %171 = vector.shape_cast %170 : vector<16xf32> to vector<16x1xf32>
    %172 = vector.broadcast %171 : vector<16x1xf32> to vector<16x16xf32>
    %173 = arith.subf %169, %172 : vector<16x16xf32>
    %174 = math.exp %173 : vector<16x16xf32>
    %cst_67 = arith.constant dense<0.000000e+00> : vector<16xf32>
    %175 = vector.multi_reduction <add>, %174, %cst_67 [1] : vector<16x16xf32> to vector<16xf32>
    %176 = vector.shape_cast %175 : vector<16xf32> to vector<16x1xf32>
    %177 = tpu.reciprocal %176 {approx = true} : vector<16x1xf32> -> vector<16x1xf32>
    %178 = vector.broadcast %177 : vector<16x1xf32> to vector<16x16xf32>
    %179 = arith.mulf %174, %178 : vector<16x16xf32>
    %180 = arith.truncf %179 : vector<16x16xf32> to vector<16x16xbf16>
    %cst_68 = arith.constant dense<0.000000e+00> : vector<16x32xf32>
    %181 = tpu.matmul %180, %166, %cst_68 {dimension_numbers = #tpu.dot_dimension_numbers<[1], [0], [0], [1], [0, 0, 1, 1], [], []>} : vector<16x16xbf16>, vector<16x32xbf16>, vector<16x32xf32> -> vector<16x32xf32>
    %c16 = arith.constant 16 : index
    %c0_69 = arith.constant 0 : index
    %182 = vector.load %arg27[%c16, %c0_69] : memref<32x128xf32, #tpu.memory_space<vmem>>, vector<16x32xf32>
    tpu.vector_store %arg27[%c16, %c0_69], %181 {strides = array<i32>} : memref<32x128xf32, #tpu.memory_space<vmem>>, vector<16x32xf32>,
    %183 = vector.extract_strided_slice %83 {offsets = [16, 32], sizes = [16, 32], strides = [1, 1]} : vector<32x128xbf16> to vector<16x32xbf16>
    %184 = vector.extract_strided_slice %85 {offsets = [16, 32], sizes = [16, 32], strides = [1, 1]} : vector<32x128xbf16> to vector<16x32xbf16>
    %185 = vector.extract_strided_slice %87 {offsets = [16, 32], sizes = [16, 32], strides = [1, 1]} : vector<32x128xbf16> to vector<16x32xbf16>
    %cst_70 = arith.constant dense<0.000000e+00> : vector<16x16xf32>
    %186 = tpu.matmul %183, %184, %cst_70 {dimension_numbers = #tpu.dot_dimension_numbers<[1], [1], [0], [0], [0, 0, 1, 0], [], []>} : vector<16x32xbf16>, vector<16x32xbf16>, vector<16x16xf32> -> vector<16x16xf32>
    %cst_71 = arith.constant 0.176776692 : f32
    %187 = vector.broadcast %cst_71 : f32 to vector<16x16xf32>
    %188 = arith.mulf %186, %187 : vector<16x16xf32>
    %cst_72 = arith.constant dense<0xFF800000> : vector<16xf32>
    %189 = vector.multi_reduction <maximumf>, %188, %cst_72 [1] : vector<16x16xf32> to vector<16xf32>
    %190 = vector.shape_cast %189 : vector<16xf32> to vector<16x1xf32>
    %191 = vector.broadcast %190 : vector<16x1xf32> to vector<16x16xf32>
    %192 = arith.subf %188, %191 : vector<16x16xf32>
    %193 = math.exp %192 : vector<16x16xf32>
    %cst_73 = arith.constant dense<0.000000e+00> : vector<16xf32>
    %194 = vector.multi_reduction <add>, %193, %cst_73 [1] : vector<16x16xf32> to vector<16xf32>
    %195 = vector.shape_cast %194 : vector<16xf32> to vector<16x1xf32>
    %196 = tpu.reciprocal %195 {approx = true} : vector<16x1xf32> -> vector<16x1xf32>
    %197 = vector.broadcast %196 : vector<16x1xf32> to vector<16x16xf32>
    %198 = arith.mulf %193, %197 : vector<16x16xf32>
    %199 = arith.truncf %198 : vector<16x16xf32> to vector<16x16xbf16>
    %cst_74 = arith.constant dense<0.000000e+00> : vector<16x32xf32>
    %200 = tpu.matmul %199, %185, %cst_74 {dimension_numbers = #tpu.dot_dimension_numbers<[1], [0], [0], [1], [0, 0, 1, 1], [], []>} : vector<16x16xbf16>, vector<16x32xbf16>, vector<16x32xf32> -> vector<16x32xf32>
    %c16_75 = arith.constant 16 : index
    %c32_76 = arith.constant 32 : index
    %201 = vector.load %arg27[%c16_75, %c32_76] : memref<32x128xf32, #tpu.memory_space<vmem>>, vector<16x32xf32>
    tpu.vector_store %arg27[%c16_75, %c32_76], %200 {strides = array<i32>} : memref<32x128xf32, #tpu.memory_space<vmem>>, vector<16x32xf32>,
    %202 = vector.extract_strided_slice %83 {offsets = [16, 64], sizes = [16, 32], strides = [1, 1]} : vector<32x128xbf16> to vector<16x32xbf16>
    %203 = vector.extract_strided_slice %85 {offsets = [16, 64], sizes = [16, 32], strides = [1, 1]} : vector<32x128xbf16> to vector<16x32xbf16>
    %204 = vector.extract_strided_slice %87 {offsets = [16, 64], sizes = [16, 32], strides = [1, 1]} : vector<32x128xbf16> to vector<16x32xbf16>
    %cst_77 = arith.constant dense<0.000000e+00> : vector<16x16xf32>
    %205 = tpu.matmul %202, %203, %cst_77 {dimension_numbers = #tpu.dot_dimension_numbers<[1], [1], [0], [0], [0, 0, 1, 0], [], []>} : vector<16x32xbf16>, vector<16x32xbf16>, vector<16x16xf32> -> vector<16x16xf32>
    %cst_78 = arith.constant 0.176776692 : f32
    %206 = vector.broadcast %cst_78 : f32 to vector<16x16xf32>
    %207 = arith.mulf %205, %206 : vector<16x16xf32>
    %cst_79 = arith.constant dense<0xFF800000> : vector<16xf32>
    %208 = vector.multi_reduction <maximumf>, %207, %cst_79 [1] : vector<16x16xf32> to vector<16xf32>
    %209 = vector.shape_cast %208 : vector<16xf32> to vector<16x1xf32>
    %210 = vector.broadcast %209 : vector<16x1xf32> to vector<16x16xf32>
    %211 = arith.subf %207, %210 : vector<16x16xf32>
    %212 = math.exp %211 : vector<16x16xf32>
    %cst_80 = arith.constant dense<0.000000e+00> : vector<16xf32>
    %213 = vector.multi_reduction <add>, %212, %cst_80 [1] : vector<16x16xf32> to vector<16xf32>
    %214 = vector.shape_cast %213 : vector<16xf32> to vector<16x1xf32>
    %215 = tpu.reciprocal %214 {approx = true} : vector<16x1xf32> -> vector<16x1xf32>
    %216 = vector.broadcast %215 : vector<16x1xf32> to vector<16x16xf32>
    %217 = arith.mulf %212, %216 : vector<16x16xf32>
    %218 = arith.truncf %217 : vector<16x16xf32> to vector<16x16xbf16>
    %cst_81 = arith.constant dense<0.000000e+00> : vector<16x32xf32>
    %219 = tpu.matmul %218, %204, %cst_81 {dimension_numbers = #tpu.dot_dimension_numbers<[1], [0], [0], [1], [0, 0, 1, 1], [], []>} : vector<16x16xbf16>, vector<16x32xbf16>, vector<16x32xf32> -> vector<16x32xf32>
    %c16_82 = arith.constant 16 : index
    %c64_83 = arith.constant 64 : index
    %220 = vector.load %arg27[%c16_82, %c64_83] : memref<32x128xf32, #tpu.memory_space<vmem>>, vector<16x32xf32>
    tpu.vector_store %arg27[%c16_82, %c64_83], %219 {strides = array<i32>} : memref<32x128xf32, #tpu.memory_space<vmem>>, vector<16x32xf32>,
    %221 = vector.extract_strided_slice %83 {offsets = [16, 96], sizes = [16, 32], strides = [1, 1]} : vector<32x128xbf16> to vector<16x32xbf16>
    %222 = vector.extract_strided_slice %85 {offsets = [16, 96], sizes = [16, 32], strides = [1, 1]} : vector<32x128xbf16> to vector<16x32xbf16>
    %223 = vector.extract_strided_slice %87 {offsets = [16, 96], sizes = [16, 32], strides = [1, 1]} : vector<32x128xbf16> to vector<16x32xbf16>
    %cst_84 = arith.constant dense<0.000000e+00> : vector<16x16xf32>
    %224 = tpu.matmul %221, %222, %cst_84 {dimension_numbers = #tpu.dot_dimension_numbers<[1], [1], [0], [0], [0, 0, 1, 0], [], []>} : vector<16x32xbf16>, vector<16x32xbf16>, vector<16x16xf32> -> vector<16x16xf32>
    %cst_85 = arith.constant 0.176776692 : f32
    %225 = vector.broadcast %cst_85 : f32 to vector<16x16xf32>
    %226 = arith.mulf %224, %225 : vector<16x16xf32>
    %cst_86 = arith.constant dense<0xFF800000> : vector<16xf32>
    %227 = vector.multi_reduction <maximumf>, %226, %cst_86 [1] : vector<16x16xf32> to vector<16xf32>
    %228 = vector.shape_cast %227 : vector<16xf32> to vector<16x1xf32>
    %229 = vector.broadcast %228 : vector<16x1xf32> to vector<16x16xf32>
    %230 = arith.subf %226, %229 : vector<16x16xf32>
    %231 = math.exp %230 : vector<16x16xf32>
    %cst_87 = arith.constant dense<0.000000e+00> : vector<16xf32>
    %232 = vector.multi_reduction <add>, %231, %cst_87 [1] : vector<16x16xf32> to vector<16xf32>
    %233 = vector.shape_cast %232 : vector<16xf32> to vector<16x1xf32>
    %234 = tpu.reciprocal %233 {approx = true} : vector<16x1xf32> -> vector<16x1xf32>
    %235 = vector.broadcast %234 : vector<16x1xf32> to vector<16x16xf32>
    %236 = arith.mulf %231, %235 : vector<16x16xf32>
    %237 = arith.truncf %236 : vector<16x16xf32> to vector<16x16xbf16>
    %cst_88 = arith.constant dense<0.000000e+00> : vector<16x32xf32>
    %238 = tpu.matmul %237, %223, %cst_88 {dimension_numbers = #tpu.dot_dimension_numbers<[1], [0], [0], [1], [0, 0, 1, 1], [], []>} : vector<16x16xbf16>, vector<16x32xbf16>, vector<16x32xf32> -> vector<16x32xf32>
    %c16_89 = arith.constant 16 : index
    %c96_90 = arith.constant 96 : index
    %239 = vector.load %arg27[%c16_89, %c96_90] : memref<32x128xf32, #tpu.memory_space<vmem>>, vector<16x32xf32>
    tpu.vector_store %arg27[%c16_89, %c96_90], %238 {strides = array<i32>} : memref<32x128xf32, #tpu.memory_space<vmem>>, vector<16x32xf32>,
    %c0_91 = arith.constant 0 : index
    %c0_92 = arith.constant 0 : index
    %240 = vector.load %arg27[%c0_91, %c0_92] : memref<32x128xf32, #tpu.memory_space<vmem>>, vector<32x128xf32>
    %241 = arith.truncf %240 : vector<32x128xf32> to vector<32x128xbf16>
    %c0_93 = arith.constant 0 : index
    %c0_94 = arith.constant 0 : index
    %c0_95 = arith.constant 0 : index
    %242 = vector.load %arg14[%c0_93, %c0_94, %c0_95] : memref<2x128x128xbf16, #tpu.memory_space<vmem>>, vector<1x128x128xbf16>
    %243 = vector.shape_cast %242 : vector<1x128x128xbf16> to vector<128x128xbf16>
    %cst_96 = arith.constant dense<0.000000e+00> : vector<32x128xf32>
    %244 = tpu.matmul %241, %243, %cst_96 {dimension_numbers = #tpu.dot_dimension_numbers<[1], [0], [0], [1], [0, 0, 1, 1], [], []>} : vector<32x128xbf16>, vector<128x128xbf16>, vector<32x128xf32> -> vector<32x128xf32>
    %c0_97 = arith.constant 0 : index
    %c0_98 = arith.constant 0 : index
    %c0_99 = arith.constant 0 : index
    %245 = vector.load %arg15[%c0_97, %c0_98, %c0_99] : memref<2x1x128xf32, #tpu.memory_space<vmem>>, vector<1x1x128xf32>
    %246 = vector.shape_cast %245 : vector<1x1x128xf32> to vector<1x128xf32>
    %247 = vector.broadcast %246 : vector<1x128xf32> to vector<32x128xf32>
    %248 = arith.addf %244, %247 : vector<32x128xf32>
    %249 = arith.addf %73, %248 : vector<32x128xf32>
    %c0_100 = arith.constant 0 : index
    %c0_101 = arith.constant 0 : index
    %c0_102 = arith.constant 0 : index
    %250 = vector.load %arg16[%c0_100, %c0_101, %c0_102] : memref<2x1x128xf32, #tpu.memory_space<vmem>>, vector<1x1x128xf32>
    %251 = vector.shape_cast %250 : vector<1x1x128xf32> to vector<1x128xf32>
    %c0_103 = arith.constant 0 : index
    %c0_104 = arith.constant 0 : index
    %c0_105 = arith.constant 0 : index
    %252 = vector.load %arg17[%c0_103, %c0_104, %c0_105] : memref<2x1x128xf32, #tpu.memory_space<vmem>>, vector<1x1x128xf32>
    %253 = vector.shape_cast %252 : vector<1x1x128xf32> to vector<1x128xf32>
    %cst_106 = arith.constant dense<0.000000e+00> : vector<32xf32>
    %254 = vector.multi_reduction <add>, %249, %cst_106 [1] : vector<32x128xf32> to vector<32xf32>
    %255 = vector.shape_cast %254 : vector<32xf32> to vector<32x1xf32>
    %cst_107 = arith.constant 1.280000e+02 : f32
    %256 = vector.broadcast %cst_107 : f32 to vector<32x1xf32>
    %257 = arith.divf %255, %256 : vector<32x1xf32>
    %258 = vector.broadcast %257 : vector<32x1xf32> to vector<32x128xf32>
    %259 = arith.subf %249, %258 : vector<32x128xf32>
    %260 = arith.mulf %259, %259 : vector<32x128xf32>
    %cst_108 = arith.constant dense<0.000000e+00> : vector<32xf32>
    %261 = vector.multi_reduction <add>, %260, %cst_108 [1] : vector<32x128xf32> to vector<32xf32>
    %262 = vector.shape_cast %261 : vector<32xf32> to vector<32x1xf32>
    %cst_109 = arith.constant 1.280000e+02 : f32
    %263 = vector.broadcast %cst_109 : f32 to vector<32x1xf32>
    %264 = arith.divf %262, %263 : vector<32x1xf32>
    %265 = vector.broadcast %257 : vector<32x1xf32> to vector<32x128xf32>
    %266 = arith.subf %249, %265 : vector<32x128xf32>
    %cst_110 = arith.constant 9.99999974E-6 : f32
    %267 = vector.broadcast %cst_110 : f32 to vector<32x1xf32>
    %268 = arith.addf %264, %267 : vector<32x1xf32>
    %269 = math.rsqrt %268 : vector<32x1xf32>
    %270 = vector.broadcast %269 : vector<32x1xf32> to vector<32x128xf32>
    %271 = arith.mulf %266, %270 : vector<32x128xf32>
    %272 = vector.broadcast %251 : vector<1x128xf32> to vector<32x128xf32>
    %273 = arith.mulf %271, %272 : vector<32x128xf32>
    %274 = vector.broadcast %253 : vector<1x128xf32> to vector<32x128xf32>
    %275 = arith.addf %273, %274 : vector<32x128xf32>
    %276 = arith.truncf %275 : vector<32x128xf32> to vector<32x128xbf16>
    %c0_111 = arith.constant 0 : index
    %c0_112 = arith.constant 0 : index
    %c0_113 = arith.constant 0 : index
    %277 = vector.load %arg18[%c0_111, %c0_112, %c0_113] : memref<2x128x256xbf16, #tpu.memory_space<vmem>>, vector<1x128x256xbf16>
    %278 = vector.shape_cast %277 : vector<1x128x256xbf16> to vector<128x256xbf16>
    %cst_114 = arith.constant dense<0.000000e+00> : vector<32x256xf32>
    %279 = tpu.matmul %276, %278, %cst_114 {dimension_numbers = #tpu.dot_dimension_numbers<[1], [0], [0], [1], [0, 0, 1, 1], [], []>} : vector<32x128xbf16>, vector<128x256xbf16>, vector<32x256xf32> -> vector<32x256xf32>
    %c0_115 = arith.constant 0 : index
    %c0_116 = arith.constant 0 : index
    %c0_117 = arith.constant 0 : index
    %280 = vector.load %arg19[%c0_115, %c0_116, %c0_117] : memref<2x1x256xf32, #tpu.memory_space<vmem>>, vector<1x1x256xf32>
    %281 = vector.shape_cast %280 : vector<1x1x256xf32> to vector<1x256xf32>
    %282 = vector.broadcast %281 : vector<1x256xf32> to vector<32x256xf32>
    %283 = arith.addf %279, %282 : vector<32x256xf32>
    %284 = arith.mulf %283, %283 : vector<32x256xf32>
    %285 = arith.mulf %283, %284 : vector<32x256xf32>
    %cst_118 = arith.constant 4.471500e-02 : f32
    %286 = vector.broadcast %cst_118 : f32 to vector<32x256xf32>
    %287 = arith.mulf %286, %285 : vector<32x256xf32>
    %288 = arith.addf %283, %287 : vector<32x256xf32>
    %cst_119 = arith.constant 0.797884583 : f32
    %289 = vector.broadcast %cst_119 : f32 to vector<32x256xf32>
    %290 = arith.mulf %289, %288 : vector<32x256xf32>
    %291 = math.tanh %290 : vector<32x256xf32>
    %cst_120 = arith.constant 1.000000e+00 : f32
    %292 = vector.broadcast %cst_120 : f32 to vector<32x256xf32>
    %293 = arith.addf %292, %291 : vector<32x256xf32>
    %cst_121 = arith.constant 5.000000e-01 : f32
    %294 = vector.broadcast %cst_121 : f32 to vector<32x256xf32>
    %295 = arith.mulf %294, %293 : vector<32x256xf32>
    %296 = arith.mulf %283, %295 : vector<32x256xf32>
    %297 = arith.truncf %296 : vector<32x256xf32> to vector<32x256xbf16>
    %c0_122 = arith.constant 0 : index
    %c0_123 = arith.constant 0 : index
    %c0_124 = arith.constant 0 : index
    %298 = vector.load %arg20[%c0_122, %c0_123, %c0_124] : memref<2x256x128xbf16, #tpu.memory_space<vmem>>, vector<1x256x128xbf16>
    %299 = vector.shape_cast %298 : vector<1x256x128xbf16> to vector<256x128xbf16>
    %cst_125 = arith.constant dense<0.000000e+00> : vector<32x128xf32>
    %300 = tpu.matmul %297, %299, %cst_125 {dimension_numbers = #tpu.dot_dimension_numbers<[1], [0], [0], [1], [0, 0, 1, 1], [], []>} : vector<32x256xbf16>, vector<256x128xbf16>, vector<32x128xf32> -> vector<32x128xf32>
    %c0_126 = arith.constant 0 : index
    %c0_127 = arith.constant 0 : index
    %c0_128 = arith.constant 0 : index
    %301 = vector.load %arg21[%c0_126, %c0_127, %c0_128] : memref<2x1x128xf32, #tpu.memory_space<vmem>>, vector<1x1x128xf32>
    %302 = vector.shape_cast %301 : vector<1x1x128xf32> to vector<1x128xf32>
    %303 = vector.broadcast %302 : vector<1x128xf32> to vector<32x128xf32>
    %304 = arith.addf %300, %303 : vector<32x128xf32>
    %305 = arith.addf %275, %304 : vector<32x128xf32>
    %c0_129 = arith.constant 0 : index
    %c0_130 = arith.constant 0 : index
    %c0_131 = arith.constant 0 : index
    %306 = vector.load %arg22[%c0_129, %c0_130, %c0_131] : memref<2x1x128xf32, #tpu.memory_space<vmem>>, vector<1x1x128xf32>
    %307 = vector.shape_cast %306 : vector<1x1x128xf32> to vector<1x128xf32>
    %c0_132 = arith.constant 0 : index
    %c0_133 = arith.constant 0 : index
    %c0_134 = arith.constant 0 : index
    %308 = vector.load %arg23[%c0_132, %c0_133, %c0_134] : memref<2x1x128xf32, #tpu.memory_space<vmem>>, vector<1x1x128xf32>
    %309 = vector.shape_cast %308 : vector<1x1x128xf32> to vector<1x128xf32>
    %cst_135 = arith.constant dense<0.000000e+00> : vector<32xf32>
    %310 = vector.multi_reduction <add>, %305, %cst_135 [1] : vector<32x128xf32> to vector<32xf32>
    %311 = vector.shape_cast %310 : vector<32xf32> to vector<32x1xf32>
    %cst_136 = arith.constant 1.280000e+02 : f32
    %312 = vector.broadcast %cst_136 : f32 to vector<32x1xf32>
    %313 = arith.divf %311, %312 : vector<32x1xf32>
    %314 = vector.broadcast %313 : vector<32x1xf32> to vector<32x128xf32>
    %315 = arith.subf %305, %314 : vector<32x128xf32>
    %316 = arith.mulf %315, %315 : vector<32x128xf32>
    %cst_137 = arith.constant dense<0.000000e+00> : vector<32xf32>
    %317 = vector.multi_reduction <add>, %316, %cst_137 [1] : vector<32x128xf32> to vector<32xf32>
    %318 = vector.shape_cast %317 : vector<32xf32> to vector<32x1xf32>
    %cst_138 = arith.constant 1.280000e+02 : f32
    %319 = vector.broadcast %cst_138 : f32 to vector<32x1xf32>
    %320 = arith.divf %318, %319 : vector<32x1xf32>
    %321 = vector.broadcast %313 : vector<32x1xf32> to vector<32x128xf32>
    %322 = arith.subf %305, %321 : vector<32x128xf32>
    %cst_139 = arith.constant 9.99999974E-6 : f32
    %323 = vector.broadcast %cst_139 : f32 to vector<32x1xf32>
    %324 = arith.addf %320, %323 : vector<32x1xf32>
    %325 = math.rsqrt %324 : vector<32x1xf32>
    %326 = vector.broadcast %325 : vector<32x1xf32> to vector<32x128xf32>
    %327 = arith.mulf %322, %326 : vector<32x128xf32>
    %328 = vector.broadcast %307 : vector<1x128xf32> to vector<32x128xf32>
    %329 = arith.mulf %327, %328 : vector<32x128xf32>
    %330 = vector.broadcast %309 : vector<1x128xf32> to vector<32x128xf32>
    %331 = arith.addf %329, %330 : vector<32x128xf32>
    %332 = arith.truncf %331 : vector<32x128xf32> to vector<32x128xbf16>
    %c1 = arith.constant 1 : index
    %c0_140 = arith.constant 0 : index
    %c0_141 = arith.constant 0 : index
    %333 = vector.load %arg12[%c1, %c0_140, %c0_141] : memref<2x128x384xbf16, #tpu.memory_space<vmem>>, vector<1x128x384xbf16>
    %334 = vector.shape_cast %333 : vector<1x128x384xbf16> to vector<128x384xbf16>
    %cst_142 = arith.constant dense<0.000000e+00> : vector<32x384xf32>
    %335 = tpu.matmul %332, %334, %cst_142 {dimension_numbers = #tpu.dot_dimension_numbers<[1], [0], [0], [1], [0, 0, 1, 1], [], []>} : vector<32x128xbf16>, vector<128x384xbf16>, vector<32x384xf32> -> vector<32x384xf32>
    %c1_143 = arith.constant 1 : index
    %c0_144 = arith.constant 0 : index
    %c0_145 = arith.constant 0 : index
    %336 = vector.load %arg13[%c1_143, %c0_144, %c0_145] : memref<2x1x384xf32, #tpu.memory_space<vmem>>, vector<1x1x384xf32>
    %337 = vector.shape_cast %336 : vector<1x1x384xf32> to vector<1x384xf32>
    %338 = vector.broadcast %337 : vector<1x384xf32> to vector<32x384xf32>
    %339 = arith.addf %335, %338 : vector<32x384xf32>
    %340 = vector.extract_strided_slice %339 {offsets = [0, 0], sizes = [32, 128], strides = [1, 1]} : vector<32x384xf32> to vector<32x128xf32>
    %341 = arith.truncf %340 : vector<32x128xf32> to vector<32x128xbf16>
    %342 = vector.extract_strided_slice %339 {offsets = [0, 128], sizes = [32, 128], strides = [1, 1]} : vector<32x384xf32> to vector<32x128xf32>
    %343 = arith.truncf %342 : vector<32x128xf32> to vector<32x128xbf16>
    %344 = vector.extract_strided_slice %339 {offsets = [0, 256], sizes = [32, 128], strides = [1, 1]} : vector<32x384xf32> to vector<32x128xf32>
    %345 = arith.truncf %344 : vector<32x128xf32> to vector<32x128xbf16>
    %346 = vector.extract_strided_slice %341 {offsets = [0, 0], sizes = [16, 32], strides = [1, 1]} : vector<32x128xbf16> to vector<16x32xbf16>
    %347 = vector.extract_strided_slice %343 {offsets = [0, 0], sizes = [16, 32], strides = [1, 1]} : vector<32x128xbf16> to vector<16x32xbf16>
    %348 = vector.extract_strided_slice %345 {offsets = [0, 0], sizes = [16, 32], strides = [1, 1]} : vector<32x128xbf16> to vector<16x32xbf16>
    %cst_146 = arith.constant dense<0.000000e+00> : vector<16x16xf32>
    %349 = tpu.matmul %346, %347, %cst_146 {dimension_numbers = #tpu.dot_dimension_numbers<[1], [1], [0], [0], [0, 0, 1, 0], [], []>} : vector<16x32xbf16>, vector<16x32xbf16>, vector<16x16xf32> -> vector<16x16xf32>
    %cst_147 = arith.constant 0.176776692 : f32
    %350 = vector.broadcast %cst_147 : f32 to vector<16x16xf32>
    %351 = arith.mulf %349, %350 : vector<16x16xf32>
    %cst_148 = arith.constant dense<0xFF800000> : vector<16xf32>
    %352 = vector.multi_reduction <maximumf>, %351, %cst_148 [1] : vector<16x16xf32> to vector<16xf32>
    %353 = vector.shape_cast %352 : vector<16xf32> to vector<16x1xf32>
    %354 = vector.broadcast %353 : vector<16x1xf32> to vector<16x16xf32>
    %355 = arith.subf %351, %354 : vector<16x16xf32>
    %356 = math.exp %355 : vector<16x16xf32>
    %cst_149 = arith.constant dense<0.000000e+00> : vector<16xf32>
    %357 = vector.multi_reduction <add>, %356, %cst_149 [1] : vector<16x16xf32> to vector<16xf32>
    %358 = vector.shape_cast %357 : vector<16xf32> to vector<16x1xf32>
    %359 = tpu.reciprocal %358 {approx = true} : vector<16x1xf32> -> vector<16x1xf32>
    %360 = vector.broadcast %359 : vector<16x1xf32> to vector<16x16xf32>
    %361 = arith.mulf %356, %360 : vector<16x16xf32>
    %362 = arith.truncf %361 : vector<16x16xf32> to vector<16x16xbf16>
    %cst_150 = arith.constant dense<0.000000e+00> : vector<16x32xf32>
    %363 = tpu.matmul %362, %348, %cst_150 {dimension_numbers = #tpu.dot_dimension_numbers<[1], [0], [0], [1], [0, 0, 1, 1], [], []>} : vector<16x16xbf16>, vector<16x32xbf16>, vector<16x32xf32> -> vector<16x32xf32>
    %c0_151 = arith.constant 0 : index
    %c0_152 = arith.constant 0 : index
    %364 = vector.load %arg27[%c0_151, %c0_152] : memref<32x128xf32, #tpu.memory_space<vmem>>, vector<16x32xf32>
    tpu.vector_store %arg27[%c0_151, %c0_152], %363 {strides = array<i32>} : memref<32x128xf32, #tpu.memory_space<vmem>>, vector<16x32xf32>,
    %365 = vector.extract_strided_slice %341 {offsets = [0, 32], sizes = [16, 32], strides = [1, 1]} : vector<32x128xbf16> to vector<16x32xbf16>
    %366 = vector.extract_strided_slice %343 {offsets = [0, 32], sizes = [16, 32], strides = [1, 1]} : vector<32x128xbf16> to vector<16x32xbf16>
    %367 = vector.extract_strided_slice %345 {offsets = [0, 32], sizes = [16, 32], strides = [1, 1]} : vector<32x128xbf16> to vector<16x32xbf16>
    %cst_153 = arith.constant dense<0.000000e+00> : vector<16x16xf32>
    %368 = tpu.matmul %365, %366, %cst_153 {dimension_numbers = #tpu.dot_dimension_numbers<[1], [1], [0], [0], [0, 0, 1, 0], [], []>} : vector<16x32xbf16>, vector<16x32xbf16>, vector<16x16xf32> -> vector<16x16xf32>
    %cst_154 = arith.constant 0.176776692 : f32
    %369 = vector.broadcast %cst_154 : f32 to vector<16x16xf32>
    %370 = arith.mulf %368, %369 : vector<16x16xf32>
    %cst_155 = arith.constant dense<0xFF800000> : vector<16xf32>
    %371 = vector.multi_reduction <maximumf>, %370, %cst_155 [1] : vector<16x16xf32> to vector<16xf32>
    %372 = vector.shape_cast %371 : vector<16xf32> to vector<16x1xf32>
    %373 = vector.broadcast %372 : vector<16x1xf32> to vector<16x16xf32>
    %374 = arith.subf %370, %373 : vector<16x16xf32>
    %375 = math.exp %374 : vector<16x16xf32>
    %cst_156 = arith.constant dense<0.000000e+00> : vector<16xf32>
    %376 = vector.multi_reduction <add>, %375, %cst_156 [1] : vector<16x16xf32> to vector<16xf32>
    %377 = vector.shape_cast %376 : vector<16xf32> to vector<16x1xf32>
    %378 = tpu.reciprocal %377 {approx = true} : vector<16x1xf32> -> vector<16x1xf32>
    %379 = vector.broadcast %378 : vector<16x1xf32> to vector<16x16xf32>
    %380 = arith.mulf %375, %379 : vector<16x16xf32>
    %381 = arith.truncf %380 : vector<16x16xf32> to vector<16x16xbf16>
    %cst_157 = arith.constant dense<0.000000e+00> : vector<16x32xf32>
    %382 = tpu.matmul %381, %367, %cst_157 {dimension_numbers = #tpu.dot_dimension_numbers<[1], [0], [0], [1], [0, 0, 1, 1], [], []>} : vector<16x16xbf16>, vector<16x32xbf16>, vector<16x32xf32> -> vector<16x32xf32>
    %c0_158 = arith.constant 0 : index
    %c32_159 = arith.constant 32 : index
    %383 = vector.load %arg27[%c0_158, %c32_159] : memref<32x128xf32, #tpu.memory_space<vmem>>, vector<16x32xf32>
    tpu.vector_store %arg27[%c0_158, %c32_159], %382 {strides = array<i32>} : memref<32x128xf32, #tpu.memory_space<vmem>>, vector<16x32xf32>,
    %384 = vector.extract_strided_slice %341 {offsets = [0, 64], sizes = [16, 32], strides = [1, 1]} : vector<32x128xbf16> to vector<16x32xbf16>
    %385 = vector.extract_strided_slice %343 {offsets = [0, 64], sizes = [16, 32], strides = [1, 1]} : vector<32x128xbf16> to vector<16x32xbf16>
    %386 = vector.extract_strided_slice %345 {offsets = [0, 64], sizes = [16, 32], strides = [1, 1]} : vector<32x128xbf16> to vector<16x32xbf16>
    %cst_160 = arith.constant dense<0.000000e+00> : vector<16x16xf32>
    %387 = tpu.matmul %384, %385, %cst_160 {dimension_numbers = #tpu.dot_dimension_numbers<[1], [1], [0], [0], [0, 0, 1, 0], [], []>} : vector<16x32xbf16>, vector<16x32xbf16>, vector<16x16xf32> -> vector<16x16xf32>
    %cst_161 = arith.constant 0.176776692 : f32
    %388 = vector.broadcast %cst_161 : f32 to vector<16x16xf32>
    %389 = arith.mulf %387, %388 : vector<16x16xf32>
    %cst_162 = arith.constant dense<0xFF800000> : vector<16xf32>
    %390 = vector.multi_reduction <maximumf>, %389, %cst_162 [1] : vector<16x16xf32> to vector<16xf32>
    %391 = vector.shape_cast %390 : vector<16xf32> to vector<16x1xf32>
    %392 = vector.broadcast %391 : vector<16x1xf32> to vector<16x16xf32>
    %393 = arith.subf %389, %392 : vector<16x16xf32>
    %394 = math.exp %393 : vector<16x16xf32>
    %cst_163 = arith.constant dense<0.000000e+00> : vector<16xf32>
    %395 = vector.multi_reduction <add>, %394, %cst_163 [1] : vector<16x16xf32> to vector<16xf32>
    %396 = vector.shape_cast %395 : vector<16xf32> to vector<16x1xf32>
    %397 = tpu.reciprocal %396 {approx = true} : vector<16x1xf32> -> vector<16x1xf32>
    %398 = vector.broadcast %397 : vector<16x1xf32> to vector<16x16xf32>
    %399 = arith.mulf %394, %398 : vector<16x16xf32>
    %400 = arith.truncf %399 : vector<16x16xf32> to vector<16x16xbf16>
    %cst_164 = arith.constant dense<0.000000e+00> : vector<16x32xf32>
    %401 = tpu.matmul %400, %386, %cst_164 {dimension_numbers = #tpu.dot_dimension_numbers<[1], [0], [0], [1], [0, 0, 1, 1], [], []>} : vector<16x16xbf16>, vector<16x32xbf16>, vector<16x32xf32> -> vector<16x32xf32>
    %c0_165 = arith.constant 0 : index
    %c64_166 = arith.constant 64 : index
    %402 = vector.load %arg27[%c0_165, %c64_166] : memref<32x128xf32, #tpu.memory_space<vmem>>, vector<16x32xf32>
    tpu.vector_store %arg27[%c0_165, %c64_166], %401 {strides = array<i32>} : memref<32x128xf32, #tpu.memory_space<vmem>>, vector<16x32xf32>,
    %403 = vector.extract_strided_slice %341 {offsets = [0, 96], sizes = [16, 32], strides = [1, 1]} : vector<32x128xbf16> to vector<16x32xbf16>
    %404 = vector.extract_strided_slice %343 {offsets = [0, 96], sizes = [16, 32], strides = [1, 1]} : vector<32x128xbf16> to vector<16x32xbf16>
    %405 = vector.extract_strided_slice %345 {offsets = [0, 96], sizes = [16, 32], strides = [1, 1]} : vector<32x128xbf16> to vector<16x32xbf16>
    %cst_167 = arith.constant dense<0.000000e+00> : vector<16x16xf32>
    %406 = tpu.matmul %403, %404, %cst_167 {dimension_numbers = #tpu.dot_dimension_numbers<[1], [1], [0], [0], [0, 0, 1, 0], [], []>} : vector<16x32xbf16>, vector<16x32xbf16>, vector<16x16xf32> -> vector<16x16xf32>
    %cst_168 = arith.constant 0.176776692 : f32
    %407 = vector.broadcast %cst_168 : f32 to vector<16x16xf32>
    %408 = arith.mulf %406, %407 : vector<16x16xf32>
    %cst_169 = arith.constant dense<0xFF800000> : vector<16xf32>
    %409 = vector.multi_reduction <maximumf>, %408, %cst_169 [1] : vector<16x16xf32> to vector<16xf32>
    %410 = vector.shape_cast %409 : vector<16xf32> to vector<16x1xf32>
    %411 = vector.broadcast %410 : vector<16x1xf32> to vector<16x16xf32>
    %412 = arith.subf %408, %411 : vector<16x16xf32>
    %413 = math.exp %412 : vector<16x16xf32>
    %cst_170 = arith.constant dense<0.000000e+00> : vector<16xf32>
    %414 = vector.multi_reduction <add>, %413, %cst_170 [1] : vector<16x16xf32> to vector<16xf32>
    %415 = vector.shape_cast %414 : vector<16xf32> to vector<16x1xf32>
    %416 = tpu.reciprocal %415 {approx = true} : vector<16x1xf32> -> vector<16x1xf32>
    %417 = vector.broadcast %416 : vector<16x1xf32> to vector<16x16xf32>
    %418 = arith.mulf %413, %417 : vector<16x16xf32>
    %419 = arith.truncf %418 : vector<16x16xf32> to vector<16x16xbf16>
    %cst_171 = arith.constant dense<0.000000e+00> : vector<16x32xf32>
    %420 = tpu.matmul %419, %405, %cst_171 {dimension_numbers = #tpu.dot_dimension_numbers<[1], [0], [0], [1], [0, 0, 1, 1], [], []>} : vector<16x16xbf16>, vector<16x32xbf16>, vector<16x32xf32> -> vector<16x32xf32>
    %c0_172 = arith.constant 0 : index
    %c96_173 = arith.constant 96 : index
    %421 = vector.load %arg27[%c0_172, %c96_173] : memref<32x128xf32, #tpu.memory_space<vmem>>, vector<16x32xf32>
    tpu.vector_store %arg27[%c0_172, %c96_173], %420 {strides = array<i32>} : memref<32x128xf32, #tpu.memory_space<vmem>>, vector<16x32xf32>,
    %422 = vector.extract_strided_slice %341 {offsets = [16, 0], sizes = [16, 32], strides = [1, 1]} : vector<32x128xbf16> to vector<16x32xbf16>
    %423 = vector.extract_strided_slice %343 {offsets = [16, 0], sizes = [16, 32], strides = [1, 1]} : vector<32x128xbf16> to vector<16x32xbf16>
    %424 = vector.extract_strided_slice %345 {offsets = [16, 0], sizes = [16, 32], strides = [1, 1]} : vector<32x128xbf16> to vector<16x32xbf16>
    %cst_174 = arith.constant dense<0.000000e+00> : vector<16x16xf32>
    %425 = tpu.matmul %422, %423, %cst_174 {dimension_numbers = #tpu.dot_dimension_numbers<[1], [1], [0], [0], [0, 0, 1, 0], [], []>} : vector<16x32xbf16>, vector<16x32xbf16>, vector<16x16xf32> -> vector<16x16xf32>
    %cst_175 = arith.constant 0.176776692 : f32
    %426 = vector.broadcast %cst_175 : f32 to vector<16x16xf32>
    %427 = arith.mulf %425, %426 : vector<16x16xf32>
    %cst_176 = arith.constant dense<0xFF800000> : vector<16xf32>
    %428 = vector.multi_reduction <maximumf>, %427, %cst_176 [1] : vector<16x16xf32> to vector<16xf32>
    %429 = vector.shape_cast %428 : vector<16xf32> to vector<16x1xf32>
    %430 = vector.broadcast %429 : vector<16x1xf32> to vector<16x16xf32>
    %431 = arith.subf %427, %430 : vector<16x16xf32>
    %432 = math.exp %431 : vector<16x16xf32>
    %cst_177 = arith.constant dense<0.000000e+00> : vector<16xf32>
    %433 = vector.multi_reduction <add>, %432, %cst_177 [1] : vector<16x16xf32> to vector<16xf32>
    %434 = vector.shape_cast %433 : vector<16xf32> to vector<16x1xf32>
    %435 = tpu.reciprocal %434 {approx = true} : vector<16x1xf32> -> vector<16x1xf32>
    %436 = vector.broadcast %435 : vector<16x1xf32> to vector<16x16xf32>
    %437 = arith.mulf %432, %436 : vector<16x16xf32>
    %438 = arith.truncf %437 : vector<16x16xf32> to vector<16x16xbf16>
    %cst_178 = arith.constant dense<0.000000e+00> : vector<16x32xf32>
    %439 = tpu.matmul %438, %424, %cst_178 {dimension_numbers = #tpu.dot_dimension_numbers<[1], [0], [0], [1], [0, 0, 1, 1], [], []>} : vector<16x16xbf16>, vector<16x32xbf16>, vector<16x32xf32> -> vector<16x32xf32>
    %c16_179 = arith.constant 16 : index
    %c0_180 = arith.constant 0 : index
    %440 = vector.load %arg27[%c16_179, %c0_180] : memref<32x128xf32, #tpu.memory_space<vmem>>, vector<16x32xf32>
    tpu.vector_store %arg27[%c16_179, %c0_180], %439 {strides = array<i32>} : memref<32x128xf32, #tpu.memory_space<vmem>>, vector<16x32xf32>,
    %441 = vector.extract_strided_slice %341 {offsets = [16, 32], sizes = [16, 32], strides = [1, 1]} : vector<32x128xbf16> to vector<16x32xbf16>
    %442 = vector.extract_strided_slice %343 {offsets = [16, 32], sizes = [16, 32], strides = [1, 1]} : vector<32x128xbf16> to vector<16x32xbf16>
    %443 = vector.extract_strided_slice %345 {offsets = [16, 32], sizes = [16, 32], strides = [1, 1]} : vector<32x128xbf16> to vector<16x32xbf16>
    %cst_181 = arith.constant dense<0.000000e+00> : vector<16x16xf32>
    %444 = tpu.matmul %441, %442, %cst_181 {dimension_numbers = #tpu.dot_dimension_numbers<[1], [1], [0], [0], [0, 0, 1, 0], [], []>} : vector<16x32xbf16>, vector<16x32xbf16>, vector<16x16xf32> -> vector<16x16xf32>
    %cst_182 = arith.constant 0.176776692 : f32
    %445 = vector.broadcast %cst_182 : f32 to vector<16x16xf32>
    %446 = arith.mulf %444, %445 : vector<16x16xf32>
    %cst_183 = arith.constant dense<0xFF800000> : vector<16xf32>
    %447 = vector.multi_reduction <maximumf>, %446, %cst_183 [1] : vector<16x16xf32> to vector<16xf32>
    %448 = vector.shape_cast %447 : vector<16xf32> to vector<16x1xf32>
    %449 = vector.broadcast %448 : vector<16x1xf32> to vector<16x16xf32>
    %450 = arith.subf %446, %449 : vector<16x16xf32>
    %451 = math.exp %450 : vector<16x16xf32>
    %cst_184 = arith.constant dense<0.000000e+00> : vector<16xf32>
    %452 = vector.multi_reduction <add>, %451, %cst_184 [1] : vector<16x16xf32> to vector<16xf32>
    %453 = vector.shape_cast %452 : vector<16xf32> to vector<16x1xf32>
    %454 = tpu.reciprocal %453 {approx = true} : vector<16x1xf32> -> vector<16x1xf32>
    %455 = vector.broadcast %454 : vector<16x1xf32> to vector<16x16xf32>
    %456 = arith.mulf %451, %455 : vector<16x16xf32>
    %457 = arith.truncf %456 : vector<16x16xf32> to vector<16x16xbf16>
    %cst_185 = arith.constant dense<0.000000e+00> : vector<16x32xf32>
    %458 = tpu.matmul %457, %443, %cst_185 {dimension_numbers = #tpu.dot_dimension_numbers<[1], [0], [0], [1], [0, 0, 1, 1], [], []>} : vector<16x16xbf16>, vector<16x32xbf16>, vector<16x32xf32> -> vector<16x32xf32>
    %c16_186 = arith.constant 16 : index
    %c32_187 = arith.constant 32 : index
    %459 = vector.load %arg27[%c16_186, %c32_187] : memref<32x128xf32, #tpu.memory_space<vmem>>, vector<16x32xf32>
    tpu.vector_store %arg27[%c16_186, %c32_187], %458 {strides = array<i32>} : memref<32x128xf32, #tpu.memory_space<vmem>>, vector<16x32xf32>,
    %460 = vector.extract_strided_slice %341 {offsets = [16, 64], sizes = [16, 32], strides = [1, 1]} : vector<32x128xbf16> to vector<16x32xbf16>
    %461 = vector.extract_strided_slice %343 {offsets = [16, 64], sizes = [16, 32], strides = [1, 1]} : vector<32x128xbf16> to vector<16x32xbf16>
    %462 = vector.extract_strided_slice %345 {offsets = [16, 64], sizes = [16, 32], strides = [1, 1]} : vector<32x128xbf16> to vector<16x32xbf16>
    %cst_188 = arith.constant dense<0.000000e+00> : vector<16x16xf32>
    %463 = tpu.matmul %460, %461, %cst_188 {dimension_numbers = #tpu.dot_dimension_numbers<[1], [1], [0], [0], [0, 0, 1, 0], [], []>} : vector<16x32xbf16>, vector<16x32xbf16>, vector<16x16xf32> -> vector<16x16xf32>
    %cst_189 = arith.constant 0.176776692 : f32
    %464 = vector.broadcast %cst_189 : f32 to vector<16x16xf32>
    %465 = arith.mulf %463, %464 : vector<16x16xf32>
    %cst_190 = arith.constant dense<0xFF800000> : vector<16xf32>
    %466 = vector.multi_reduction <maximumf>, %465, %cst_190 [1] : vector<16x16xf32> to vector<16xf32>
    %467 = vector.shape_cast %466 : vector<16xf32> to vector<16x1xf32>
    %468 = vector.broadcast %467 : vector<16x1xf32> to vector<16x16xf32>
    %469 = arith.subf %465, %468 : vector<16x16xf32>
    %470 = math.exp %469 : vector<16x16xf32>
    %cst_191 = arith.constant dense<0.000000e+00> : vector<16xf32>
    %471 = vector.multi_reduction <add>, %470, %cst_191 [1] : vector<16x16xf32> to vector<16xf32>
    %472 = vector.shape_cast %471 : vector<16xf32> to vector<16x1xf32>
    %473 = tpu.reciprocal %472 {approx = true} : vector<16x1xf32> -> vector<16x1xf32>
    %474 = vector.broadcast %473 : vector<16x1xf32> to vector<16x16xf32>
    %475 = arith.mulf %470, %474 : vector<16x16xf32>
    %476 = arith.truncf %475 : vector<16x16xf32> to vector<16x16xbf16>
    %cst_192 = arith.constant dense<0.000000e+00> : vector<16x32xf32>
    %477 = tpu.matmul %476, %462, %cst_192 {dimension_numbers = #tpu.dot_dimension_numbers<[1], [0], [0], [1], [0, 0, 1, 1], [], []>} : vector<16x16xbf16>, vector<16x32xbf16>, vector<16x32xf32> -> vector<16x32xf32>
    %c16_193 = arith.constant 16 : index
    %c64_194 = arith.constant 64 : index
    %478 = vector.load %arg27[%c16_193, %c64_194] : memref<32x128xf32, #tpu.memory_space<vmem>>, vector<16x32xf32>
    tpu.vector_store %arg27[%c16_193, %c64_194], %477 {strides = array<i32>} : memref<32x128xf32, #tpu.memory_space<vmem>>, vector<16x32xf32>,
    %479 = vector.extract_strided_slice %341 {offsets = [16, 96], sizes = [16, 32], strides = [1, 1]} : vector<32x128xbf16> to vector<16x32xbf16>
    %480 = vector.extract_strided_slice %343 {offsets = [16, 96], sizes = [16, 32], strides = [1, 1]} : vector<32x128xbf16> to vector<16x32xbf16>
    %481 = vector.extract_strided_slice %345 {offsets = [16, 96], sizes = [16, 32], strides = [1, 1]} : vector<32x128xbf16> to vector<16x32xbf16>
    %cst_195 = arith.constant dense<0.000000e+00> : vector<16x16xf32>
    %482 = tpu.matmul %479, %480, %cst_195 {dimension_numbers = #tpu.dot_dimension_numbers<[1], [1], [0], [0], [0, 0, 1, 0], [], []>} : vector<16x32xbf16>, vector<16x32xbf16>, vector<16x16xf32> -> vector<16x16xf32>
    %cst_196 = arith.constant 0.176776692 : f32
    %483 = vector.broadcast %cst_196 : f32 to vector<16x16xf32>
    %484 = arith.mulf %482, %483 : vector<16x16xf32>
    %cst_197 = arith.constant dense<0xFF800000> : vector<16xf32>
    %485 = vector.multi_reduction <maximumf>, %484, %cst_197 [1] : vector<16x16xf32> to vector<16xf32>
    %486 = vector.shape_cast %485 : vector<16xf32> to vector<16x1xf32>
    %487 = vector.broadcast %486 : vector<16x1xf32> to vector<16x16xf32>
    %488 = arith.subf %484, %487 : vector<16x16xf32>
    %489 = math.exp %488 : vector<16x16xf32>
    %cst_198 = arith.constant dense<0.000000e+00> : vector<16xf32>
    %490 = vector.multi_reduction <add>, %489, %cst_198 [1] : vector<16x16xf32> to vector<16xf32>
    %491 = vector.shape_cast %490 : vector<16xf32> to vector<16x1xf32>
    %492 = tpu.reciprocal %491 {approx = true} : vector<16x1xf32> -> vector<16x1xf32>
    %493 = vector.broadcast %492 : vector<16x1xf32> to vector<16x16xf32>
    %494 = arith.mulf %489, %493 : vector<16x16xf32>
    %495 = arith.truncf %494 : vector<16x16xf32> to vector<16x16xbf16>
    %cst_199 = arith.constant dense<0.000000e+00> : vector<16x32xf32>
    %496 = tpu.matmul %495, %481, %cst_199 {dimension_numbers = #tpu.dot_dimension_numbers<[1], [0], [0], [1], [0, 0, 1, 1], [], []>} : vector<16x16xbf16>, vector<16x32xbf16>, vector<16x32xf32> -> vector<16x32xf32>
    %c16_200 = arith.constant 16 : index
    %c96_201 = arith.constant 96 : index
    %497 = vector.load %arg27[%c16_200, %c96_201] : memref<32x128xf32, #tpu.memory_space<vmem>>, vector<16x32xf32>
    tpu.vector_store %arg27[%c16_200, %c96_201], %496 {strides = array<i32>} : memref<32x128xf32, #tpu.memory_space<vmem>>, vector<16x32xf32>,
    %c0_202 = arith.constant 0 : index
    %c0_203 = arith.constant 0 : index
    %498 = vector.load %arg27[%c0_202, %c0_203] : memref<32x128xf32, #tpu.memory_space<vmem>>, vector<32x128xf32>
    %499 = arith.truncf %498 : vector<32x128xf32> to vector<32x128xbf16>
    %c1_204 = arith.constant 1 : index
    %c0_205 = arith.constant 0 : index
    %c0_206 = arith.constant 0 : index
    %500 = vector.load %arg14[%c1_204, %c0_205, %c0_206] : memref<2x128x128xbf16, #tpu.memory_space<vmem>>, vector<1x128x128xbf16>
    %501 = vector.shape_cast %500 : vector<1x128x128xbf16> to vector<128x128xbf16>
    %cst_207 = arith.constant dense<0.000000e+00> : vector<32x128xf32>
    %502 = tpu.matmul %499, %501, %cst_207 {dimension_numbers = #tpu.dot_dimension_numbers<[1], [0], [0], [1], [0, 0, 1, 1], [], []>} : vector<32x128xbf16>, vector<128x128xbf16>, vector<32x128xf32> -> vector<32x128xf32>
    %c1_208 = arith.constant 1 : index
    %c0_209 = arith.constant 0 : index
    %c0_210 = arith.constant 0 : index
    %503 = vector.load %arg15[%c1_208, %c0_209, %c0_210] : memref<2x1x128xf32, #tpu.memory_space<vmem>>, vector<1x1x128xf32>
    %504 = vector.shape_cast %503 : vector<1x1x128xf32> to vector<1x128xf32>
    %505 = vector.broadcast %504 : vector<1x128xf32> to vector<32x128xf32>
    %506 = arith.addf %502, %505 : vector<32x128xf32>
    %507 = arith.addf %331, %506 : vector<32x128xf32>
    %c1_211 = arith.constant 1 : index
    %c0_212 = arith.constant 0 : index
    %c0_213 = arith.constant 0 : index
    %508 = vector.load %arg16[%c1_211, %c0_212, %c0_213] : memref<2x1x128xf32, #tpu.memory_space<vmem>>, vector<1x1x128xf32>
    %509 = vector.shape_cast %508 : vector<1x1x128xf32> to vector<1x128xf32>
    %c1_214 = arith.constant 1 : index
    %c0_215 = arith.constant 0 : index
    %c0_216 = arith.constant 0 : index
    %510 = vector.load %arg17[%c1_214, %c0_215, %c0_216] : memref<2x1x128xf32, #tpu.memory_space<vmem>>, vector<1x1x128xf32>
    %511 = vector.shape_cast %510 : vector<1x1x128xf32> to vector<1x128xf32>
    %cst_217 = arith.constant dense<0.000000e+00> : vector<32xf32>
    %512 = vector.multi_reduction <add>, %507, %cst_217 [1] : vector<32x128xf32> to vector<32xf32>
    %513 = vector.shape_cast %512 : vector<32xf32> to vector<32x1xf32>
    %cst_218 = arith.constant 1.280000e+02 : f32
    %514 = vector.broadcast %cst_218 : f32 to vector<32x1xf32>
    %515 = arith.divf %513, %514 : vector<32x1xf32>
    %516 = vector.broadcast %515 : vector<32x1xf32> to vector<32x128xf32>
    %517 = arith.subf %507, %516 : vector<32x128xf32>
    %518 = arith.mulf %517, %517 : vector<32x128xf32>
    %cst_219 = arith.constant dense<0.000000e+00> : vector<32xf32>
    %519 = vector.multi_reduction <add>, %518, %cst_219 [1] : vector<32x128xf32> to vector<32xf32>
    %520 = vector.shape_cast %519 : vector<32xf32> to vector<32x1xf32>
    %cst_220 = arith.constant 1.280000e+02 : f32
    %521 = vector.broadcast %cst_220 : f32 to vector<32x1xf32>
    %522 = arith.divf %520, %521 : vector<32x1xf32>
    %523 = vector.broadcast %515 : vector<32x1xf32> to vector<32x128xf32>
    %524 = arith.subf %507, %523 : vector<32x128xf32>
    %cst_221 = arith.constant 9.99999974E-6 : f32
    %525 = vector.broadcast %cst_221 : f32 to vector<32x1xf32>
    %526 = arith.addf %522, %525 : vector<32x1xf32>
    %527 = math.rsqrt %526 : vector<32x1xf32>
    %528 = vector.broadcast %527 : vector<32x1xf32> to vector<32x128xf32>
    %529 = arith.mulf %524, %528 : vector<32x128xf32>
    %530 = vector.broadcast %509 : vector<1x128xf32> to vector<32x128xf32>
    %531 = arith.mulf %529, %530 : vector<32x128xf32>
    %532 = vector.broadcast %511 : vector<1x128xf32> to vector<32x128xf32>
    %533 = arith.addf %531, %532 : vector<32x128xf32>
    %534 = arith.truncf %533 : vector<32x128xf32> to vector<32x128xbf16>
    %c1_222 = arith.constant 1 : index
    %c0_223 = arith.constant 0 : index
    %c0_224 = arith.constant 0 : index
    %535 = vector.load %arg18[%c1_222, %c0_223, %c0_224] : memref<2x128x256xbf16, #tpu.memory_space<vmem>>, vector<1x128x256xbf16>
    %536 = vector.shape_cast %535 : vector<1x128x256xbf16> to vector<128x256xbf16>
    %cst_225 = arith.constant dense<0.000000e+00> : vector<32x256xf32>
    %537 = tpu.matmul %534, %536, %cst_225 {dimension_numbers = #tpu.dot_dimension_numbers<[1], [0], [0], [1], [0, 0, 1, 1], [], []>} : vector<32x128xbf16>, vector<128x256xbf16>, vector<32x256xf32> -> vector<32x256xf32>
    %c1_226 = arith.constant 1 : index
    %c0_227 = arith.constant 0 : index
    %c0_228 = arith.constant 0 : index
    %538 = vector.load %arg19[%c1_226, %c0_227, %c0_228] : memref<2x1x256xf32, #tpu.memory_space<vmem>>, vector<1x1x256xf32>
    %539 = vector.shape_cast %538 : vector<1x1x256xf32> to vector<1x256xf32>
    %540 = vector.broadcast %539 : vector<1x256xf32> to vector<32x256xf32>
    %541 = arith.addf %537, %540 : vector<32x256xf32>
    %542 = arith.mulf %541, %541 : vector<32x256xf32>
    %543 = arith.mulf %541, %542 : vector<32x256xf32>
    %cst_229 = arith.constant 4.471500e-02 : f32
    %544 = vector.broadcast %cst_229 : f32 to vector<32x256xf32>
    %545 = arith.mulf %544, %543 : vector<32x256xf32>
    %546 = arith.addf %541, %545 : vector<32x256xf32>
    %cst_230 = arith.constant 0.797884583 : f32
    %547 = vector.broadcast %cst_230 : f32 to vector<32x256xf32>
    %548 = arith.mulf %547, %546 : vector<32x256xf32>
    %549 = math.tanh %548 : vector<32x256xf32>
    %cst_231 = arith.constant 1.000000e+00 : f32
    %550 = vector.broadcast %cst_231 : f32 to vector<32x256xf32>
    %551 = arith.addf %550, %549 : vector<32x256xf32>
    %cst_232 = arith.constant 5.000000e-01 : f32
    %552 = vector.broadcast %cst_232 : f32 to vector<32x256xf32>
    %553 = arith.mulf %552, %551 : vector<32x256xf32>
    %554 = arith.mulf %541, %553 : vector<32x256xf32>
    %555 = arith.truncf %554 : vector<32x256xf32> to vector<32x256xbf16>
    %c1_233 = arith.constant 1 : index
    %c0_234 = arith.constant 0 : index
    %c0_235 = arith.constant 0 : index
    %556 = vector.load %arg20[%c1_233, %c0_234, %c0_235] : memref<2x256x128xbf16, #tpu.memory_space<vmem>>, vector<1x256x128xbf16>
    %557 = vector.shape_cast %556 : vector<1x256x128xbf16> to vector<256x128xbf16>
    %cst_236 = arith.constant dense<0.000000e+00> : vector<32x128xf32>
    %558 = tpu.matmul %555, %557, %cst_236 {dimension_numbers = #tpu.dot_dimension_numbers<[1], [0], [0], [1], [0, 0, 1, 1], [], []>} : vector<32x256xbf16>, vector<256x128xbf16>, vector<32x128xf32> -> vector<32x128xf32>
    %c1_237 = arith.constant 1 : index
    %c0_238 = arith.constant 0 : index
    %c0_239 = arith.constant 0 : index
    %559 = vector.load %arg21[%c1_237, %c0_238, %c0_239] : memref<2x1x128xf32, #tpu.memory_space<vmem>>, vector<1x1x128xf32>
    %560 = vector.shape_cast %559 : vector<1x1x128xf32> to vector<1x128xf32>
    %561 = vector.broadcast %560 : vector<1x128xf32> to vector<32x128xf32>
    %562 = arith.addf %558, %561 : vector<32x128xf32>
    %563 = arith.addf %533, %562 : vector<32x128xf32>
    %c1_240 = arith.constant 1 : index
    %c0_241 = arith.constant 0 : index
    %c0_242 = arith.constant 0 : index
    %564 = vector.load %arg22[%c1_240, %c0_241, %c0_242] : memref<2x1x128xf32, #tpu.memory_space<vmem>>, vector<1x1x128xf32>
    %565 = vector.shape_cast %564 : vector<1x1x128xf32> to vector<1x128xf32>
    %c1_243 = arith.constant 1 : index
    %c0_244 = arith.constant 0 : index
    %c0_245 = arith.constant 0 : index
    %566 = vector.load %arg23[%c1_243, %c0_244, %c0_245] : memref<2x1x128xf32, #tpu.memory_space<vmem>>, vector<1x1x128xf32>
    %567 = vector.shape_cast %566 : vector<1x1x128xf32> to vector<1x128xf32>
    %cst_246 = arith.constant dense<0.000000e+00> : vector<32xf32>
    %568 = vector.multi_reduction <add>, %563, %cst_246 [1] : vector<32x128xf32> to vector<32xf32>
    %569 = vector.shape_cast %568 : vector<32xf32> to vector<32x1xf32>
    %cst_247 = arith.constant 1.280000e+02 : f32
    %570 = vector.broadcast %cst_247 : f32 to vector<32x1xf32>
    %571 = arith.divf %569, %570 : vector<32x1xf32>
    %572 = vector.broadcast %571 : vector<32x1xf32> to vector<32x128xf32>
    %573 = arith.subf %563, %572 : vector<32x128xf32>
    %574 = arith.mulf %573, %573 : vector<32x128xf32>
    %cst_248 = arith.constant dense<0.000000e+00> : vector<32xf32>
    %575 = vector.multi_reduction <add>, %574, %cst_248 [1] : vector<32x128xf32> to vector<32xf32>
    %576 = vector.shape_cast %575 : vector<32xf32> to vector<32x1xf32>
    %cst_249 = arith.constant 1.280000e+02 : f32
    %577 = vector.broadcast %cst_249 : f32 to vector<32x1xf32>
    %578 = arith.divf %576, %577 : vector<32x1xf32>
    %579 = vector.broadcast %571 : vector<32x1xf32> to vector<32x128xf32>
    %580 = arith.subf %563, %579 : vector<32x128xf32>
    %cst_250 = arith.constant 9.99999974E-6 : f32
    %581 = vector.broadcast %cst_250 : f32 to vector<32x1xf32>
    %582 = arith.addf %578, %581 : vector<32x1xf32>
    %583 = math.rsqrt %582 : vector<32x1xf32>
    %584 = vector.broadcast %583 : vector<32x1xf32> to vector<32x128xf32>
    %585 = arith.mulf %580, %584 : vector<32x128xf32>
    %586 = vector.broadcast %565 : vector<1x128xf32> to vector<32x128xf32>
    %587 = arith.mulf %585, %586 : vector<32x128xf32>
    %588 = vector.broadcast %567 : vector<1x128xf32> to vector<32x128xf32>
    %589 = arith.addf %587, %588 : vector<32x128xf32>
    %c0_251 = arith.constant 0 : index
    %c0_252 = arith.constant 0 : index
    %590 = vector.load %arg24[%c0_251, %c0_252] : memref<32x128xf32, #tpu.memory_space<vmem>>, vector<32x128xf32>
    tpu.vector_store %arg24[%c0_251, %c0_252], %589 {strides = array<i32>} : memref<32x128xf32, #tpu.memory_space<vmem>>, vector<32x128xf32>,
    %cst_253 = arith.constant 0.000000e+00 : f32
    %591 = vector.broadcast %cst_253 : f32 to vector<1x1xf32>
    %592 = vector.extract_strided_slice %589 {offsets = [0, 0], sizes = [16, 128], strides = [1, 1]} : vector<32x128xf32> to vector<16x128xf32>
    %c0_254 = arith.constant 0 : index
    %c0_255 = arith.constant 0 : index
    %c0_256 = arith.constant 0 : index
    %593 = vector.load %arg3[%c0_254, %c0_255, %c0_256] : memref<2x8x16xbf16, #tpu.memory_space<vmem>>, vector<1x8x16xbf16>
    %594 = vector.shape_cast %593 : vector<1x8x16xbf16> to vector<8x16xbf16>
    %c0_257 = arith.constant 0 : index
    %c0_258 = arith.constant 0 : index
    %c0_259 = arith.constant 0 : index
    %595 = vector.load %arg2[%c0_257, %c0_258, %c0_259] : memref<2x16x8xbf16, #tpu.memory_space<vmem>>, vector<1x16x8xbf16>
    %596 = vector.shape_cast %595 : vector<1x16x8xbf16> to vector<16x8xbf16>
    %597 = arith.truncf %592 : vector<16x128xf32> to vector<16x128xbf16>
    %cst_260 = arith.constant dense<0.000000e+00> : vector<8x128xf32>
    %598 = tpu.matmul %594, %597, %cst_260 {dimension_numbers = #tpu.dot_dimension_numbers<[1], [0], [0], [1], [0, 0, 1, 1], [], []>} : vector<8x16xbf16>, vector<16x128xbf16>, vector<8x128xf32> -> vector<8x128xf32>
    %599 = arith.extf %594 : vector<8x16xbf16> to vector<8x16xf32>
    %cst_261 = arith.constant dense<0.000000e+00> : vector<8xf32>
    %600 = vector.multi_reduction <add>, %599, %cst_261 [1] : vector<8x16xf32> to vector<8xf32>
    %601 = vector.shape_cast %600 : vector<8xf32> to vector<8x1xf32>
    %cst_262 = arith.constant 1.000000e+00 : f32
    %602 = vector.broadcast %cst_262 : f32 to vector<8x1xf32>
    %603 = arith.maximumf %601, %602 : vector<8x1xf32>
    %604 = vector.broadcast %603 : vector<8x1xf32> to vector<8x128xf32>
    %605 = arith.divf %598, %604 : vector<8x128xf32>
    %606 = arith.truncf %605 : vector<8x128xf32> to vector<8x128xbf16>
    %cst_263 = arith.constant dense<0.000000e+00> : vector<16x128xf32>
    %607 = tpu.matmul %596, %606, %cst_263 {dimension_numbers = #tpu.dot_dimension_numbers<[1], [0], [0], [1], [0, 0, 1, 1], [], []>} : vector<16x8xbf16>, vector<8x128xbf16>, vector<16x128xf32> -> vector<16x128xf32>
    %c0_264 = arith.constant 0 : index
    %c0_265 = arith.constant 0 : index
    %608 = vector.load %arg25[%c0_264, %c0_265] : memref<32x128xf32, #tpu.memory_space<vmem>>, vector<16x128xf32>
    tpu.vector_store %arg25[%c0_264, %c0_265], %607 {strides = array<i32>} : memref<32x128xf32, #tpu.memory_space<vmem>>, vector<16x128xf32>,
    %609 = arith.subf %592, %607 : vector<16x128xf32>
    %610 = arith.mulf %609, %609 : vector<16x128xf32>
    %611 = vector.shape_cast %610 : vector<16x128xf32> to vector<1x16x128xf32>
    %cst_266 = arith.constant dense<0.000000e+00> : vector<1xf32>
    %612 = vector.multi_reduction <add>, %611, %cst_266 [1, 2] : vector<1x16x128xf32> to vector<1xf32>
    %613 = vector.shape_cast %612 : vector<1xf32> to vector<1x1x1xf32>
    %614 = vector.extract %613[0, 0, 0] : f32 from vector<1x1x1xf32>
    %615 = vector.broadcast %614 : f32 to vector<1x1xf32>
    %616 = arith.addf %591, %615 : vector<1x1xf32>
    %617 = vector.extract_strided_slice %589 {offsets = [16, 0], sizes = [16, 128], strides = [1, 1]} : vector<32x128xf32> to vector<16x128xf32>
    %c1_267 = arith.constant 1 : index
    %c0_268 = arith.constant 0 : index
    %c0_269 = arith.constant 0 : index
    %618 = vector.load %arg3[%c1_267, %c0_268, %c0_269] : memref<2x8x16xbf16, #tpu.memory_space<vmem>>, vector<1x8x16xbf16>
    %619 = vector.shape_cast %618 : vector<1x8x16xbf16> to vector<8x16xbf16>
    %c1_270 = arith.constant 1 : index
    %c0_271 = arith.constant 0 : index
    %c0_272 = arith.constant 0 : index
    %620 = vector.load %arg2[%c1_270, %c0_271, %c0_272] : memref<2x16x8xbf16, #tpu.memory_space<vmem>>, vector<1x16x8xbf16>
    %621 = vector.shape_cast %620 : vector<1x16x8xbf16> to vector<16x8xbf16>
    %622 = arith.truncf %617 : vector<16x128xf32> to vector<16x128xbf16>
    %cst_273 = arith.constant dense<0.000000e+00> : vector<8x128xf32>
    %623 = tpu.matmul %619, %622, %cst_273 {dimension_numbers = #tpu.dot_dimension_numbers<[1], [0], [0], [1], [0, 0, 1, 1], [], []>} : vector<8x16xbf16>, vector<16x128xbf16>, vector<8x128xf32> -> vector<8x128xf32>
    %624 = arith.extf %619 : vector<8x16xbf16> to vector<8x16xf32>
    %cst_274 = arith.constant dense<0.000000e+00> : vector<8xf32>
    %625 = vector.multi_reduction <add>, %624, %cst_274 [1] : vector<8x16xf32> to vector<8xf32>
    %626 = vector.shape_cast %625 : vector<8xf32> to vector<8x1xf32>
    %cst_275 = arith.constant 1.000000e+00 : f32
    %627 = vector.broadcast %cst_275 : f32 to vector<8x1xf32>
    %628 = arith.maximumf %626, %627 : vector<8x1xf32>
    %629 = vector.broadcast %628 : vector<8x1xf32> to vector<8x128xf32>
    %630 = arith.divf %623, %629 : vector<8x128xf32>
    %631 = arith.truncf %630 : vector<8x128xf32> to vector<8x128xbf16>
    %cst_276 = arith.constant dense<0.000000e+00> : vector<16x128xf32>
    %632 = tpu.matmul %621, %631, %cst_276 {dimension_numbers = #tpu.dot_dimension_numbers<[1], [0], [0], [1], [0, 0, 1, 1], [], []>} : vector<16x8xbf16>, vector<8x128xbf16>, vector<16x128xf32> -> vector<16x128xf32>
    %c16_277 = arith.constant 16 : index
    %c0_278 = arith.constant 0 : index
    %633 = vector.load %arg25[%c16_277, %c0_278] : memref<32x128xf32, #tpu.memory_space<vmem>>, vector<16x128xf32>
    tpu.vector_store %arg25[%c16_277, %c0_278], %632 {strides = array<i32>} : memref<32x128xf32, #tpu.memory_space<vmem>>, vector<16x128xf32>,
    %634 = arith.subf %617, %632 : vector<16x128xf32>
    %635 = arith.mulf %634, %634 : vector<16x128xf32>
    %636 = vector.shape_cast %635 : vector<16x128xf32> to vector<1x16x128xf32>
    %cst_279 = arith.constant dense<0.000000e+00> : vector<1xf32>
    %637 = vector.multi_reduction <add>, %636, %cst_279 [1, 2] : vector<1x16x128xf32> to vector<1xf32>
    %638 = vector.shape_cast %637 : vector<1xf32> to vector<1x1x1xf32>
    %639 = vector.extract %638[0, 0, 0] : f32 from vector<1x1x1xf32>
    %640 = vector.broadcast %639 : f32 to vector<1x1xf32>
    %641 = arith.addf %616, %640 : vector<1x1xf32>
    %cst_280 = arith.constant 3.125000e-02 : f32
    %642 = vector.broadcast %cst_280 : f32 to vector<1x1xf32>
    %643 = arith.mulf %641, %642 : vector<1x1xf32>
    %c0_281 = arith.constant 0 : index
    %c0_282 = arith.constant 0 : index
    %644 = vector.load %arg26[%c0_281, %c0_282] : memref<1x1xf32, #tpu.memory_space<vmem>>, vector<1x1xf32>
    tpu.vector_store %arg26[%c0_281, %c0_282], %643 {strides = array<i32>} : memref<1x1xf32, #tpu.memory_space<vmem>>, vector<1x1xf32>,
    return
  }
  func.func @transform_0(%arg0: i32) -> (i32, i32) {
    %c0_i32 = arith.constant 0 : i32
    %c0_i32_0 = arith.constant 0 : i32
    %c0_i32_1 = arith.constant 0 : i32
    return %c0_i32, %c0_i32_0 : i32, i32
  }
  func.func @transform_1(%arg0: i32) -> (i32, i32, i32) {
    %c0_i32 = arith.constant 0 : i32
    %c0_i32_0 = arith.constant 0 : i32
    %c0_i32_1 = arith.constant 0 : i32
    %c0_i32_2 = arith.constant 0 : i32
    return %c0_i32, %c0_i32_0, %c0_i32_1 : i32, i32, i32
  }
  func.func @transform_2(%arg0: i32) -> (i32, i32, i32) {
    %c0_i32 = arith.constant 0 : i32
    %c0_i32_0 = arith.constant 0 : i32
    %c0_i32_1 = arith.constant 0 : i32
    %c0_i32_2 = arith.constant 0 : i32
    return %c0_i32, %c0_i32_0, %c0_i32_1 : i32, i32, i32
  }
  func.func @transform_3(%arg0: i32) -> (i32, i32) {
    %c0_i32 = arith.constant 0 : i32
    %c0_i32_0 = arith.constant 0 : i32
    %c0_i32_1 = arith.constant 0 : i32
    return %c0_i32, %c0_i32_0 : i32, i32
  }
  func.func @transform_4(%arg0: i32) -> (i32, i32) {
    %c0_i32 = arith.constant 0 : i32
    %c0_i32_0 = arith.constant 0 : i32
    %c0_i32_1 = arith.constant 0 : i32
    return %c0_i32, %c0_i32_0 : i32, i32
  }
  func.func @transform_5(%arg0: i32) -> (i32, i32) {
    %c0_i32 = arith.constant 0 : i32
    %c0_i32_0 = arith.constant 0 : i32
    %c0_i32_1 = arith.constant 0 : i32
    return %c0_i32, %c0_i32_0 : i32, i32
  }
  func.func @transform_6(%arg0: i32) -> (i32, i32) {
    %c0_i32 = arith.constant 0 : i32
    %c0_i32_0 = arith.constant 0 : i32
    %c0_i32_1 = arith.constant 0 : i32
    return %c0_i32, %c0_i32_0 : i32, i32
  }
  func.func @transform_7(%arg0: i32) -> (i32, i32) {
    %c0_i32 = arith.constant 0 : i32
    %c0_i32_0 = arith.constant 0 : i32
    %c0_i32_1 = arith.constant 0 : i32
    return %c0_i32, %c0_i32_0 : i32, i32
  }
  func.func @transform_8(%arg0: i32) -> (i32, i32) {
    %c0_i32 = arith.constant 0 : i32
    %c0_i32_0 = arith.constant 0 : i32
    %c0_i32_1 = arith.constant 0 : i32
    return %c0_i32, %c0_i32_0 : i32, i32
  }
  func.func @transform_9(%arg0: i32) -> (i32, i32) {
    %c0_i32 = arith.constant 0 : i32
    %c0_i32_0 = arith.constant 0 : i32
    %c0_i32_1 = arith.constant 0 : i32
    return %c0_i32, %c0_i32_0 : i32, i32
  }
  func.func @transform_10(%arg0: i32) -> (i32, i32) {
    %c0_i32 = arith.constant 0 : i32
    %c0_i32_0 = arith.constant 0 : i32
    %c0_i32_1 = arith.constant 0 : i32
    return %c0_i32, %c0_i32_0 : i32, i32
  }
  func.func @transform_11(%arg0: i32) -> (i32, i32, i32) {
    %c0_i32 = arith.constant 0 : i32
    %c0_i32_0 = arith.constant 0 : i32
    %c0_i32_1 = arith.constant 0 : i32
    %c0_i32_2 = arith.constant 0 : i32
    return %c0_i32, %c0_i32_0, %c0_i32_1 : i32, i32, i32
  }
  func.func @transform_12(%arg0: i32) -> (i32, i32, i32) {
    %c0_i32 = arith.constant 0 : i32
    %c0_i32_0 = arith.constant 0 : i32
    %c0_i32_1 = arith.constant 0 : i32
    %c0_i32_2 = arith.constant 0 : i32
    return %c0_i32, %c0_i32_0, %c0_i32_1 : i32, i32, i32
  }
  func.func @transform_13(%arg0: i32) -> (i32, i32, i32) {
    %c0_i32 = arith.constant 0 : i32
    %c0_i32_0 = arith.constant 0 : i32
    %c0_i32_1 = arith.constant 0 : i32
    %c0_i32_2 = arith.constant 0 : i32
    return %c0_i32, %c0_i32_0, %c0_i32_1 : i32, i32, i32
  }
  func.func @transform_14(%arg0: i32) -> (i32, i32, i32) {
    %c0_i32 = arith.constant 0 : i32
    %c0_i32_0 = arith.constant 0 : i32
    %c0_i32_1 = arith.constant 0 : i32
    %c0_i32_2 = arith.constant 0 : i32
    return %c0_i32, %c0_i32_0, %c0_i32_1 : i32, i32, i32
  }
  func.func @transform_15(%arg0: i32) -> (i32, i32, i32) {
    %c0_i32 = arith.constant 0 : i32
    %c0_i32_0 = arith.constant 0 : i32
    %c0_i32_1 = arith.constant 0 : i32
    %c0_i32_2 = arith.constant 0 : i32
    return %c0_i32, %c0_i32_0, %c0_i32_1 : i32, i32, i32
  }
  func.func @transform_16(%arg0: i32) -> (i32, i32, i32) {
    %c0_i32 = arith.constant 0 : i32
    %c0_i32_0 = arith.constant 0 : i32
    %c0_i32_1 = arith.constant 0 : i32
    %c0_i32_2 = arith.constant 0 : i32
    return %c0_i32, %c0_i32_0, %c0_i32_1 : i32, i32, i32
  }
  func.func @transform_17(%arg0: i32) -> (i32, i32, i32) {
    %c0_i32 = arith.constant 0 : i32
    %c0_i32_0 = arith.constant 0 : i32
    %c0_i32_1 = arith.constant 0 : i32
    %c0_i32_2 = arith.constant 0 : i32
    return %c0_i32, %c0_i32_0, %c0_i32_1 : i32, i32, i32
  }
  func.func @transform_18(%arg0: i32) -> (i32, i32, i32) {
    %c0_i32 = arith.constant 0 : i32
    %c0_i32_0 = arith.constant 0 : i32
    %c0_i32_1 = arith.constant 0 : i32
    %c0_i32_2 = arith.constant 0 : i32
    return %c0_i32, %c0_i32_0, %c0_i32_1 : i32, i32, i32
  }
  func.func @transform_19(%arg0: i32) -> (i32, i32, i32) {
    %c0_i32 = arith.constant 0 : i32
    %c0_i32_0 = arith.constant 0 : i32
    %c0_i32_1 = arith.constant 0 : i32
    %c0_i32_2 = arith.constant 0 : i32
    return %c0_i32, %c0_i32_0, %c0_i32_1 : i32, i32, i32
  }
  func.func @transform_20(%arg0: i32) -> (i32, i32, i32) {
    %c0_i32 = arith.constant 0 : i32
    %c0_i32_0 = arith.constant 0 : i32
    %c0_i32_1 = arith.constant 0 : i32
    %c0_i32_2 = arith.constant 0 : i32
    return %c0_i32, %c0_i32_0, %c0_i32_1 : i32, i32, i32
  }
  func.func @transform_21(%arg0: i32) -> (i32, i32, i32) {
    %c0_i32 = arith.constant 0 : i32
    %c0_i32_0 = arith.constant 0 : i32
    %c0_i32_1 = arith.constant 0 : i32
    %c0_i32_2 = arith.constant 0 : i32
    return %c0_i32, %c0_i32_0, %c0_i32_1 : i32, i32, i32
  }
  func.func @transform_22(%arg0: i32) -> (i32, i32, i32) {
    %c0_i32 = arith.constant 0 : i32
    %c0_i32_0 = arith.constant 0 : i32
    %c0_i32_1 = arith.constant 0 : i32
    %c0_i32_2 = arith.constant 0 : i32
    return %c0_i32, %c0_i32_0, %c0_i32_1 : i32, i32, i32
  }
  func.func @transform_23(%arg0: i32) -> (i32, i32) {
    %c0_i32 = arith.constant 0 : i32
    %c0_i32_0 = arith.constant 0 : i32
    %c0_i32_1 = arith.constant 0 : i32
    return %c0_i32, %c0_i32_0 : i32, i32
  }
  func.func @transform_24(%arg0: i32) -> (i32, i32) {
    %c0_i32 = arith.constant 0 : i32
    %c0_i32_0 = arith.constant 0 : i32
    %c0_i32_1 = arith.constant 0 : i32
    return %c0_i32, %c0_i32_0 : i32, i32
  }
  func.func @transform_25(%arg0: i32) -> (i32, i32) {
    %c0_i32 = arith.constant 0 : i32
    %c0_i32_0 = arith.constant 0 : i32
    %c0_i32_1 = arith.constant 0 : i32
    return %c0_i32, %c0_i32_0 : i32, i32
  }
}

</mosaic_0001>

<bundles_post_ra>
// kernel: sylber_forward.1
= control target key start
LH: loop header
LB: loop body
LE: loop exit
PB: predicated region body
PF: predicated region fallthrough
CT: control target
= control target key end

     0   :  { %s8044_s0 = inlined_call_operand.vmem [shape: f32[32,128], index: 0, kind: input, shape index: {}]   ;;  %s8045_s1 = inlined_call_operand.vmem [shape: bf16[2,16,8], index: 1, kind: input, shape index: {}]   ;;  %s8046_s2 = inlined_call_operand.vmem [shape: bf16[2,8,16], index: 2, kind: input, shape index: {}]   ;;  %s8047_s3 = inlined_call_operand.hbm [shape: bf16[128,128], index: 3, kind: input, shape index: {}]   ;;  %s8048_s4 = inlined_call_operand.vmem [shape: f32[1,128], index: 4, kind: input, shape index: {}]   ;;  %s8049_s5 = inlined_call_operand.hbm [shape: f32[1,128], index: 5, kind: input, shape index: {}]   ;;  %s8050_s6 = inlined_call_operand.hbm [shape: f32[1,128], index: 6, kind: input, shape index: {}]   ;;  %s8051_s7 = inlined_call_operand.hbm [shape: bf16[128,128], index: 7, kind: input, shape index: {}]   ;;  %s8052_s8 = inlined_call_operand.hbm [shape: f32[1,128], index: 8, kind: input, shape index: {}]   ;;  %s8053_s9 = inlined_call_operand.vmem [shape: f32[1,128], index: 9, kind: input, shape index: {}]   ;;  %s8054_s10 = inlined_call_operand.vmem [shape: f32[1,128], index: 10, kind: input, shape index: {}]   ;;  %s8055_s11 = inlined_call_operand.vmem [shape: bf16[2,128,384], index: 11, kind: input, shape index: {}]   ;;  %s8056_s12 = inlined_call_operand.hbm [shape: f32[2,1,384], index: 12, kind: input, shape index: {}]   ;;  %s8057_s13 = inlined_call_operand.hbm [shape: bf16[2,128,128], index: 13, kind: input, shape index: {}]   ;;  %s8058_s14 = inlined_call_operand.vmem [shape: f32[2,1,128], index: 14, kind: input, shape index: {}]   ;;  %s8059_s15 = inlined_call_operand.hbm [shape: f32[2,1,128], index: 15, kind: input, shape index: {}]   ;;  %s8060_s16 = inlined_call_operand.hbm [shape: f32[2,1,128], index: 16, kind: input, shape index: {}]   ;;  %s8061_s17 = inlined_call_operand.vmem [shape: bf16[2,128,256], index: 17, kind: input, shape index: {}]   ;;  %s8062_s18 = inlined_call_operand.vmem [shape: f32[2,1,256], index: 18, kind: input, shape index: {}]   ;;  %s8063_s19 = inlined_call_operand.vmem [shape: bf16[2,256,128], index: 19, kind: input, shape index: {}]   ;;  %s8064_s20 = inlined_call_operand.vmem [shape: f32[2,1,128], index: 20, kind: input, shape index: {}]   ;;  %s8065_s21 = inlined_call_operand.hbm [shape: f32[2,1,128], index: 21, kind: input, shape index: {}]   ;;  %s8066_s22 = inlined_call_operand.hbm [shape: f32[2,1,128], index: 22, kind: input, shape index: {}]   ;;  %s8067_s23 = inlined_call_operand.hbm [shape: f32[32,128], index: 23, kind: output, shape index: {0}]   ;;  %s8068_s24 = inlined_call_operand.hbm [shape: f32[32,128], index: 24, kind: output, shape index: {1}]   ;;  %s8069_s25 = inlined_call_operand.hbm [shape: f32[1,1], index: 25, kind: output, shape index: {2}]  }
   0x1   :  { %8083 = sst [smem:[#allocation33_spill]] %s8044_s0 }
   0x2   :  { %8084 = sst [smem:[#allocation34_spill]] %s8045_s1 }
   0x3   :  { %8085 = sst [smem:[#allocation35_spill]] %s8046_s2 }
   0x4   :  { %8086 = sst [smem:[#allocation36_spill]] %s8047_s3 }
   0x5   :  { %8087 = sst [smem:[#allocation37_spill]] %s8048_s4 }
   0x6   :  { %8088 = sst [smem:[#allocation38_spill]] %s8049_s5 }
   0x7   :  { %8089 = sst [smem:[#allocation39_spill]] %s8050_s6 }
   0x8   :  { %8090 = sst [smem:[#allocation40_spill]] %s8051_s7 }
   0x9   :  { %8091 = sst [smem:[#allocation41_spill]] %s8052_s8 }
   0xa   :  { %8092 = sst [smem:[#allocation42_spill]] %s8053_s9 }
   0xb   :  { %8093 = sst [smem:[#allocation43_spill]] %s8069_s25 }
   0xc   :  { %31 = vsyncpa [#allocation4], 0 }
   0xd   :  { %32 = vsyncpa [#allocation7], 0 }
   0xe   :  { %33 = vsyncpa [#allocation10], 0 }
   0xf   :  { %34 = vsyncpa [#allocation13], 0 }
  0x10   :  { %35 = vsyncpa [#allocation16], 0 }
  0x11   :  { %36 = vsyncpa [#allocation19], 0 }
  0x12   :  { %37 = vsyncpa [#allocation5], 0 }
  0x13   :  { %38 = vsyncpa [#allocation23], 0  ;;  %s6564_s29 = smov [#allocation6]   ;;  %s8094_s7 = sld [smem:[#allocation38_spill]] }
  0x14   :  { %s65_s2 = sshll.u32 %s6564_s29, 4  ;;  %s66_s2 = int_to_ptr.vmem [resolvable:$true] %s65_s2 }
  0x19   :  { %s6240_s3 = scalar_lea.hbm %s8094_s7, 16 }
  0x1a   :  { %p6241_p0 = scmp.ne.s32.totalorder %s8094_s7, %s6240_s3  ;;  %p6244_p1 = scmp.lt.u32.totalorder %s6240_s3, %s8094_s7 }
  0x1c   :  { %p6246_p2 = pnand %p6244_p1, %p6241_p0 }
  0x1e   :  { %6249 = shalt.err (!%p6246_p2)
}
  0x1f   :  { %s6250_s4 = scalar_lea.vmem %s66_s2, 16  ;;  %s6254_s28 = scalar_lea.vmem %s66_s2, 32 }
  0x20   :  { %p6251_p3 = scmp.ne.s32.totalorder %s66_s2, %s6250_s4  ;;  %p6255_p4 = scmp.lt.s32.totalorder %s66_s2, %s66_s2 }
  0x21   :  { %p6256_p5 = scmp.lt.s32.totalorder %s6254_s28, %s6250_s4 }
  0x23   :  { %p6257_p6 = por %p6256_p5, %p6255_p4 }
  0x25   :  { %p6258_p7 = pnand %p6257_p6, %p6251_p3 }
  0x27   :  { %6261 = shalt.err (!%p6258_p7)
}
  0x28   :  { %68 = dma.hbm_to_vmem [thread:$0]  %s8094_s7, 16, %s66_s2, [#allocation7]  }
  0x29   :  { %s6565_s0 = smov [#allocation9]   ;;  %s6566_s6 = smov [#allocation12]  }
  0x2a   :  { %s84_s29 = sshll.u32 %s6565_s0, 4  ;;  %s112_s30 = sshll.u32 %s6566_s6, 4  ;;  %s85_s29 = int_to_ptr.vmem [resolvable:$true] %s84_s29  ;;  %s113_s30 = int_to_ptr.vmem [resolvable:$true] %s112_s30 }
  0x2b   :  { %s8095_s1 = sld [smem:[#allocation40_spill]] }
  0x31   :  { %s6262_s8 = scalar_lea.hbm %s8095_s1, 1024 }
  0x32   :  { %p6263_p8 = scmp.ne.s32.totalorder %s8095_s1, %s6262_s8  ;;  %p6266_p9 = scmp.lt.u32.totalorder %s6262_s8, %s8095_s1 }
  0x34   :  { %p6268_p10 = pnand %p6266_p9, %p6263_p8 }
  0x36   :  { %6271 = shalt.err (!%p6268_p10)
}
  0x37   :  { %s6272_s2 = scalar_lea.vmem %s85_s29, 1024  ;;  %p6277_p12 = scmp.lt.s32.totalorder %s85_s29, %s85_s29 }
  0x38   :  { %p6273_p11 = scmp.ne.s32.totalorder %s85_s29, %s6272_s2  ;;  %p6278_p13 = scmp.lt.s32.totalorder %s6272_s2, %s6272_s2 }
  0x3a   :  { %p6279_p0 = por %p6278_p13, %p6277_p12 }
  0x3c   :  { %p6280_p1 = pnand %p6279_p0, %p6273_p11 }
  0x3e   :  { %6283 = shalt.err (!%p6280_p1)
}
  0x3f   :  { %s8079_s7 = smov 64   ;;  %s6568_s9 = smov 4  }
  0x40   :  { %90 = dma.hbm_to_vmem [thread:$0]  %s8095_s1, 1024, %s85_s29, [#allocation10], %s8079_s7, %s8079_s7, %s6568_s9  }
  0x41   :  { %s6284_s3 = scalar_lea.hbm %s8056_s12, 96 }
  0x42   :  { %p6285_p2 = scmp.ne.s32.totalorder %s8056_s12, %s6284_s3  ;;  %p6288_p3 = scmp.lt.u32.totalorder %s6284_s3, %s8056_s12 }
  0x44   :  { %p6290_p4 = pnand %p6288_p3, %p6285_p2 }
  0x46   :  { %6293 = shalt.err (!%p6290_p4)
}
  0x47   :  { %s6294_s28 = scalar_lea.vmem %s113_s30, 96  ;;  %p6299_p6 = scmp.lt.s32.totalorder %s113_s30, %s113_s30 }
  0x48   :  { %p6295_p5 = scmp.ne.s32.totalorder %s113_s30, %s6294_s28  ;;  %p6300_p7 = scmp.lt.s32.totalorder %s6294_s28, %s6294_s28 }
  0x4a   :  { %p6301_p8 = por %p6300_p7, %p6299_p6 }
  0x4c   :  { %p6302_p9 = pnand %p6301_p8, %p6295_p5 }
  0x4e   :  { %6305 = shalt.err (!%p6302_p9)
}
  0x4f   :  { %s6569_s29 = smov 48   ;;  %s6570_s1 = smov 3  }
  0x50   :  { %118 = dma.hbm_to_vmem [thread:$0]  %s8056_s12, 96, %s113_s30, [#allocation13], %s6569_s29, %s6569_s29, %s6570_s1  }
  0x51   :  { %s6571_s5 = smov [#allocation15]   ;;  %s6306_s26 = scalar_lea.hbm %s8059_s15, 32 }
  0x52   :  { %s138_s0 = sshll.u32 %s6571_s5, 4  ;;  %p6307_p10 = scmp.ne.s32.totalorder %s8059_s15, %s6306_s26  ;;  %s139_s0 = int_to_ptr.vmem [resolvable:$true] %s138_s0 }
  0x53   :  { %p6310_p11 = scmp.lt.u32.totalorder %s6306_s26, %s8059_s15 }
  0x55   :  { %p6312_p12 = pnand %p6310_p11, %p6307_p10 }
  0x57   :  { %6315 = shalt.err (!%p6312_p12)
}
  0x58   :  { %s6316_s7 = scalar_lea.vmem %s139_s0, 32  ;;  %p6321_p0 = scmp.lt.s32.totalorder %s139_s0, %s139_s0 }
  0x59   :  { %p6317_p13 = scmp.ne.s32.totalorder %s139_s0, %s6316_s7  ;;  %p6322_p1 = scmp.lt.s32.totalorder %s6316_s7, %s6316_s7 }
  0x5b   :  { %p6323_p2 = por %p6322_p1, %p6321_p0 }
  0x5d   :  { %p6324_p3 = pnand %p6323_p2, %p6317_p13 }
  0x5f   :  { %6327 = shalt.err (!%p6324_p3)
}
  0x60   :  { %s8081_s12 = smov 16   ;;  %s6573_s30 = smov 1  }
  0x61   :  { %144 = dma.hbm_to_vmem [thread:$0]  %s8059_s15, 32, %s139_s0, [#allocation16], %s8081_s12, %s8081_s12, %s6573_s30  }
  0x62   :  { %s6574_s2 = smov [#allocation18]   ;;  %s6575_s5 = smov [#allocation3]  }
  0x63   :  { %s170_s25 = sshll.u32 %s6574_s2, 4  ;;  %s50_s6 = sshll.u32 %s6575_s5, 4  ;;  %s171_s25 = int_to_ptr.vmem [resolvable:$true] %s170_s25  ;;  %s6775_s6 = int_to_ptr.vmem [resolvable:$true] %s50_s6 }
  0x64   :  { %s6328_s26 = scalar_lea.hbm %s8065_s21, 32 }
  0x65   :  { %p6329_p4 = scmp.ne.s32.totalorder %s8065_s21, %s6328_s26  ;;  %p6332_p5 = scmp.lt.u32.totalorder %s6328_s26, %s8065_s21 }
  0x67   :  { %p6334_p6 = pnand %p6332_p5, %p6329_p4 }
  0x69   :  { %6337 = shalt.err (!%p6334_p6)
}
  0x6a   :  { %s6338_s15 = scalar_lea.vmem %s171_s25, 32  ;;  %p6343_p8 = scmp.lt.s32.totalorder %s171_s25, %s171_s25 }
  0x6b   :  { %p6339_p7 = scmp.ne.s32.totalorder %s171_s25, %s6338_s15  ;;  %p6344_p9 = scmp.lt.s32.totalorder %s6338_s15, %s6338_s15 }
  0x6d   :  { %p6345_p10 = por %p6344_p9, %p6343_p8 }
  0x6f   :  { %p6346_p11 = pnand %p6345_p10, %p6339_p7 }
  0x71   :  { %6349 = shalt.err (!%p6346_p11)
}
  0x72   :  { %176 = dma.hbm_to_vmem [thread:$0]  %s8065_s21, 32, %s171_s25, [#allocation19], %s8081_s12, %s8081_s12, %s6573_s30  }
  0x73   :  { %s8096_s5 = sld [smem:[#allocation36_spill]] }
  0x79   :  { %s6350_s7 = scalar_lea.hbm %s8096_s5, 1024 }
  0x7a   :  { %p6351_p12 = scmp.ne.s32.totalorder %s8096_s5, %s6350_s7  ;;  %p6354_p13 = scmp.lt.u32.totalorder %s6350_s7, %s8096_s5 }
  0x7c   :  { %p6356_p0 = pnand %p6354_p13, %p6351_p12 }
  0x7e   :  { %6359 = shalt.err (!%p6356_p0)
}
  0x7f   :  { %s6360_s4 = scalar_lea.vmem %s6775_s6, 1024  ;;  %p6365_p2 = scmp.lt.s32.totalorder %s6775_s6, %s6775_s6 }
  0x80   :  { %p6361_p1 = scmp.ne.s32.totalorder %s6775_s6, %s6360_s4  ;;  %p6366_p3 = scmp.lt.s32.totalorder %s6360_s4, %s6360_s4 }
  0x82   :  { %p6367_p4 = por %p6366_p3, %p6365_p2 }
  0x84   :  { %p6368_p5 = pnand %p6367_p4, %p6361_p1 }
  0x86   :  { %6371 = shalt.err (!%p6368_p5)
}
  0x87   :  { %s8097_s21 = smov 64   ;;  %s6576_s15 = smov [#allocation8]  }
  0x88   :  { %56 = dma.hbm_to_vmem [thread:$0]  %s8096_s5, 1024, %s6775_s6, [#allocation4], %s8097_s21, %s8097_s21, %s6568_s9  }
  0x89   :  { %s75_s0 = sshll.u32 %s6576_s15, 4  ;;  %s6577_s29 = smov [#allocation11]   ;;  %s76_s0 = int_to_ptr.vmem [resolvable:$true] %s75_s0 }
  0x8a   :  { %s97_s1 = sshll.u32 %s6577_s29, 4  ;;  %s8098_s3 = sld [smem:[#allocation39_spill]]  ;;  %s98_s1 = int_to_ptr.vmem [resolvable:$true] %s97_s1 }
  0x90   :  { %s6372_s26 = scalar_lea.hbm %s8098_s3, 16 }
  0x91   :  { %p6373_p6 = scmp.ne.s32.totalorder %s8098_s3, %s6372_s26  ;;  %p6376_p7 = scmp.lt.u32.totalorder %s6372_s26, %s8098_s3 }
  0x93   :  { %p6378_p8 = pnand %p6376_p7, %p6373_p6 }
  0x95   :  { %6381 = shalt.err (!%p6378_p8)
}
  0x96   :  { %s6382_s6 = scalar_lea.vmem %s76_s0, 16  ;;  %s6386_s5 = scalar_lea.vmem %s76_s0, 32 }
  0x97   :  { %p6383_p9 = scmp.ne.s32.totalorder %s76_s0, %s6382_s6  ;;  %p6387_p10 = scmp.lt.s32.totalorder %s76_s0, %s76_s0 }
  0x98   :  { %p6388_p11 = scmp.lt.s32.totalorder %s6386_s5, %s6382_s6 }
  0x9a   :  { %p6389_p12 = por %p6388_p11, %p6387_p10 }
  0x9c   :  { %p6390_p13 = pnand %p6389_p12, %p6383_p9 }
  0x9e   :  { %6393 = shalt.err (!%p6390_p13)
}
  0x9f   :  { %78 = dma.hbm_to_vmem [thread:$0]  %s8098_s3, 16, %s76_s0, [#allocation7]  }
  0xa0   :  { %s8099_s2 = sld [smem:[#allocation41_spill]] }
  0xa6   :  { %s6394_s7 = scalar_lea.hbm %s8099_s2, 16 }
  0xa7   :  { %p6395_p0 = scmp.ne.s32.totalorder %s8099_s2, %s6394_s7  ;;  %p6398_p1 = scmp.lt.u32.totalorder %s6394_s7, %s8099_s2 }
  0xa9   :  { %p6400_p2 = pnand %p6398_p1, %p6395_p0 }
  0xab   :  { %6403 = shalt.err (!%p6400_p2)
}
  0xac   :  { %s6404_s4 = scalar_lea.vmem %s98_s1, 16  ;;  %s6408_s6 = scalar_lea.vmem %s98_s1, 32 }
  0xad   :  { %p6405_p3 = scmp.ne.s32.totalorder %s98_s1, %s6404_s4  ;;  %p6409_p4 = scmp.lt.s32.totalorder %s98_s1, %s98_s1 }
  0xae   :  { %p6410_p5 = scmp.lt.s32.totalorder %s6408_s6, %s6404_s4 }
  0xb0   :  { %p6411_p6 = por %p6410_p5, %p6409_p4 }
  0xb2   :  { %p6412_p7 = pnand %p6411_p6, %p6405_p3 }
  0xb4   :  { %6415 = shalt.err (!%p6412_p7)
}
  0xb5   :  { %100 = dma.hbm_to_vmem [thread:$0]  %s8099_s2, 16, %s98_s1, [#allocation10]  }
  0xb6   :  { %s6578_s5 = smov [#allocation14]   ;;  %s6579_s28 = smov [#allocation17]  }
  0xb7   :  { %s124_s25 = sshll.u32 %s6578_s5, 4  ;;  %s150_s15 = sshll.u32 %s6579_s28, 4  ;;  %s125_s25 = int_to_ptr.vmem [resolvable:$true] %s124_s25  ;;  %s6836_s15 = int_to_ptr.vmem [resolvable:$true] %s150_s15 }
  0xb8   :  { %s6416_s12 = scalar_lea.hbm %s8057_s13, 2048 }
  0xb9   :  { %p6417_p8 = scmp.ne.s32.totalorder %s8057_s13, %s6416_s12  ;;  %p6420_p9 = scmp.lt.u32.totalorder %s6416_s12, %s8057_s13 }
  0xbb   :  { %p6422_p10 = pnand %p6420_p9, %p6417_p8 }
  0xbd   :  { %6425 = shalt.err (!%p6422_p10)
}
  0xbe   :  { %s6426_s1 = scalar_lea.vmem %s125_s25, 2048  ;;  %p6431_p12 = scmp.lt.s32.totalorder %s125_s25, %s125_s25 }
  0xbf   :  { %p6427_p11 = scmp.ne.s32.totalorder %s125_s25, %s6426_s1  ;;  %p6432_p13 = scmp.lt.s32.totalorder %s6426_s1, %s6426_s1 }
  0xc1   :  { %p6433_p0 = por %p6432_p13, %p6431_p12 }
  0xc3   :  { %p6434_p1 = pnand %p6433_p0, %p6427_p11 }
  0xc5   :  { %6437 = shalt.err (!%p6434_p1)
}
  0xc6   :  { %130 = dma.hbm_to_vmem [thread:$0]  %s8057_s13, 2048, %s125_s25, [#allocation13], %s8097_s21, %s8097_s21, %s6568_s9  }
  0xc7   :  { %s6438_s5 = scalar_lea.hbm %s8060_s16, 32 }
  0xc8   :  { %p6439_p2 = scmp.ne.s32.totalorder %s8060_s16, %s6438_s5  ;;  %p6442_p3 = scmp.lt.u32.totalorder %s6438_s5, %s8060_s16 }
  0xca   :  { %p6444_p4 = pnand %p6442_p3, %p6439_p2 }
  0xcc   :  { %6447 = shalt.err (!%p6444_p4)
}
  0xcd   :  { %s6448_s26 = scalar_lea.vmem %s6836_s15, 32  ;;  %p6453_p6 = scmp.lt.s32.totalorder %s6836_s15, %s6836_s15 }
  0xce   :  { %p6449_p5 = scmp.ne.s32.totalorder %s6836_s15, %s6448_s26  ;;  %p6454_p7 = scmp.lt.s32.totalorder %s6448_s26, %s6448_s26 }
  0xd0   :  { %p6455_p8 = por %p6454_p7, %p6453_p6 }
  0xd2   :  { %p6456_p9 = pnand %p6455_p8, %p6449_p5 }
  0xd4   :  { %6459 = shalt.err (!%p6456_p9)
}
  0xd5   :  { %s8100_s13 = smov 16   ;;  %s6580_s8 = smov [#allocation20]  }
  0xd6   :  { %156 = dma.hbm_to_vmem [thread:$0]  %s8060_s16, 32, %s6836_s15, [#allocation16], %s8100_s13, %s8100_s13, %s6573_s30  }
  0xd7   :  { %s182_s27 = sshll.u32 %s6580_s8, 4  ;;  %s6460_s2 = scalar_lea.hbm %s8066_s22, 32  ;;  %s183_s27 = int_to_ptr.vmem [resolvable:$true] %s182_s27 }
  0xd8   :  { %p6461_p10 = scmp.ne.s32.totalorder %s8066_s22, %s6460_s2  ;;  %p6464_p11 = scmp.lt.u32.totalorder %s6460_s2, %s8066_s22 }
  0xda   :  { %p6466_p12 = pnand %p6464_p11, %p6461_p10 }
  0xdc   :  { %6469 = shalt.err (!%p6466_p12)
}
  0xdd   :  { %s6470_s28 = scalar_lea.vmem %s183_s27, 32  ;;  %p6475_p0 = scmp.lt.s32.totalorder %s183_s27, %s183_s27 }
  0xde   :  { %p6471_p13 = scmp.ne.s32.totalorder %s183_s27, %s6470_s28  ;;  %p6476_p1 = scmp.lt.s32.totalorder %s6470_s28, %s6470_s28 }
  0xe0   :  { %p6477_p2 = por %p6476_p1, %p6475_p0 }
  0xe2   :  { %p6478_p3 = pnand %p6477_p2, %p6471_p13 }
  0xe4   :  { %6481 = shalt.err (!%p6478_p3)
}
  0xe5   :  { %188 = dma.hbm_to_vmem [thread:$0]  %s8066_s22, 32, %s183_s27, [#allocation19], %s8100_s13, %s8100_s13, %s6573_s30  }
  0xe6   :  { %6548 = dma.done.wait [#allocation4], 1024  }
  0xe7   :  { %6549 = vsyncadd [#allocation4], 4294966272 }
  0xe8   :  { %6550 = dma.done.wait [#allocation7], 32  }
  0xe9   :  { %6551 = vsyncadd [#allocation7], 4294967264 }
  0xea   :  { %6552 = dma.done.wait [#allocation10], 1040  }
  0xeb   :  { %6553 = vsyncadd [#allocation10], 4294966256 }
  0xec   :  { %6554 = dma.done.wait [#allocation13], 2144  }
  0xed   :  { %6555 = vsyncadd [#allocation13], 4294965152 }
  0xee   :  { %6556 = dma.done.wait [#allocation16], 64  }
  0xef   :  { %6557 = vsyncadd [#allocation16], 4294967232 }
  0xf0   :  { %6558 = dma.done.wait [#allocation19], 64  }
  0xf1   :  { %6559 = vsyncadd [#allocation19], 4294967232  ;;  %v5842_v0 = vld [vmem:[#allocation3] sm:$0xff]   ;;  %v5843_v1 = vld [vmem:[#allocation3 + $0x8] sm:$0xff]   ;;  %s8101_s29 = sld [smem:[#allocation33_spill]]  ;;  %s8102_s4 = sld [smem:[#allocation37_spill]] }
  0xf2   :  { %5475 = vmatprep.subr.bf16.mxu0 %v5842_v0  ;;  %v5844_v2 = vld [vmem:[#allocation3 + $0x10] sm:$0xff]   ;;  %v5845_v3 = vld [vmem:[#allocation3 + $0x18] sm:$0xff]   ;;  %v5846_v7 = vld [vmem:[#allocation3 + $0x20] sm:$0xff]   ;;  %s8103_s15 = sld [smem:[#allocation42_spill]]  ;;  %vm6583_vm0 = vmmov 0   ;;  %vm927_vm1 = vcmask 261120  }
  0xf3   :  { %5476 = vmatpush3.bf16.msra.mxu0 %v5842_v0  ;;  %v5847_v8 = vld [vmem:[#allocation3 + $0x28] sm:$0xff]   ;;  %v5848_v9 = vld [vmem:[#allocation3 + $0x30] sm:$0xff]   ;;  %v5849_v10 = vld [vmem:[#allocation3 + $0x38] sm:$0xff]   ;;  %vm977_vm2 = vcmask 130048   ;;  %vm1181_vm3 = vcmask 523520   ;;  %vm1315_vm4 = vcmask 785920  }
  0xf4   :  { %5477 = vmatprep.subr.bf16.mxu0 %v5843_v1  ;;  %v5850_v59 = vld [vmem:[#allocation9] sm:$0xff]   ;;  %vm1449_vm5 = vcmask 1048320   ;;  %s8104_s2 = sld [smem:[#allocation35_spill]]  ;;  %vm4757_vm6 = vcmask 1043456   ;;  %s8105_s28 = sld [smem:[#allocation34_spill]]  ;;  %vm4753_vm7 = vcmask 64512  }
  0xf5   :  { %5495 = vmatprep.subr.bf16.mxu1 %v5850_v59 }
  0xf6   :  { %5496 = vmatpush3.bf16.msra.mxu1 %v5850_v59 }
  0xf7   :  { %5478 = vmatpush3.bf16.msra.mxu0 %v5843_v1  ;;  %v223_v4 = vld [vmem:[%s8101_s29] sm:$0xff]  ;;  %v224_v5 = vld [vmem:[%s8101_s29 + $0x8] sm:$0xff]  ;;  %v225_v11 = vld [vmem:[%s8101_s29 + $0x10] sm:$0xff] }
  0xf8   :  { %5479 = vmatprep.subr.bf16.mxu0 %v5844_v2  ;;  %v227_v6 = vpack.c.bf16 %v224_v5, %v223_v4  ;;  %v226_v12 = vld [vmem:[%s8101_s29 + $0x18] sm:$0xff]  ;;  %v5001_v14 = vld [vmem:[%s8102_s4] ss:$0 sm:$0xff]  ;;  %s6585_s29 = smov 32  }
  0xf9   :  { %v228_v13 = vpack.c.bf16 %v226_v12, %v225_v11  ;;  %v5851_v12 = vld [vmem:[#allocation9 + $0x8] sm:$0xff]  }
  0xfa   :  { %5491 = vmatprep.mubr.bf16.mxu0 %v227_v6  ;;  %5497 = vmatprep.subr.bf16.mxu1 %v5851_v12 }
  0xfb   :  { %5480 = vmatpush3.bf16.msra.mxu0 %v5844_v2  ;;  %5498 = vmatpush3.bf16.msra.mxu1 %v5851_v12 }
  0xfc   :  { %5481 = vmatprep.subr.bf16.mxu0 %v5845_v3 }
  0xff   :  { %5482 = vmatpush3.bf16.msra.mxu0 %v5845_v3 }
 0x100   :  { %5483 = vmatprep.subr.bf16.mxu0 %v5846_v7 }
 0x103   :  { %5484 = vmatpush3.bf16.msra.mxu0 %v5846_v7 }
 0x104   :  { %5485 = vmatprep.subr.bf16.mxu0 %v5847_v8 }
 0x107   :  { %5486 = vmatpush3.bf16.msra.mxu0 %v5847_v8 }
 0x108   :  { %5487 = vmatprep.subr.bf16.mxu0 %v5848_v9 }
 0x10b   :  { %5488 = vmatpush3.bf16.msra.mxu0 %v5848_v9 }
 0x10c   :  { %5489 = vmatprep.subr.bf16.mxu0 %v5849_v10 }
 0x10f   :  { %5490 = vmatpush3.bf16.msra.mxu0 %v5849_v10 }
 0x112   :  { %5492 = vmatmul.mubr.bf16.vlgmr.msra.gmra.mrb[0].mxu0 %v228_v13  ;;  %v5852_v13 = vld [vmem:[#allocation9 + $0x10] sm:$0xff]  }
 0x113   :  { %5499 = vmatprep.subr.bf16.mxu1 %v5852_v13 }
 0x114   :  { %5500 = vmatpush3.bf16.msra.mxu1 %v5852_v13 }
 0x1e5   :  { %v5493_v15 = vpop.f32.mrb[0].mxu0 }
 0x1e6   :  { %v343_v16 = vadd.f32 %v5493_v15, %v5001_v14  ;;  %v334_v17 = vpop.f32.mrb[1].mxu0  ;;  %v5854_v15 = vld [vmem:[#allocation9 + $0x20] sm:$0xff]  }
 0x1e7   :  { %v335_v18 = vadd.f32 %v5001_v14, %v334_v17  ;;  %v5494_v19 = vpop.f32.mrb[2].mxu0  ;;  %v5856_v17 = vld [vmem:[#allocation9 + $0x30] sm:$0xff]  }
 0x1e8   :  { %v351_v20 = vmul.f32 %v343_v16, %v343_v16  ;;  %v346_v21 = vadd.f32 %v5494_v19, %v5001_v14  ;;  %v337_v22 = vpop.f32.mrb[3].mxu0 }
 0x1e9   :  { %v349_v23 = vmul.f32 %v335_v18, %v335_v18  ;;  %v338_v24 = vadd.f32 %v5001_v14, %v337_v22  ;;  %v5853_v14 = vld [vmem:[#allocation9 + $0x18] sm:$0xff]  }
 0x1ea   :  { %v355_v25 = vmul.f32 %v351_v20, %v343_v16  ;;  %v352_v26 = vmul.f32 %v346_v21, %v346_v21  ;;  %5501 = vmatprep.subr.bf16.mxu1 %v5853_v14 }
 0x1eb   :  { %v353_v27 = vmul.f32 %v349_v23, %v335_v18  ;;  %v350_v28 = vmul.f32 %v338_v24, %v338_v24  ;;  %5502 = vmatpush3.bf16.msra.mxu1 %v5853_v14 }
 0x1ec   :  { %v359_v29 = vmul.f32 0.044715, %v355_v25  ;;  %v356_v30 = vmul.f32 %v352_v26, %v346_v21  ;;  %5503 = vmatprep.subr.bf16.mxu1 %v5854_v15 }
 0x1ed   :  { %v357_v31 = vmul.f32 0.044715, %v353_v27  ;;  %v354_v32 = vmul.f32 %v350_v28, %v338_v24 }
 0x1ee   :  { %v360_v33 = vmul.f32 0.044715, %v356_v30  ;;  %v363_v34 = vadd.f32 %v359_v29, %v343_v16 }
 0x1ef   :  { %v358_v35 = vmul.f32 0.044715, %v354_v32  ;;  %v361_v36 = vadd.f32 %v357_v31, %v335_v18  ;;  %5504 = vmatpush3.bf16.msra.mxu1 %v5854_v15 }
 0x1f0   :  { %v367_v37 = vmul.f32 0.7978846, %v363_v34  ;;  %v364_v38 = vadd.f32 %v360_v33, %v346_v21  ;;  %v5010_v33 = vld [vmem:[#allocation6] ss:$0 sm:$0xff] }
 0x1f1   :  { %v365_v39 = vmul.f32 0.7978846, %v361_v36  ;;  %v362_v40 = vadd.f32 %v358_v35, %v338_v24 }
 0x1f2   :  { %6020 = vtanh.f32 %v367_v37  ;;  %v368_v41 = vmul.f32 0.7978846, %v364_v38  ;;  %v5011_v38 = vld [vmem:[#allocation8] ss:$0 sm:$0xff] }
 0x1f3   :  { %6022 = vtanh.f32 %v365_v39  ;;  %v366_v42 = vmul.f32 0.7978846, %v362_v40 }
 0x1f4   :  { %6024 = vtanh.f32 %v368_v41 }
 0x1f5   :  { %6026 = vtanh.f32 %v366_v42 }
 0x1fc   :  { %v6021_v43 = vpop.eup %6020 }
 0x1fd   :  { %v6023_v44 = vpop.eup %6022  ;;  %v375_v45 = vadd.f32 1.0, %v6021_v43 }
 0x1fe   :  { %v6025_v46 = vpop.eup %6024  ;;  %v373_v47 = vadd.f32 1.0, %v6023_v44 }
 0x1ff   :  { %v6027_v48 = vpop.eup %6026  ;;  %v379_v49 = vmul.f32 0.5, %v375_v45  ;;  %v376_v50 = vadd.f32 1.0, %v6025_v46 }
 0x200   :  { %v377_v51 = vmul.f32 0.5, %v373_v47  ;;  %v374_v52 = vadd.f32 1.0, %v6027_v48 }
 0x201   :  { %v383_v53 = vmul.f32 %v379_v49, %v343_v16  ;;  %v380_v54 = vmul.f32 0.5, %v376_v50  ;;  %v5855_v16 = vld [vmem:[#allocation9 + $0x28] sm:$0xff]  }
 0x202   :  { %v381_v55 = vmul.f32 %v377_v51, %v335_v18  ;;  %v378_v56 = vmul.f32 0.5, %v374_v52  ;;  %5505 = vmatprep.subr.bf16.mxu1 %v5855_v16  ;;  %v5857_v18 = vld [vmem:[#allocation9 + $0x38] sm:$0xff]   ;;  %v5012_v51 = vld [vmem:[#allocation11] ss:$0 sm:$0xff] }
 0x203   :  { %391 = vadd.xlane.f32.xlu1 %v383_v53  ;;  %v384_v57 = vmul.f32 %v380_v54, %v346_v21  ;;  %5506 = vmatpush3.bf16.msra.mxu1 %v5855_v16 }
 0x204   :  { %387 = vadd.xlane.f32.xlu0 %v381_v55  ;;  %v382_v58 = vmul.f32 %v378_v56, %v338_v24  ;;  %5507 = vmatprep.subr.bf16.mxu1 %v5856_v17 }
 0x207   :  { %393 = vadd.xlane.f32.xlu1 %v384_v57  ;;  %5508 = vmatpush3.bf16.msra.mxu1 %v5856_v17  ;;  %v5867_v17 = vld [vmem:[%s8055_s11 + $0x34] ss:$12 sps:$4 sm:$0xff]  }
 0x208   :  { %389 = vadd.xlane.f32.xlu0 %v382_v58  ;;  %5509 = vmatprep.subr.bf16.mxu1 %v5857_v18 }
 0x20b   :  { %5510 = vmatpush3.bf16.msra.mxu1 %v5857_v18  ;;  %v5868_v18 = vld [vmem:[%s8055_s11 + $0x20] ss:$12 sps:$4 sm:$0xff]  }
 0x290   :  { %v392_v60 = vpop.xlane.xlu1 %391 }
 0x291   :  { %v388_v61 = vpop.xlane.xlu0 %387  ;;  %v398_v62 = vmul.f32 0.0078125, %v392_v60  ;;  %v5858_v60 = vld [vmem:[%s8055_s11] ss:$12 sps:$4 sm:$0xff]  }
 0x292   :  { %v396_v63 = vmul.f32 0.0078125, %v388_v61  ;;  %v5860_v61 = vld [vmem:[%s8055_s11 + $0x4] ss:$12 sps:$4 sm:$0xff]  }
 0x293   :  { %v402_v6 = vsub.f32 %v383_v53, %v398_v62  ;;  %v5863_v62 = vld [vmem:[%s8055_s11 + $0x1c] ss:$12 sps:$4 sm:$0xff]   ;;  %819 = vmatprep.subr.bf16.mxu0 %v5860_v61 }
 0x294   :  { %v394_v0 = vpop.xlane.xlu1 %393  ;;  %v400_v1 = vsub.f32 %v381_v55, %v396_v63  ;;  %v5864_v63 = vld [vmem:[%s8055_s11 + $0x8] ss:$12 sps:$4 sm:$0xff]   ;;  %820 = vmatpush1.bf16.msra.mxu0 %v5858_v60 }
 0x295   :  { %v390_v2 = vpop.xlane.xlu0 %389  ;;  %v399_v3 = vmul.f32 0.0078125, %v394_v0  ;;  %v406_v8 = vmul.f32 %v402_v6, %v402_v6  ;;  %v5861_v0 = vld [vmem:[%s8055_s11 + $0x18] ss:$12 sps:$4 sm:$0xff]   ;;  %5515 = vmatprep.subr.bf16.mxu1 %v5864_v63  ;;  %821 = vmatprep.subr.bf16.mxu0 %v5863_v62 }
 0x296   :  { %v397_v4 = vmul.f32 0.0078125, %v390_v2  ;;  %v404_v5 = vmul.f32 %v400_v1, %v400_v1 }
 0x297   :  { %v403_v10 = vsub.f32 %v384_v57, %v399_v3 }
 0x298   :  { %408 = vadd.xlane.f32.xlu0 %v404_v5  ;;  %v401_v7 = vsub.f32 %v382_v58, %v397_v4  ;;  %822 = vmatpush1.bf16.msra.mxu0 %v5861_v0 }
 0x299   :  { %v407_v11 = vmul.f32 %v403_v10, %v403_v10  ;;  %823 = vmatprep.subr.bf16.mxu0 %v5867_v17 }
 0x29a   :  { %v405_v9 = vmul.f32 %v401_v7, %v401_v7 }
 0x29c   :  { %412 = vadd.xlane.f32.xlu0 %v406_v8  ;;  %410 = vadd.xlane.f32.xlu1 %v405_v9 }
 0x2a0   :  { %414 = vadd.xlane.f32.xlu1 %v407_v11 }
 0x325   :  { %v409_v19 = vpop.xlane.xlu0 %408 }
 0x326   :  { %v416_v20 = vmul.f32 0.0078125, %v409_v19  ;;  %v5865_v19 = vld [vmem:[%s8055_s11 + $0x30] ss:$12 sps:$4 sm:$0xff]  }
 0x327   :  { %824 = vmatpush1.bf16.msra.mxu0 %v5865_v19 }
 0x328   :  { %v420_v21 = vadd.f32 1e-05, %v416_v20  ;;  %v5871_v20 = vld [vmem:[%s8055_s11 + $0x4c] ss:$12 sps:$4 sm:$0xff]  }
 0x329   :  { %v411_v22 = vpop.xlane.xlu1 %410  ;;  %v413_v23 = vpop.xlane.xlu0 %412  ;;  %825 = vmatprep.subr.bf16.mxu0 %v5871_v20 }
 0x32a   :  { %6028 = vrsqrt.f32 %v420_v21  ;;  %v417_v24 = vmul.f32 0.0078125, %v411_v22  ;;  %v418_v25 = vmul.f32 0.0078125, %v413_v23  ;;  %v5872_v21 = vld [vmem:[%s8055_s11 + $0x38] ss:$12 sps:$4 sm:$0xff]   ;;  %v5869_v22 = vld [vmem:[%s8055_s11 + $0x48] ss:$12 sps:$4 sm:$0xff]  }
 0x32b   :  { %826 = vmatpush1.bf16.msra.mxu0 %v5869_v22  ;;  %v5875_v23 = vld [vmem:[%s8055_s11 + $0x64] ss:$12 sps:$4 sm:$0xff]  }
 0x32c   :  { %v421_v26 = vadd.f32 1e-05, %v417_v24  ;;  %v422_v27 = vadd.f32 1e-05, %v418_v25  ;;  %v5876_v24 = vld [vmem:[%s8055_s11 + $0x50] ss:$12 sps:$4 sm:$0xff]   ;;  %827 = vmatprep.subr.bf16.mxu0 %v5875_v23 }
 0x32d   :  { %v415_v28 = vpop.xlane.xlu1 %414  ;;  %v5873_v25 = vld [vmem:[%s8055_s11 + $0x60] ss:$12 sps:$4 sm:$0xff]  }
 0x32e   :  { %6030 = vrsqrt.f32 %v421_v26  ;;  %v419_v29 = vmul.f32 0.0078125, %v415_v28  ;;  %v5879_v26 = vld [vmem:[%s8055_s11 + $0x7c] ss:$12 sps:$4 sm:$0xff]   ;;  %v5877_v28 = vld [vmem:[%s8055_s11 + $0x78] ss:$12 sps:$4 sm:$0xff]  }
 0x32f   :  { %6032 = vrsqrt.f32 %v422_v27  ;;  %v5880_v27 = vld [vmem:[%s8055_s11 + $0x68] ss:$12 sps:$4 sm:$0xff]   ;;  %828 = vmatpush1.bf16.msra.mxu0 %v5873_v25 }
 0x330   :  { %v423_v30 = vadd.f32 1e-05, %v419_v29  ;;  %829 = vmatprep.subr.bf16.mxu0 %v5879_v26  ;;  %v5883_v29 = vld [vmem:[%s8055_s11 + $0x94] ss:$12 sps:$4 sm:$0xff]  }
 0x332   :  { %6034 = vrsqrt.f32 %v423_v30  ;;  %v5884_v30 = vld [vmem:[%s8055_s11 + $0x80] ss:$12 sps:$4 sm:$0xff]  }
 0x333   :  { %830 = vmatpush1.bf16.msra.mxu0 %v5877_v28 }
 0x334   :  { %v6029_v31 = vpop.eup %6028  ;;  %831 = vmatprep.subr.bf16.mxu0 %v5883_v29 }
 0x335   :  { %v428_v32 = vmul.f32 %v6029_v31, %v400_v1  ;;  %v6581_v31 = vmov 0  }
 0x336   :  { %851 = vmatprep.mubr.bf16.mxu0 %v6581_v31 }
 0x337   :  { %v438_v37 = vmul.f32 %v5010_v33, %v428_v32  ;;  %v5881_v32 = vld [vmem:[%s8055_s11 + $0x90] ss:$12 sps:$4 sm:$0xff]  }
 0x338   :  { %v6031_v34 = vpop.eup %6030  ;;  %832 = vmatpush1.bf16.msra.mxu0 %v5881_v32 }
 0x339   :  { %v6033_v35 = vpop.eup %6032  ;;  %v429_v36 = vmul.f32 %v6031_v34, %v401_v7  ;;  %v448_v42 = vadd.f32 %v5011_v38, %v438_v37  ;;  %v5888_v34 = vld [vmem:[%s8055_s11 + $0x98] ss:$12 sps:$4 sm:$0xff]  }
 0x33a   :  { %v430_v39 = vmul.f32 %v6033_v35, %v402_v6  ;;  %v5885_v35 = vld [vmem:[%s8055_s11 + $0xa8] ss:$12 sps:$4 sm:$0xff]  }
 0x33b   :  { %v439_v40 = vmul.f32 %v5010_v33, %v429_v36  ;;  %v5889_v36 = vld [vmem:[%s8055_s11 + $0xb0] ss:$12 sps:$4 sm:$0xff]  }
 0x33c   :  { %v6035_v41 = vpop.eup %6034  ;;  %v440_v45 = vmul.f32 %v5010_v33, %v430_v39 }
 0x33d   :  { %v449_v43 = vadd.f32 %v5011_v38, %v439_v40  ;;  %v431_v44 = vmul.f32 %v6035_v41, %v403_v10 }
 0x33e   :  { %v450_v48 = vadd.f32 %v5011_v38, %v440_v45 }
 0x33f   :  { %v452_v46 = vpack.c.bf16 %v449_v43, %v448_v42  ;;  %v441_v47 = vmul.f32 %v5010_v33, %v431_v44  ;;  %v5887_v33 = vld [vmem:[%s8055_s11 + $0xac] ss:$12 sps:$4 sm:$0xff]  }
 0x340   :  { %833 = vmatprep.subr.bf16.mxu0 %v5887_v33 }
 0x341   :  { %5511 = vmatprep.mubr.bf16.mxu1 %v452_v46  ;;  %v451_v49 = vadd.f32 %v5011_v38, %v441_v47  ;;  %834 = vmatpush1.bf16.msra.mxu0 %v5885_v35 }
 0x343   :  { %v453_v50 = vpack.c.bf16 %v451_v49, %v450_v48 }
 0x345   :  { %5512 = vmatmul.mubr.bf16.vlgmr.msra.gmra.mrb[0].mxu1 %v453_v50  ;;  %v5021_v50 = vld [vmem:[%s8103_s15] ss:$0 sm:$0xff] }
 0x346   :  { %5516 = vmatpush3.bf16.msra.mxu1 %v5864_v63 }
 0x347   :  { %5517 = vmatprep.subr.bf16.mxu1 %v5868_v18 }
 0x34a   :  { %5518 = vmatpush3.bf16.msra.mxu1 %v5868_v18 }
 0x34b   :  { %5519 = vmatprep.subr.bf16.mxu1 %v5872_v21 }
 0x34e   :  { %5520 = vmatpush3.bf16.msra.mxu1 %v5872_v21 }
 0x34f   :  { %5521 = vmatprep.subr.bf16.mxu1 %v5876_v24 }
 0x352   :  { %5522 = vmatpush3.bf16.msra.mxu1 %v5876_v24 }
 0x353   :  { %5523 = vmatprep.subr.bf16.mxu1 %v5880_v27 }
 0x356   :  { %5524 = vmatpush3.bf16.msra.mxu1 %v5880_v27 }
 0x357   :  { %5525 = vmatprep.subr.bf16.mxu1 %v5884_v30 }
 0x35a   :  { %5526 = vmatpush3.bf16.msra.mxu1 %v5884_v30 }
 0x35b   :  { %5527 = vmatprep.subr.bf16.mxu1 %v5888_v34 }
 0x35e   :  { %5528 = vmatpush3.bf16.msra.mxu1 %v5888_v34 }
 0x35f   :  { %5529 = vmatprep.subr.bf16.mxu1 %v5889_v36 }
 0x362   :  { %5530 = vmatpush3.bf16.msra.mxu1 %v5889_v36 }
 0x418   :  { %v5513_v52 = vpop.f32.mrb[0].mxu1 }
 0x419   :  { %v559_v53 = vpop.f32.mrb[1].mxu1  ;;  %v568_v58 = vadd.f32 %v5513_v52, %v5012_v51 }
 0x41a   :  { %v560_v54 = vadd.f32 %v5012_v51, %v559_v53  ;;  %v5514_v55 = vpop.f32.mrb[2].mxu1 }
 0x41b   :  { %v562_v56 = vpop.f32.mrb[3].mxu1  ;;  %v571_v59 = vadd.f32 %v5514_v55, %v5012_v51 }
 0x41c   :  { %v563_v57 = vadd.f32 %v5012_v51, %v562_v56  ;;  %576 = vadd.xlane.f32.xlu0 %v560_v54  ;;  %v5022_v56 = vld [vmem:[%s8054_s10] ss:$0 sm:$0xff]  ;;  %s6584_s10 = smov 96  }
 0x41e   :  { %578 = vadd.xlane.f32.xlu1 %v563_v57 }
 0x420   :  { %580 = vadd.xlane.f32.xlu0 %v568_v58 }
 0x422   :  { %582 = vadd.xlane.f32.xlu1 %v571_v59 }
 0x4a9   :  { %v577_v1 = vpop.xlane.xlu0 %576 }
 0x4aa   :  { %v584_v2 = vmul.f32 0.0078125, %v577_v1 }
 0x4ab   :  { %v579_v3 = vpop.xlane.xlu1 %578 }
 0x4ac   :  { %v585_v4 = vmul.f32 0.0078125, %v579_v3  ;;  %v6918_v5 = vsub.f32 %v560_v54, %v584_v2 }
 0x4ad   :  { %v581_v6 = vpop.xlane.xlu0 %580 }
 0x4ae   :  { %v586_v7 = vmul.f32 0.0078125, %v581_v6  ;;  %v592_v8 = vmul.f32 %v6918_v5, %v6918_v5  ;;  %v6922_v9 = vsub.f32 %v563_v57, %v585_v4  ;;  %v676_v6 = vlaneseq }
 0x4af   :  { %v583_v10 = vpop.xlane.xlu1 %582 }
 0x4b0   :  { %v587_v11 = vmul.f32 0.0078125, %v583_v10  ;;  %596 = vadd.xlane.f32.xlu0 %v592_v8  ;;  %v593_v12 = vmul.f32 %v6922_v9, %v6922_v9  ;;  %v6926_v13 = vsub.f32 %v568_v58, %v586_v7  ;;  %v7021_v7 = vshrl.u32 %v676_v6, 7 }
 0x4b2   :  { %598 = vadd.xlane.f32.xlu1 %v593_v12  ;;  %v594_v14 = vmul.f32 %v6926_v13, %v6926_v13  ;;  %v6930_v15 = vsub.f32 %v571_v59, %v587_v11  ;;  %v7024_v8 = vsub.s32 0, %v7021_v7  ;;  %v7027_v10 = vsub.s32 1, %v7021_v7 }
 0x4b3   :  { %v686_v11 = vsub.s32 2, %v7021_v7 }
 0x4b4   :  { %600 = vadd.xlane.f32.xlu0 %v594_v14  ;;  %v595_v16 = vmul.f32 %v6930_v15, %v6930_v15 }
 0x4b6   :  { %602 = vadd.xlane.f32.xlu1 %v595_v16 }
 0x53d   :  { %v597_v37 = vpop.xlane.xlu0 %596 }
 0x53e   :  { %v604_v38 = vmul.f32 0.0078125, %v597_v37 }
 0x53f   :  { %v599_v39 = vpop.xlane.xlu1 %598 }
 0x540   :  { %v608_v40 = vadd.f32 1e-05, %v604_v38  ;;  %v605_v41 = vmul.f32 0.0078125, %v599_v39 }
 0x541   :  { %v601_v42 = vpop.xlane.xlu0 %600 }
 0x542   :  { %6036 = vrsqrt.f32 %v608_v40  ;;  %v609_v43 = vadd.f32 1e-05, %v605_v41  ;;  %v606_v44 = vmul.f32 0.0078125, %v601_v42 }
 0x543   :  { %v603_v45 = vpop.xlane.xlu1 %602 }
 0x544   :  { %6038 = vrsqrt.f32 %v609_v43  ;;  %v610_v46 = vadd.f32 1e-05, %v606_v44  ;;  %v607_v47 = vmul.f32 0.0078125, %v603_v45 }
 0x546   :  { %6040 = vrsqrt.f32 %v610_v46  ;;  %v611_v48 = vadd.f32 1e-05, %v607_v47 }
 0x548   :  { %6042 = vrsqrt.f32 %v611_v48 }
 0x54c   :  { %v6037_v49 = vpop.eup %6036 }
 0x54d   :  { %v616_v51 = vmul.f32 %v6037_v49, %v6918_v5  ;;  %v6582_v5 = vmov 0.0  }
 0x54e   :  { %v6039_v52 = vpop.eup %6038  ;;  %5535 = vmatprep.subr.bf16.mxu1 %v6582_v5  ;;  %5541 = vmatprep.subr.bf16.mxu0 %v6582_v5 }
 0x54f   :  { %v617_v53 = vmul.f32 %v6039_v52, %v6922_v9  ;;  %v626_v54 = vmul.f32 %v5021_v50, %v616_v51  ;;  %v674_v9 = vld [vmem:[#allocation12] sm:$0x7] }
 0x550   :  { %v6041_v55 = vpop.eup %6040  ;;  %v679_v12 = vrot.slane %v674_v9, %v7024_v8  ;;  %v683_v14 = vrot.slane %v674_v9, %v7027_v10  ;;  %v687_v16 = vrot.slane %v674_v9, %v686_v11 }
 0x551   :  { %v627_v57 = vmul.f32 %v5021_v50, %v617_v53  ;;  %v618_v58 = vmul.f32 %v6041_v55, %v6926_v13  ;;  %v7001_v60 = vadd.f32 %v5022_v56, %v626_v54 }
 0x552   :  { %v6043_v59 = vpop.eup %6042 }
 0x553   :  { %v7003_v61 = vadd.f32 %v5022_v56, %v627_v57  ;;  %v619_v62 = vmul.f32 %v6043_v59, %v6930_v15  ;;  %v628_v63 = vmul.f32 %v5021_v50, %v618_v58 }
 0x555   :  { %v640_v0 = vpack.c.bf16 %v7003_v61, %v7001_v60  ;;  %v629_v1 = vmul.f32 %v5021_v50, %v619_v62  ;;  %v7008_v2 = vadd.f32 %v5022_v56, %v628_v63 }
 0x557   :  { %852 = vmatmul.mubr.bf16.vlgmr.msra.gmra.mrb[4].mxu0 %v640_v0  ;;  %5531 = vmatprep.mubr.bf16.mxu1 %v640_v0  ;;  %v7010_v3 = vadd.f32 %v5022_v56, %v629_v1 }
 0x558   :  { %861 = vmatprep.mubr.bf16.mxu0 %v6581_v31 }
 0x559   :  { %v641_v4 = vpack.c.bf16 %v7010_v3, %v7008_v2 }
 0x55b   :  { %5532 = vmatmul.mubr.bf16.vlgmr.msra.gmra.mrb[4].mxu1 %v641_v4 }
 0x55c   :  { %5537 = vmatprep.mubr.msk.bf16.mxu1 %vm6583_vm0, %v6582_v5 }
 0x55f   :  { %862 = vmatmul.mubr.bf16.gmra.mrb[8].mxu0 %v641_v4 }
 0x560   :  { %5543 = vmatprep.mubr.msk.bf16.mxu0 %vm6583_vm0, %v6582_v5 }
 0x62a   :  { %v853_v13 = vpop.f32.mrb[4].mxu0 }
 0x62b   :  { %v855_v15 = vpop.f32.mrb[5].mxu0  ;;  %v854_v18 = vadd.f32 %v853_v13, %v679_v12 }
 0x62c   :  { %v857_v17 = vpop.f32.mrb[6].mxu0  ;;  %v856_v21 = vadd.f32 %v855_v15, %v683_v14 }
 0x62d   :  { %v858_v19 = vadd.f32 %v857_v17, %v679_v12  ;;  %v859_v20 = vpop.f32.mrb[7].mxu0 }
 0x62e   :  { %v860_v22 = vadd.f32 %v859_v20, %v683_v14  ;;  %v5533_v23 = vpop.f32.mrb[4].mxu1 }
 0x62f   :  { %v921_v24 = vpack.c.bf16 %v858_v19, %v854_v18  ;;  %v915_v25 = vadd.f32 %v5533_v23, %v687_v16  ;;  %v906_v26 = vpop.f32.mrb[5].mxu1 }
 0x630   :  { %v923_v27 = vpack.c.bf16 %v860_v22, %v856_v21  ;;  %v5534_v28 = vpop.f32.mrb[6].mxu1  ;;  %v907_v32 = vadd.f32 %v906_v26, %v687_v16 }
 0x631   :  { %v918_v29 = vadd.f32 %v5534_v28, %v687_v16  ;;  %1048 = vrot.lane.b32.xlu1 %v921_v24, %s6584_s10  ;;  %v909_v30 = vpop.f32.mrb[7].mxu1 }
 0x632   :  { %v910_v33 = vadd.f32 %v909_v30, %v687_v16  ;;  %1051 = vrot.lane.b32.xlu0 %v923_v27, %s6584_s10  ;;  %v863_v34 = vpop.f32.mrb[8].mxu0  ;;  %v932_v35 = vsel %vm927_vm1, %v923_v27, 0 }
 0x633   :  { %v7037_v36 = vpack.c.bf16 %v918_v29, %v915_v25  ;;  %v865_v37 = vpop.f32.mrb[9].mxu0  ;;  %5536 = vmatpush3.bf16.xpose.msra.mxu1 %v932_v35  ;;  %v864_v40 = vadd.f32 %v863_v34, %v679_v12 }
 0x634   :  { %v7039_v38 = vpack.c.bf16 %v910_v33, %v907_v32  ;;  %v867_v39 = vpop.f32.mrb[10].mxu0  ;;  %5547 = vmatprep.subr.bf16.mxu1 %v6582_v5  ;;  %v866_v43 = vadd.f32 %v865_v37, %v683_v14 }
 0x635   :  { %v868_v41 = vadd.f32 %v867_v39, %v679_v12  ;;  %1186 = vrot.lane.b32.xlu1 %v923_v27, %s8097_s21  ;;  %v869_v42 = vpop.f32.mrb[11].mxu0 }
 0x636   :  { %v870_v44 = vadd.f32 %v869_v42, %v683_v14  ;;  %1320 = vrot.lane.b32.xlu0 %v923_v27, %s6585_s29  ;;  %5542 = vmatpush3.bf16.msra.mxu0 %v7039_v38 }
 0x637   :  { %v922_v45 = vpack.c.bf16 %v868_v41, %v864_v40  ;;  %5553 = vmatprep.subr.bf16.mxu0 %v6582_v5 }
 0x638   :  { %v924_v46 = vpack.c.bf16 %v870_v44, %v866_v43 }
 0x639   :  { %1184 = vrot.lane.b32.xlu1 %v921_v24, %s8097_s21 }
 0x63a   :  { %5538 = vmatmul.mubr.msk.bf16.vlgmr.msra.gmra.mrb[8].mxu1 %vm927_vm1, %v921_v24  ;;  %1574 = vrot.lane.b32.xlu0 %v924_v46, %s6584_s10  ;;  %v1456_v56 = vsel %vm927_vm1, %v924_v46, 0 }
 0x63b   :  { %5549 = vmatprep.mubr.msk.bf16.mxu1 %vm6583_vm0, %v6582_v5 }
 0x63d   :  { %1318 = vrot.lane.b32.xlu1 %v921_v24, %s6585_s29 }
 0x63e   :  { %1708 = vrot.lane.b32.xlu0 %v924_v46, %s8097_s21 }
 0x641   :  { %1571 = vrot.lane.b32.xlu1 %v922_v45, %s6584_s10 }
 0x642   :  { %1841 = vrot.lane.b32.xlu0 %v924_v46, %s6585_s29 }
 0x645   :  { %1706 = vrot.lane.b32.xlu1 %v922_v45, %s8097_s21 }
 0x649   :  { %1839 = vrot.lane.b32.xlu1 %v922_v45, %s6585_s29 }
 0x6a3   :  { %v1049_v47 = vpop.permute.xlu1 %1048 }
 0x6a4   :  { %v1052_v48 = vpop.permute.xlu0 %1051 }
 0x6a5   :  { %v1057_v49 = vsel %vm927_vm1, %v1052_v48, 0 }
 0x6a6   :  { %5548 = vmatpush3.bf16.xpose.msra.mxu1 %v1057_v49 }
 0x6a7   :  { %5559 = vmatprep.subr.bf16.mxu1 %v6582_v5  ;;  %v1187_v50 = vpop.permute.xlu1 %1186 }
 0x6a8   :  { %v1192_v51 = vsel %vm927_vm1, %v1187_v50, 0  ;;  %v1321_v52 = vpop.permute.xlu0 %1320 }
 0x6a9   :  { %v1326_v54 = vsel %vm927_vm1, %v1321_v52, 0 }
 0x6ab   :  { %v1185_v53 = vpop.permute.xlu1 %1184 }
 0x6ac   :  { %v1575_v57 = vpop.permute.xlu0 %1574 }
 0x6ad   :  { %5550 = vmatmul.mubr.msk.bf16.vlgmr.msra.gmra.mrb[12].mxu1 %vm927_vm1, %v1049_v47  ;;  %v1580_v58 = vsel %vm927_vm1, %v1575_v57, 0 }
 0x6ae   :  { %5560 = vmatpush3.bf16.xpose.msra.mxu1 %v1192_v51  ;;  %5561 = vmatprep.mubr.msk.bf16.mxu1 %vm6583_vm0, %v6582_v5 }
 0x6af   :  { %5571 = vmatprep.subr.bf16.mxu1 %v6582_v5  ;;  %v1319_v55 = vpop.permute.xlu1 %1318 }
 0x6b0   :  { %v1709_v59 = vpop.permute.xlu0 %1708 }
 0x6b1   :  { %v1714_v63 = vsel %vm927_vm1, %v1709_v59, 0 }
 0x6b3   :  { %v1572_v62 = vpop.permute.xlu1 %1571 }
 0x6b4   :  { %v1842_v0 = vpop.permute.xlu0 %1841 }
 0x6b5   :  { %5562 = vmatmul.mubr.msk.bf16.vlgmr.msra.gmra.mrb[16].mxu1 %vm927_vm1, %v1185_v53  ;;  %v1847_v4 = vsel %vm927_vm1, %v1842_v0, 0 }
 0x6b6   :  { %5572 = vmatpush3.bf16.xpose.msra.mxu1 %v1326_v54  ;;  %5573 = vmatprep.mubr.msk.bf16.mxu1 %vm6583_vm0, %v6582_v5 }
 0x6b7   :  { %5583 = vmatprep.subr.bf16.mxu1 %v6582_v5  ;;  %v1707_v1 = vpop.permute.xlu1 %1706 }
 0x6bb   :  { %v1840_v6 = vpop.permute.xlu1 %1839 }
 0x6bd   :  { %5574 = vmatmul.mubr.msk.bf16.vlgmr.msra.gmra.mrb[20].mxu1 %vm927_vm1, %v1319_v55 }
 0x6be   :  { %5584 = vmatpush3.bf16.xpose.msra.mxu1 %v1456_v56  ;;  %5585 = vmatprep.mubr.msk.bf16.mxu1 %vm6583_vm0, %v6582_v5 }
 0x6bf   :  { %5595 = vmatprep.subr.bf16.mxu1 %v6582_v5 }
 0x6c5   :  { %5586 = vmatmul.mubr.msk.bf16.vlgmr.msra.gmra.mrb[24].mxu1 %vm927_vm1, %v922_v45 }
 0x6c6   :  { %5596 = vmatpush3.bf16.xpose.msra.mxu1 %v1580_v58  ;;  %5597 = vmatprep.mubr.msk.bf16.mxu1 %vm6583_vm0, %v6582_v5 }
 0x6c7   :  { %5607 = vmatprep.subr.bf16.mxu1 %v6582_v5 }
 0x6cd   :  { %5598 = vmatmul.mubr.msk.bf16.vlgmr.msra.gmra.mrb[28].mxu1 %vm927_vm1, %v1572_v62 }
 0x6ce   :  { %5608 = vmatpush3.bf16.xpose.msra.mxu1 %v1714_v63  ;;  %5609 = vmatprep.mubr.msk.bf16.mxu1 %vm6583_vm0, %v6582_v5 }
 0x6cf   :  { %5619 = vmatprep.subr.bf16.mxu1 %v6582_v5 }
 0x6d5   :  { %5610 = vmatmul.mubr.msk.bf16.vlgmr.msra.gmra.mrb[32].mxu1 %vm927_vm1, %v1707_v1 }
 0x6d6   :  { %5620 = vmatpush3.bf16.xpose.msra.mxu1 %v1847_v4  ;;  %5621 = vmatprep.mubr.msk.bf16.mxu1 %vm6583_vm0, %v6582_v5 }
 0x6dd   :  { %5622 = vmatmul.mubr.msk.bf16.vlgmr.msra.gmra.mrb[36].mxu1 %vm927_vm1, %v1840_v6 }
 0x70d   :  { %v968_v9 = vpop.f32.mrb[8].mxu1 }
 0x70e   :  { %v975_v12 = vmul.f32 0.17677669, %v968_v9  ;;  %v5539_v13 = vpop.f32.mrb[9].mxu1 }
 0x70f   :  { %v971_v14 = vpop.f32.mrb[10].mxu1 }
 0x710   :  { %v976_v15 = vmul.f32 0.17677669, %v971_v14  ;;  %v5540_v16 = vpop.f32.mrb[11].mxu1  ;;  %v978_v17 = vsel %vm977_vm2, %v975_v12, -inf }
 0x711   :  { %979 = vmax.xlane.f32.xlu0 %v978_v17 }
 0x712   :  { %v981_v18 = vsel %vm977_vm2, %v976_v15, -inf }
 0x713   :  { %982 = vmax.xlane.f32.xlu1 %v981_v18 }
 0x780   :  { %v1093_v19 = vpop.f32.mrb[12].mxu1 }
 0x781   :  { %v7091_v20 = vmul.f32 0.17677669, %v1093_v19  ;;  %v5551_v21 = vpop.f32.mrb[13].mxu1 }
 0x782   :  { %v1096_v22 = vpop.f32.mrb[14].mxu1 }
 0x783   :  { %v7093_v23 = vmul.f32 0.17677669, %v1096_v22  ;;  %v5552_v24 = vpop.f32.mrb[15].mxu1  ;;  %v1102_v25 = vsel %vm977_vm2, %v7091_v20, -inf }
 0x784   :  { %1103 = vmax.xlane.f32.xlu0 %v1102_v25 }
 0x785   :  { %v1105_v26 = vsel %vm977_vm2, %v7093_v23, -inf }
 0x788   :  { %1106 = vmax.xlane.f32.xlu0 %v1105_v26  ;;  %v1228_v27 = vpop.f32.mrb[16].mxu1 }
 0x789   :  { %v7099_v28 = vmul.f32 0.17677669, %v1228_v27  ;;  %v5563_v29 = vpop.f32.mrb[17].mxu1 }
 0x78a   :  { %v1231_v30 = vpop.f32.mrb[18].mxu1 }
 0x78b   :  { %v7101_v32 = vmul.f32 0.17677669, %v1231_v30  ;;  %v5564_v33 = vpop.f32.mrb[19].mxu1  ;;  %v1237_v34 = vsel %vm977_vm2, %v7099_v28, -inf }
 0x78c   :  { %1238 = vmax.xlane.f32.xlu0 %v1237_v34 }
 0x78d   :  { %v1240_v35 = vsel %vm977_vm2, %v7101_v32, -inf }
 0x78e   :  { %1241 = vmax.xlane.f32.xlu1 %v1240_v35 }
 0x790   :  { %v1362_v37 = vpop.f32.mrb[20].mxu1 }
 0x791   :  { %v7107_v39 = vmul.f32 0.17677669, %v1362_v37  ;;  %v5575_v40 = vpop.f32.mrb[21].mxu1 }
 0x792   :  { %v1365_v41 = vpop.f32.mrb[22].mxu1 }
 0x793   :  { %v7109_v42 = vmul.f32 0.17677669, %v1365_v41  ;;  %v5576_v43 = vpop.f32.mrb[23].mxu1  ;;  %v1371_v44 = vsel %vm977_vm2, %v7107_v39, -inf }
 0x794   :  { %1372 = vmax.xlane.f32.xlu0 %v1371_v44 }
 0x795   :  { %v1374_v45 = vsel %vm977_vm2, %v7109_v42, -inf }
 0x796   :  { %1375 = vmax.xlane.f32.xlu1 %v1374_v45 }
 0x798   :  { %v1492_v46 = vpop.f32.mrb[24].mxu1 }
 0x799   :  { %v7115_v47 = vmul.f32 0.17677669, %v1492_v46  ;;  %v5587_v48 = vpop.f32.mrb[25].mxu1 }
 0x79a   :  { %v1495_v49 = vpop.f32.mrb[26].mxu1 }
 0x79b   :  { %v7117_v50 = vmul.f32 0.17677669, %v1495_v49  ;;  %v5588_v51 = vpop.f32.mrb[27].mxu1  ;;  %v1501_v52 = vsel %vm977_vm2, %v7115_v47, -inf }
 0x79c   :  { %1502 = vmax.xlane.f32.xlu0 %v1501_v52 }
 0x79d   :  { %v1504_v53 = vsel %vm977_vm2, %v7117_v50, -inf }
 0x79e   :  { %1505 = vmax.xlane.f32.xlu1 %v1504_v53  ;;  %v980_v54 = vpop.xlane.xlu0 %979 }
 0x79f   :  { %v984_v55 = vsub.f32 %v975_v12, %v980_v54 }
 0x7a0   :  { %v983_v56 = vpop.xlane.xlu1 %982  ;;  %v1616_v57 = vpop.f32.mrb[28].mxu1 }
 0x7a1   :  { %v986_v58 = vmul.f32 1.442695, %v984_v55  ;;  %v985_v59 = vsub.f32 %v976_v15, %v983_v56  ;;  %v7123_v62 = vmul.f32 0.17677669, %v1616_v57  ;;  %v5599_v63 = vpop.f32.mrb[29].mxu1 }
 0x7a2   :  { %v1619_v0 = vpop.f32.mrb[30].mxu1 }
 0x7a3   :  { %6044 = vpow2.f32 %v986_v58  ;;  %v988_v1 = vmul.f32 1.442695, %v985_v59  ;;  %v7125_v4 = vmul.f32 0.17677669, %v1619_v0  ;;  %v5600_v6 = vpop.f32.mrb[31].mxu1  ;;  %v1625_v9 = vsel %vm977_vm2, %v7123_v62, -inf }
 0x7a4   :  { %1626 = vmax.xlane.f32.xlu0 %v1625_v9 }
 0x7a5   :  { %6046 = vpow2.f32 %v988_v1  ;;  %v1628_v12 = vsel %vm977_vm2, %v7125_v4, -inf }
 0x7a6   :  { %1629 = vmax.xlane.f32.xlu1 %v1628_v12 }
 0x7a8   :  { %v1750_v13 = vpop.f32.mrb[32].mxu1 }
 0x7a9   :  { %v7131_v14 = vmul.f32 0.17677669, %v1750_v13  ;;  %v5611_v15 = vpop.f32.mrb[33].mxu1 }
 0x7aa   :  { %v1753_v16 = vpop.f32.mrb[34].mxu1 }
 0x7ab   :  { %v7133_v17 = vmul.f32 0.17677669, %v1753_v16  ;;  %v5612_v18 = vpop.f32.mrb[35].mxu1  ;;  %v1759_v19 = vsel %vm977_vm2, %v7131_v14, -inf }
 0x7ac   :  { %1760 = vmax.xlane.f32.xlu0 %v1759_v19 }
 0x7ad   :  { %v7137_v21 = vpop.eup %6044  ;;  %v1762_v22 = vsel %vm977_vm2, %v7133_v17, -inf }
 0x7ae   :  { %1763 = vmax.xlane.f32.xlu1 %v1762_v22  ;;  %v990_v24 = vsel %vm977_vm2, %v7137_v21, 0.0 }
 0x7af   :  { %v7143_v25 = vpop.eup %6046 }
 0x7b0   :  { %v1883_v26 = vpop.f32.mrb[36].mxu1  ;;  %991 = vadd.xlane.f32.xlu0 %v990_v24  ;;  %v993_v27 = vsel %vm977_vm2, %v7143_v25, 0.0 }
 0x7b1   :  { %v7147_v29 = vmul.f32 0.17677669, %v1883_v26  ;;  %v5623_v30 = vpop.f32.mrb[37].mxu1 }
 0x7b2   :  { %994 = vadd.xlane.f32.xlu1 %v993_v27  ;;  %v1886_v33 = vpop.f32.mrb[38].mxu1 }
 0x7b3   :  { %v7149_v34 = vmul.f32 0.17677669, %v1886_v33  ;;  %v5624_v35 = vpop.f32.mrb[39].mxu1  ;;  %v1892_v37 = vsel %vm977_vm2, %v7147_v29, -inf }
 0x7b4   :  { %1893 = vmax.xlane.f32.xlu0 %v1892_v37 }
 0x7b5   :  { %v1895_v40 = vsel %vm977_vm2, %v7149_v34, -inf }
 0x7b6   :  { %1896 = vmax.xlane.f32.xlu1 %v1895_v40 }
 0x7c7   :  { %1260 = vrot.lane.b32.xlu1 %v7039_v38, %s8097_s21 }
 0x7ca   :  { %1126 = vrot.lane.b32.xlu0 %v7039_v38, %s6584_s10 }
 0x811   :  { %v1104_v41 = vpop.xlane.xlu0 %1103 }
 0x812   :  { %v1108_v43 = vsub.f32 %v7091_v20, %v1104_v41 }
 0x814   :  { %v1110_v44 = vmul.f32 1.442695, %v1108_v43 }
 0x815   :  { %v1107_v45 = vpop.xlane.xlu0 %1106 }
 0x816   :  { %6048 = vpow2.f32 %v1110_v44  ;;  %v1109_v46 = vsub.f32 %v7093_v23, %v1107_v45 }
 0x818   :  { %v1112_v48 = vmul.f32 1.442695, %v1109_v46 }
 0x819   :  { %v1239_v49 = vpop.xlane.xlu0 %1238 }
 0x81a   :  { %6050 = vpow2.f32 %v1112_v48  ;;  %v1243_v51 = vsub.f32 %v7099_v28, %v1239_v49 }
 0x81b   :  { %v1242_v52 = vpop.xlane.xlu1 %1241 }
 0x81c   :  { %v1245_v53 = vmul.f32 1.442695, %v1243_v51  ;;  %v1244_v54 = vsub.f32 %v7101_v32, %v1242_v52 }
 0x81e   :  { %6052 = vpow2.f32 %v1245_v53  ;;  %v1247_v55 = vmul.f32 1.442695, %v1244_v54 }
 0x820   :  { %v7163_v56 = vpop.eup %6048  ;;  %6054 = vpow2.f32 %v1247_v55 }
 0x821   :  { %v1373_v20 = vpop.xlane.xlu0 %1372  ;;  %v1114_v57 = vsel %vm977_vm2, %v7163_v56, 0.0 }
 0x822   :  { %v1377_v23 = vsub.f32 %v7107_v39, %v1373_v20  ;;  %1115 = vadd.xlane.f32.xlu0 %v1114_v57 }
 0x823   :  { %v1376_v58 = vpop.xlane.xlu1 %1375 }
 0x824   :  { %v7168_v59 = vpop.eup %6050  ;;  %v1379_v28 = vmul.f32 1.442695, %v1377_v23  ;;  %v1378_v63 = vsub.f32 %v7109_v42, %v1376_v58 }
 0x825   :  { %v1117_v32 = vsel %vm977_vm2, %v7168_v59, 0.0 }
 0x826   :  { %6056 = vpow2.f32 %v1379_v28  ;;  %v1381_v0 = vmul.f32 1.442695, %v1378_v63  ;;  %1118 = vadd.xlane.f32.xlu1 %v1117_v32 }
 0x828   :  { %v7173_v1 = vpop.eup %6052  ;;  %6058 = vpow2.f32 %v1381_v0 }
 0x829   :  { %v1503_v6 = vpop.xlane.xlu0 %1502  ;;  %v1249_v39 = vsel %vm977_vm2, %v7173_v1, 0.0 }
 0x82a   :  { %v7177_v9 = vpop.eup %6054  ;;  %v1507_v12 = vsub.f32 %v7115_v47, %v1503_v6  ;;  %1250 = vadd.xlane.f32.xlu0 %v1249_v39 }
 0x82b   :  { %v1506_v13 = vpop.xlane.xlu1 %1505  ;;  %v1252_v42 = vsel %vm977_vm2, %v7177_v9, 0.0 }
 0x82c   :  { %v1509_v15 = vmul.f32 1.442695, %v1507_v12  ;;  %v1508_v16 = vsub.f32 %v7117_v50, %v1506_v13  ;;  %1253 = vadd.xlane.f32.xlu1 %v1252_v42 }
 0x82e   :  { %6060 = vpow2.f32 %v1509_v15  ;;  %v1511_v18 = vmul.f32 1.442695, %v1508_v16 }
 0x830   :  { %v7183_v19 = vpop.eup %6056  ;;  %6062 = vpow2.f32 %v1511_v18 }
 0x831   :  { %v1627_v22 = vpop.xlane.xlu0 %1626  ;;  %v1383_v24 = vsel %vm977_vm2, %v7183_v19, 0.0 }
 0x832   :  { %v7187_v26 = vpop.eup %6058  ;;  %v1631_v47 = vsub.f32 %v7123_v62, %v1627_v22  ;;  %1384 = vadd.xlane.f32.xlu0 %v1383_v24 }
 0x833   :  { %v1630_v27 = vpop.xlane.xlu1 %1629  ;;  %v1386_v30 = vsel %vm977_vm2, %v7187_v26, 0.0 }
 0x834   :  { %v1633_v50 = vmul.f32 1.442695, %v1631_v47  ;;  %v1632_v33 = vsub.f32 %v7125_v4, %v1630_v27  ;;  %1387 = vadd.xlane.f32.xlu1 %v1386_v30 }
 0x836   :  { %6064 = vpow2.f32 %v1633_v50  ;;  %v1635_v35 = vmul.f32 1.442695, %v1632_v33 }
 0x838   :  { %v7193_v37 = vpop.eup %6060  ;;  %6066 = vpow2.f32 %v1635_v35 }
 0x839   :  { %v1761_v40 = vpop.xlane.xlu0 %1760  ;;  %v1513_v41 = vsel %vm977_vm2, %v7193_v37, 0.0 }
 0x83a   :  { %v7197_v43 = vpop.eup %6062  ;;  %1514 = vadd.xlane.f32.xlu0 %v1513_v41  ;;  %v1765_v13 = vsub.f32 %v7131_v14, %v1761_v40 }
 0x83b   :  { %v1764_v62 = vpop.xlane.xlu1 %1763  ;;  %v1516_v44 = vsel %vm977_vm2, %v7197_v43, 0.0 }
 0x83c   :  { %v1766_v45 = vsub.f32 %v7133_v17, %v1764_v62  ;;  %1517 = vadd.xlane.f32.xlu1 %v1516_v44  ;;  %v1767_v42 = vmul.f32 1.442695, %v1765_v13 }
 0x83d   :  { %v992_v4 = vpop.xlane.xlu0 %991 }
 0x83e   :  { %v1769_v46 = vmul.f32 1.442695, %v1766_v45  ;;  %6068 = vrcp.f32 %v992_v4 }
 0x83f   :  { %v995_v48 = vpop.xlane.xlu1 %994 }
 0x840   :  { %v7202_v49 = vpop.eup %6064  ;;  %6070 = vpow2.f32 %v1769_v46 }
 0x841   :  { %6072 = vrcp.f32 %v995_v48  ;;  %v1894_v51 = vpop.xlane.xlu0 %1893  ;;  %v1637_v52 = vsel %vm977_vm2, %v7202_v49, 0.0 }
 0x842   :  { %v7206_v53 = vpop.eup %6066  ;;  %v1898_v54 = vsub.f32 %v7147_v29, %v1894_v51  ;;  %1638 = vadd.xlane.f32.xlu1 %v1637_v52 }
 0x843   :  { %v1897_v55 = vpop.xlane.xlu1 %1896  ;;  %v1640_v57 = vsel %vm977_vm2, %v7206_v53, 0.0 }
 0x844   :  { %v1900_v17 = vmul.f32 1.442695, %v1898_v54  ;;  %v1899_v20 = vsub.f32 %v7149_v34, %v1897_v55 }
 0x845   :  { %v1127_v39 = vpop.permute.xlu0 %1126 }
 0x846   :  { %6074 = vpow2.f32 %v1900_v17  ;;  %v1902_v23 = vmul.f32 1.442695, %v1899_v20  ;;  %1641 = vadd.xlane.f32.xlu1 %v1640_v57 }
 0x847   :  { %v1261_v16 = vpop.permute.xlu1 %1260 }
 0x848   :  { %6076 = vpow2.f32 %v1902_v23  ;;  %v6069_v58 = vpop.eup %6068 }
 0x849   :  { %v998_v29 = vmul.f32 %v6069_v58, %v7137_v21  ;;  %6078 = vpow2.f32 %v1767_v42 }
 0x84a   :  { %v7212_v28 = vpop.eup %6070 }
 0x84b   :  { %v6073_v63 = vpop.eup %6072  ;;  %v1774_v32 = vsel %vm977_vm2, %v7212_v28, 0.0 }
 0x84c   :  { %v999_v0 = vmul.f32 %v6073_v63, %v7143_v25  ;;  %1775 = vadd.xlane.f32.xlu1 %v1774_v32 }
 0x84e   :  { %v1000_v34 = vpack.c.bf16 %v999_v0, %v998_v29 }
 0x850   :  { %v7218_v6 = vpop.eup %6074  ;;  %5544 = vmatmul.mubr.msk.bf16.vlgmr.msra.gmra.mrb[12].mxu0 %vm977_vm2, %v1000_v34  ;;  %1394 = vrot.lane.b32.xlu0 %v7039_v38, %s6585_s29 }
 0x851   :  { %5554 = vmatpush3.bf16.msra.mxu0 %v1127_v39  ;;  %v1904_v12 = vsel %vm977_vm2, %v7218_v6, 0.0  ;;  %5555 = vmatprep.mubr.msk.bf16.mxu0 %vm6583_vm0, %v6582_v5 }
 0x852   :  { %v7227_v21 = vpop.eup %6076  ;;  %1905 = vadd.xlane.f32.xlu1 %v1904_v12  ;;  %5565 = vmatprep.subr.bf16.mxu0 %v6582_v5 }
 0x853   :  { %v1907_v25 = vsel %vm977_vm2, %v7227_v21, 0.0  ;;  %v7235_v38 = vpop.eup %6078 }
 0x854   :  { %v1771_v15 = vsel %vm977_vm2, %v7235_v38, 0.0 }
 0x856   :  { %1908 = vadd.xlane.f32.xlu1 %v1907_v25 }
 0x867   :  { %1649 = vrot.lane.b32.xlu1 %v7037_v36, %s6584_s10 }
 0x86f   :  { %1772 = vadd.xlane.f32.xlu0 %v1771_v15 }
 0x885   :  { %1782 = vrot.lane.b32.xlu0 %v7037_v36, %s8097_s21 }
 0x889   :  { %1915 = vrot.lane.b32.xlu0 %v7037_v36, %s6585_s29 }
 0x8af   :  { %v1116_v18 = vpop.xlane.xlu0 %1115 }
 0x8b0   :  { %6080 = vrcp.f32 %v1116_v18 }
 0x8b3   :  { %v1119_v14 = vpop.xlane.xlu1 %1118 }
 0x8b4   :  { %6082 = vrcp.f32 %v1119_v14 }
 0x8b7   :  { %v1251_v22 = vpop.xlane.xlu0 %1250 }
 0x8b8   :  { %6084 = vrcp.f32 %v1251_v22 }
 0x8b9   :  { %v1254_v24 = vpop.xlane.xlu1 %1253 }
 0x8ba   :  { %6086 = vrcp.f32 %v1254_v24  ;;  %v6081_v47 = vpop.eup %6080 }
 0x8bb   :  { %v1122_v30 = vmul.f32 %v6081_v47, %v7163_v56 }
 0x8be   :  { %v6083_v27 = vpop.eup %6082 }
 0x8bf   :  { %v1123_v50 = vmul.f32 %v6083_v27, %v7168_v59  ;;  %v1385_v33 = vpop.xlane.xlu0 %1384 }
 0x8c0   :  { %6088 = vrcp.f32 %v1385_v33 }
 0x8c1   :  { %v1388_v35 = vpop.xlane.xlu1 %1387  ;;  %v1124_v40 = vpack.c.bf16 %v1123_v50, %v1122_v30 }
 0x8c2   :  { %6090 = vrcp.f32 %v1388_v35  ;;  %v6085_v41 = vpop.eup %6084 }
 0x8c3   :  { %5556 = vmatmul.mubr.msk.bf16.vlgmr.msra.gmra.mrb[16].mxu0 %vm977_vm2, %v1124_v40  ;;  %v1257_v56 = vmul.f32 %v6085_v41, %v7173_v1 }
 0x8c4   :  { %v6087_v62 = vpop.eup %6086  ;;  %5566 = vmatpush3.bf16.msra.mxu0 %v1261_v16  ;;  %5567 = vmatprep.mubr.msk.bf16.mxu0 %vm6583_vm0, %v6582_v5 }
 0x8c5   :  { %v1258_v44 = vmul.f32 %v6087_v62, %v7177_v9  ;;  %5577 = vmatprep.subr.bf16.mxu0 %v6582_v5 }
 0x8c7   :  { %v1515_v59 = vpop.xlane.xlu0 %1514  ;;  %v1259_v4 = vpack.c.bf16 %v1258_v44, %v1257_v56 }
 0x8c8   :  { %6092 = vrcp.f32 %v1515_v59 }
 0x8c9   :  { %v1518_v45 = vpop.xlane.xlu1 %1517 }
 0x8ca   :  { %6094 = vrcp.f32 %v1518_v45  ;;  %v6089_v46 = vpop.eup %6088 }
 0x8cb   :  { %5568 = vmatmul.mubr.msk.bf16.vlgmr.msra.gmra.mrb[20].mxu0 %vm977_vm2, %v1259_v4  ;;  %v1395_v48 = vpop.permute.xlu0 %1394  ;;  %v1391_v1 = vmul.f32 %v6089_v46, %v7183_v19 }
 0x8cc   :  { %v6091_v51 = vpop.eup %6090  ;;  %5578 = vmatpush3.bf16.msra.mxu0 %v1395_v48  ;;  %5579 = vmatprep.mubr.msk.bf16.mxu0 %vm6583_vm0, %v6582_v5  ;;  %v5890_v48 = vld [vmem:[#allocation14] sm:$0xff]  }
 0x8cd   :  { %v1392_v9 = vmul.f32 %v6091_v51, %v7187_v26  ;;  %5589 = vmatprep.subr.bf16.mxu0 %v6582_v5  ;;  %v5891_v51 = vld [vmem:[#allocation14 + $0x8] sm:$0xff]   ;;  %5631 = vmatprep.subr.bf16.mxu1 %v5890_v48 }
 0x8ce   :  { %5632 = vmatpush3.bf16.msra.mxu1 %v5890_v48 }
 0x8cf   :  { %v1639_v52 = vpop.xlane.xlu1 %1638  ;;  %v1393_v54 = vpack.c.bf16 %v1392_v9, %v1391_v1  ;;  %5633 = vmatprep.subr.bf16.mxu1 %v5891_v51  ;;  %v5892_v9 = vld [vmem:[#allocation14 + $0x10] sm:$0xff]  }
 0x8d2   :  { %v6093_v55 = vpop.eup %6092  ;;  %5634 = vmatpush3.bf16.msra.mxu1 %v5891_v51 }
 0x8d3   :  { %5580 = vmatmul.mubr.msk.bf16.vlgmr.msra.gmra.mrb[24].mxu0 %vm977_vm2, %v1393_v54  ;;  %v1642_v57 = vpop.xlane.xlu1 %1641  ;;  %v1521_v26 = vmul.f32 %v6093_v55, %v7193_v37  ;;  %5635 = vmatprep.subr.bf16.mxu1 %v5892_v9 }
 0x8d4   :  { %v6095_v17 = vpop.eup %6094  ;;  %5590 = vmatpush3.bf16.msra.mxu0 %v7037_v36  ;;  %5591 = vmatprep.mubr.msk.bf16.mxu0 %vm6583_vm0, %v6582_v5  ;;  %6096 = vrcp.f32 %v1642_v57  ;;  %v5895_v57 = vld [vmem:[#allocation14 + $0x28] sm:$0xff]  }
 0x8d5   :  { %v1522_v20 = vmul.f32 %v6095_v17, %v7197_v43  ;;  %5601 = vmatprep.subr.bf16.mxu0 %v6582_v5  ;;  %6098 = vrcp.f32 %v1639_v52  ;;  %v5893_v17 = vld [vmem:[#allocation14 + $0x18] sm:$0xff]  }
 0x8d6   :  { %5636 = vmatpush3.bf16.msra.mxu1 %v5892_v9 }
 0x8d7   :  { %v1523_v19 = vpack.c.bf16 %v1522_v20, %v1521_v26  ;;  %5637 = vmatprep.subr.bf16.mxu1 %v5893_v17  ;;  %v5894_v20 = vld [vmem:[#allocation14 + $0x20] sm:$0xff]   ;;  %v5896_v26 = vld [vmem:[#allocation14 + $0x30] sm:$0xff]  }
 0x8d9   :  { %v1776_v23 = vpop.xlane.xlu1 %1775 }
 0x8da   :  { %6100 = vrcp.f32 %v1776_v23  ;;  %5638 = vmatpush3.bf16.msra.mxu1 %v5893_v17  ;;  %v5897_v23 = vld [vmem:[#allocation14 + $0x38] sm:$0xff]  }
 0x8db   :  { %5592 = vmatmul.mubr.msk.bf16.vlgmr.msra.gmra.mrb[28].mxu0 %vm977_vm2, %v1523_v19  ;;  %5639 = vmatprep.subr.bf16.mxu1 %v5894_v20 }
 0x8dc   :  { %5603 = vmatprep.mubr.msk.bf16.mxu0 %vm6583_vm0, %v6582_v5 }
 0x8de   :  { %v6097_v58 = vpop.eup %6096  ;;  %5640 = vmatpush3.bf16.msra.mxu1 %v5894_v20 }
 0x8df   :  { %v1906_v36 = vpop.xlane.xlu1 %1905  ;;  %v6099_v32 = vpop.eup %6098  ;;  %v1646_v43 = vmul.f32 %v6097_v58, %v7206_v53  ;;  %5641 = vmatprep.subr.bf16.mxu1 %v5895_v57 }
 0x8e0   :  { %v1645_v29 = vmul.f32 %v6099_v32, %v7202_v49 }
 0x8e2   :  { %v1647_v37 = vpack.c.bf16 %v1646_v43, %v1645_v29  ;;  %5642 = vmatpush3.bf16.msra.mxu1 %v5895_v57 }
 0x8e3   :  { %v1909_v63 = vpop.xlane.xlu1 %1908  ;;  %5643 = vmatprep.subr.bf16.mxu1 %v5896_v26 }
 0x8e4   :  { %v6101_v49 = vpop.eup %6100 }
 0x8e5   :  { %v1780_v12 = vmul.f32 %v6101_v49, %v7212_v28 }
 0x8e6   :  { %5644 = vmatpush3.bf16.msra.mxu1 %v5896_v26  ;;  %v5906_v26 = vld [vmem:[%s8061_s17 + $0x24] ss:$8 sps:$4 sm:$0xff]  }
 0x8e7   :  { %v1650_v0 = vpop.permute.xlu1 %1649  ;;  %5645 = vmatprep.subr.bf16.mxu1 %v5897_v23 }
 0x8e8   :  { %5602 = vmatpush3.bf16.msra.mxu0 %v1650_v0 }
 0x8e9   :  { %5613 = vmatprep.subr.bf16.mxu0 %v6582_v5 }
 0x8ea   :  { %5646 = vmatpush3.bf16.msra.mxu1 %v5897_v23  ;;  %v5909_v23 = vld [vmem:[%s8061_s17 + $0x34] ss:$8 sps:$4 sm:$0xff]  }
 0x8eb   :  { %5604 = vmatmul.mubr.msk.bf16.vlgmr.msra.gmra.mrb[32].mxu0 %vm977_vm2, %v1647_v37 }
 0x8ec   :  { %5615 = vmatprep.mubr.msk.bf16.mxu0 %vm6583_vm0, %v6582_v5 }
 0x8fc   :  { %v1773_v34 = vpop.xlane.xlu0 %1772 }
 0x8fd   :  { %6102 = vrcp.f32 %v1773_v34 }
 0x8fe   :  { %6104 = vrcp.f32 %v1909_v63 }
 0x8ff   :  { %6106 = vrcp.f32 %v1906_v36 }
 0x900   :  { %v1783_v39 = vpop.permute.xlu0 %1782 }
 0x901   :  { %5614 = vmatpush3.bf16.msra.mxu0 %v1783_v39 }
 0x902   :  { %5625 = vmatprep.subr.bf16.mxu0 %v6582_v5 }
 0x904   :  { %v1916_v15 = vpop.permute.xlu0 %1915 }
 0x907   :  { %v6103_v53 = vpop.eup %6102 }
 0x908   :  { %v1779_v25 = vmul.f32 %v6103_v53, %v7235_v38  ;;  %v6105_v42 = vpop.eup %6104 }
 0x909   :  { %v6107_v16 = vpop.eup %6106  ;;  %v1913_v18 = vmul.f32 %v6105_v42, %v7227_v21 }
 0x90a   :  { %v1781_v13 = vpack.c.bf16 %v1780_v12, %v1779_v25  ;;  %v1912_v14 = vmul.f32 %v6107_v16, %v7218_v6 }
 0x90c   :  { %5616 = vmatmul.mubr.msk.bf16.vlgmr.msra.gmra.mrb[36].mxu0 %vm977_vm2, %v1781_v13  ;;  %v1914_v22 = vpack.c.bf16 %v1913_v18, %v1912_v14 }
 0x90d   :  { %5626 = vmatpush3.bf16.msra.mxu0 %v1916_v15  ;;  %5627 = vmatprep.mubr.msk.bf16.mxu0 %vm6583_vm0, %v6582_v5 }
 0x914   :  { %5628 = vmatmul.mubr.msk.bf16.vlgmr.msra.gmra.mrb[40].mxu0 %vm977_vm2, %v1914_v22 }
 0x915   :  { %2310 = vmatprep.mubr.bf16.mxu0 %v6581_v31 }
 0x923   :  { %v1038_v28 = vpop.f32.mrb[12].mxu0 }
 0x924   :  { %1045 = vst.msk [vmem:[#allocation2] sm:$0xff] %vm927_vm1, %v1038_v28  ;;  %v5545_v38 = vpop.f32.mrb[13].mxu0 }
 0x925   :  { %v1041_v24 = vpop.f32.mrb[14].mxu0 }
 0x926   :  { %1046 = vst.msk [vmem:[#allocation2 + $0x8] sm:$0xff] %vm927_vm1, %v1041_v24  ;;  %v5546_v47 = vpop.f32.mrb[15].mxu0 }
 0x996   :  { %v1166_v27 = vpop.f32.mrb[16].mxu0 }
 0x997   :  { %1175 = vrot.lane.b32.xlu0 %v1166_v27, %s6585_s29  ;;  %v5557_v30 = vpop.f32.mrb[17].mxu0  ;;  %v5063_v27 = vld [vmem:[%s8058_s14] ss:$0 sm:$0xff] }
 0x998   :  { %v1169_v21 = vpop.f32.mrb[18].mxu0 }
 0x999   :  { %1177 = vrot.lane.b32.xlu1 %v1169_v21, %s6585_s29  ;;  %v5558_v6 = vpop.f32.mrb[19].mxu0 }
 0x99e   :  { %v1300_v50 = vpop.f32.mrb[20].mxu0 }
 0x99f   :  { %1309 = vrot.lane.b32.xlu0 %v1300_v50, %s8097_s21  ;;  %v5569_v33 = vpop.f32.mrb[21].mxu0 }
 0x9a0   :  { %v1303_v35 = vpop.f32.mrb[22].mxu0 }
 0x9a1   :  { %1311 = vrot.lane.b32.xlu1 %v1303_v35, %s8097_s21  ;;  %v5570_v40 = vpop.f32.mrb[23].mxu0 }
 0x9a6   :  { %v1434_v41 = vpop.f32.mrb[24].mxu0 }
 0x9a7   :  { %1443 = vrot.lane.b32.xlu0 %v1434_v41, %s6584_s10  ;;  %v5581_v62 = vpop.f32.mrb[25].mxu0 }
 0x9a8   :  { %v1437_v44 = vpop.f32.mrb[26].mxu0 }
 0x9a9   :  { %1445 = vrot.lane.b32.xlu1 %v1437_v44, %s6584_s10  ;;  %v5582_v56 = vpop.f32.mrb[27].mxu0 }
 0x9ae   :  { %v1561_v59 = vpop.f32.mrb[28].mxu0 }
 0x9af   :  { %1568 = vst.msk [vmem:[#allocation2 + $0x10] sm:$0xff] %vm927_vm1, %v1561_v59  ;;  %v5593_v45 = vpop.f32.mrb[29].mxu0  ;;  %v5898_v59 = vld [vmem:[%s8061_s17] ss:$8 sps:$4 sm:$0xff]  }
 0x9b0   :  { %v1564_v4 = vpop.f32.mrb[30].mxu0  ;;  %v5900_v45 = vld [vmem:[%s8061_s17 + $0x4] ss:$8 sps:$4 sm:$0xff]  }
 0x9b1   :  { %1569 = vst.msk [vmem:[#allocation2 + $0x18] sm:$0xff] %vm927_vm1, %v1564_v4  ;;  %v5594_v46 = vpop.f32.mrb[31].mxu0  ;;  %2278 = vmatprep.subr.bf16.mxu0 %v5900_v45  ;;  %v5931_v45 = vld [vmem:[%s8063_s19 + $0x20] sm:$0xff]  }
 0x9b2   :  { %2279 = vmatpush1.bf16.msra.mxu0 %v5898_v59  ;;  %v5930_v59 = vld [vmem:[%s8063_s19 + $0x60] sm:$0xff]  }
 0x9be   :  { %v1689_v1 = vpop.f32.mrb[32].mxu0 }
 0x9bf   :  { %1698 = vrot.lane.b32.xlu0 %v1689_v1, %s6585_s29  ;;  %v5605_v52 = vpop.f32.mrb[33].mxu0 }
 0x9c0   :  { %v1692_v54 = vpop.f32.mrb[34].mxu0 }
 0x9c1   :  { %1700 = vrot.lane.b32.xlu1 %v1692_v54, %s6585_s29  ;;  %v5606_v55 = vpop.f32.mrb[35].mxu0 }
 0x9df   :  { %v1822_v19 = vpop.f32.mrb[36].mxu0 }
 0x9e0   :  { %1831 = vrot.lane.b32.xlu0 %v1822_v19, %s8097_s21  ;;  %v5617_v36 = vpop.f32.mrb[37].mxu0  ;;  %v5904_v19 = vld [vmem:[%s8061_s17 + $0x20] ss:$8 sps:$4 sm:$0xff]  }
 0x9e1   :  { %v1825_v58 = vpop.f32.mrb[38].mxu0  ;;  %v5907_v36 = vld [vmem:[%s8061_s17 + $0x30] ss:$8 sps:$4 sm:$0xff]  }
 0x9e2   :  { %1833 = vrot.lane.b32.xlu1 %v1825_v58, %s8097_s21  ;;  %v5618_v63 = vpop.f32.mrb[39].mxu0  ;;  %v5910_v58 = vld [vmem:[%s8061_s17 + $0x40] ss:$8 sps:$4 sm:$0xff]  }
 0x9e3   :  { %v5915_v63 = vld [vmem:[%s8061_s17 + $0x54] ss:$8 sps:$4 sm:$0xff]  }
 0x9e7   :  { %v1955_v32 = vpop.f32.mrb[40].mxu0 }
 0x9e8   :  { %1964 = vrot.lane.b32.xlu0 %v1955_v32, %s6584_s10  ;;  %v5629_v43 = vpop.f32.mrb[41].mxu0  ;;  %v5913_v32 = vld [vmem:[%s8061_s17 + $0x50] ss:$8 sps:$4 sm:$0xff]  }
 0x9e9   :  { %v1958_v29 = vpop.f32.mrb[42].mxu0  ;;  %v5916_v43 = vld [vmem:[%s8061_s17 + $0x60] ss:$8 sps:$4 sm:$0xff]  }
 0x9ea   :  { %1966 = vrot.lane.b32.xlu1 %v1958_v29, %s6584_s10  ;;  %v5630_v0 = vpop.f32.mrb[43].mxu0  ;;  %v5918_v29 = vld [vmem:[%s8061_s17 + $0x64] ss:$8 sps:$4 sm:$0xff]  }
 0x9eb   :  { %v5921_v0 = vld [vmem:[%s8061_s17 + $0x74] ss:$8 sps:$4 sm:$0xff]  }
 0xa09   :  { %v1176_v37 = vpop.permute.xlu0 %1175 }
 0xa0a   :  { %1182 = vst.msk [vmem:[#allocation2] sm:$0xff] %vm1181_vm3, %v1176_v37  ;;  %v5919_v37 = vld [vmem:[%s8061_s17 + $0x70] ss:$8 sps:$4 sm:$0xff]  }
 0xa0b   :  { %v1178_v34 = vpop.permute.xlu1 %1177 }
 0xa0c   :  { %1183 = vst.msk [vmem:[#allocation2 + $0x8] sm:$0xff] %vm1181_vm3, %v1178_v34 }
 0xa11   :  { %v1310_v39 = vpop.permute.xlu0 %1309 }
 0xa12   :  { %1316 = vst.msk [vmem:[#allocation2] sm:$0xff] %vm1315_vm4, %v1310_v39 }
 0xa13   :  { %v1312_v49 = vpop.permute.xlu1 %1311 }
 0xa14   :  { %1317 = vst.msk [vmem:[#allocation2 + $0x8] sm:$0xff] %vm1315_vm4, %v1312_v49 }
 0xa19   :  { %v1444_v53 = vpop.permute.xlu0 %1443 }
 0xa1a   :  { %1450 = vst.msk [vmem:[#allocation2] sm:$0xff] %vm1449_vm5, %v1444_v53 }
 0xa1b   :  { %v1446_v12 = vpop.permute.xlu1 %1445 }
 0xa1c   :  { %1451 = vst.msk [vmem:[#allocation2 + $0x8] sm:$0xff] %vm1449_vm5, %v1446_v12 }
 0xa21   :  { %v1972_v25 = vld [vmem:[#allocation2] sm:$0xff] }
 0xa23   :  { %v1973_v13 = vld [vmem:[#allocation2 + $0x8] sm:$0xff] }
 0xa24   :  { %v1976_v42 = vpack.c.bf16 %v1973_v13, %v1972_v25 }
 0xa26   :  { %5647 = vmatprep.mubr.bf16.mxu1 %v1976_v42 }
 0xa31   :  { %v1699_v15 = vpop.permute.xlu0 %1698 }
 0xa32   :  { %1704 = vst.msk [vmem:[#allocation2 + $0x10] sm:$0xff] %vm1181_vm3, %v1699_v15 }
 0xa33   :  { %v1701_v16 = vpop.permute.xlu1 %1700 }
 0xa34   :  { %1705 = vst.msk [vmem:[#allocation2 + $0x18] sm:$0xff] %vm1181_vm3, %v1701_v16 }
 0xa52   :  { %v1832_v18 = vpop.permute.xlu0 %1831 }
 0xa53   :  { %1837 = vst.msk [vmem:[#allocation2 + $0x10] sm:$0xff] %vm1315_vm4, %v1832_v18 }
 0xa54   :  { %v1834_v14 = vpop.permute.xlu1 %1833 }
 0xa55   :  { %1838 = vst.msk [vmem:[#allocation2 + $0x18] sm:$0xff] %vm1315_vm4, %v1834_v14 }
 0xa5a   :  { %v1965_v22 = vpop.permute.xlu0 %1964 }
 0xa5b   :  { %1970 = vst.msk [vmem:[#allocation2 + $0x10] sm:$0xff] %vm1449_vm5, %v1965_v22  ;;  %v5072_v22 = vld [vmem:[#allocation15] ss:$0 sm:$0xff] }
 0xa5c   :  { %v1967_v28 = vpop.permute.xlu1 %1966 }
 0xa5d   :  { %1971 = vst.msk [vmem:[#allocation2 + $0x18] sm:$0xff] %vm1449_vm5, %v1967_v28 }
 0xa62   :  { %v1974_v38 = vld [vmem:[#allocation2 + $0x10] sm:$0xff] }
 0xa64   :  { %v1975_v24 = vld [vmem:[#allocation2 + $0x18] sm:$0xff] }
 0xa65   :  { %v1977_v47 = vpack.c.bf16 %v1975_v24, %v1974_v38 }
 0xa67   :  { %5648 = vmatmul.mubr.bf16.vlgmr.msra.gmra.mrb[40].mxu1 %v1977_v47  ;;  %v5073_v47 = vld [vmem:[#allocation17] ss:$0 sm:$0xff] }
 0xb3a   :  { %v5649_v30 = vpop.f32.mrb[40].mxu1 }
 0xb3b   :  { %v2092_v21 = vadd.f32 %v5649_v30, %v5063_v27  ;;  %v2083_v6 = vpop.f32.mrb[41].mxu1 }
 0xb3c   :  { %v2084_v50 = vadd.f32 %v5063_v27, %v2083_v6  ;;  %v5650_v33 = vpop.f32.mrb[42].mxu1 }
 0xb3d   :  { %v2086_v35 = vpop.f32.mrb[43].mxu1  ;;  %v2095_v62 = vadd.f32 %v5650_v33, %v5063_v27  ;;  %v2100_v57 = vadd.f32 %v2092_v21, %v7008_v2  ;;  %v5912_v2 = vld [vmem:[%s8061_s17 + $0x44] ss:$8 sps:$4 sm:$0xff]  }
 0xb3e   :  { %v2087_v40 = vadd.f32 %v5063_v27, %v2086_v35  ;;  %v2098_v41 = vadd.f32 %v2084_v50, %v7001_v60  ;;  %v5903_v60 = vld [vmem:[%s8061_s17 + $0x14] ss:$8 sps:$4 sm:$0xff]   ;;  %v5922_v50 = vld [vmem:[%s8063_s19 + $0x40] sm:$0xff]   ;;  %v5924_v35 = vld [vmem:[%s8063_s19 + $0x48] sm:$0xff]  }
 0xb3f   :  { %v2101_v56 = vadd.f32 %v2095_v62, %v7010_v3  ;;  %2280 = vmatprep.subr.bf16.mxu0 %v5903_v60  ;;  %v5923_v33 = vld [vmem:[%s8063_s19] sm:$0xff]   ;;  %5359 = vmatprep.subr.bf16.mxu1 %v5922_v50  ;;  %v5927_v62 = vld [vmem:[%s8063_s19 + $0x10] sm:$0xff]   ;;  %v5932_v60 = vld [vmem:[%s8063_s19 + $0x68] sm:$0xff]  }
 0xb40   :  { %2104 = vadd.xlane.f32.xlu0 %v2098_v41  ;;  %v2099_v44 = vadd.f32 %v2087_v40, %v7003_v61  ;;  %v5901_v61 = vld [vmem:[%s8061_s17 + $0x10] ss:$8 sps:$4 sm:$0xff]   ;;  %5360 = vmatpush3.bf16.msra.mxu1 %v5923_v33  ;;  %v5925_v40 = vld [vmem:[%s8063_s19 + $0x8] sm:$0xff]  }
 0xb41   :  { %2281 = vmatpush1.bf16.msra.mxu0 %v5901_v61  ;;  %5361 = vmatprep.subr.bf16.mxu1 %v5924_v35  ;;  %v5933_v61 = vld [vmem:[%s8063_s19 + $0x28] sm:$0xff]  }
 0xb42   :  { %2106 = vadd.xlane.f32.xlu1 %v2099_v44  ;;  %2282 = vmatprep.subr.bf16.mxu0 %v5906_v26 }
 0xb44   :  { %5362 = vmatpush3.bf16.msra.mxu1 %v5925_v40 }
 0xb45   :  { %2283 = vmatpush1.bf16.msra.mxu0 %v5904_v19 }
 0xb46   :  { %2110 = vadd.xlane.f32.xlu1 %v2101_v56  ;;  %2284 = vmatprep.subr.bf16.mxu0 %v5909_v23 }
 0xb49   :  { %2285 = vmatpush1.bf16.msra.mxu0 %v5907_v36 }
 0xb4a   :  { %2286 = vmatprep.subr.bf16.mxu0 %v5912_v2 }
 0xb4d   :  { %2287 = vmatpush1.bf16.msra.mxu0 %v5910_v58 }
 0xb4e   :  { %2288 = vmatprep.subr.bf16.mxu0 %v5915_v63 }
 0xb51   :  { %2289 = vmatpush1.bf16.msra.mxu0 %v5913_v32  ;;  %v2186_v32 = vld [vmem:[%s8062_s18] sm:$0x3] }
 0xb52   :  { %2290 = vmatprep.subr.bf16.mxu0 %v5918_v29 }
 0xb55   :  { %2291 = vmatpush1.bf16.msra.mxu0 %v5916_v43  ;;  %v2195_v43 = vrot.slane %v2186_v32, %v7027_v10 }
 0xb56   :  { %2292 = vmatprep.subr.bf16.mxu0 %v5921_v0 }
 0xb59   :  { %2293 = vmatpush1.bf16.msra.mxu0 %v5919_v37 }
 0xbcd   :  { %v2105_v3 = vpop.xlane.xlu0 %2104 }
 0xbce   :  { %v2112_v4 = vmul.f32 0.0078125, %v2105_v3  ;;  %v5934_v3 = vld [vmem:[%s8063_s19 + $0x70] sm:$0xff]  }
 0xbcf   :  { %v2107_v46 = vpop.xlane.xlu1 %2106 }
 0xbd0   :  { %v2113_v48 = vmul.f32 0.0078125, %v2107_v46  ;;  %v2116_v51 = vsub.f32 %v2098_v41, %v2112_v4  ;;  %v5926_v41 = vld [vmem:[%s8063_s19 + $0x50] sm:$0xff]   ;;  %v5936_v46 = vld [vmem:[%s8063_s19 + $0x78] sm:$0xff]  }
 0xbd1   :  { %5363 = vmatprep.subr.bf16.mxu1 %v5926_v41  ;;  %v5935_v4 = vld [vmem:[%s8063_s19 + $0x30] sm:$0xff]  }
 0xbd2   :  { %v2117_v9 = vsub.f32 %v2099_v44, %v2113_v48  ;;  %v2120_v1 = vmul.f32 %v2116_v51, %v2116_v51  ;;  %5364 = vmatpush3.bf16.msra.mxu1 %v5927_v62  ;;  %v5928_v44 = vld [vmem:[%s8063_s19 + $0x58] sm:$0xff]  }
 0xbd3   :  { %v2111_v52 = vpop.xlane.xlu1 %2110  ;;  %5365 = vmatprep.subr.bf16.mxu1 %v5928_v44  ;;  %v5937_v48 = vld [vmem:[%s8063_s19 + $0x38] sm:$0xff]  }
 0xbd4   :  { %v2115_v54 = vmul.f32 0.0078125, %v2111_v52  ;;  %2124 = vadd.xlane.f32.xlu0 %v2120_v1  ;;  %v2121_v17 = vmul.f32 %v2117_v9, %v2117_v9 }
 0xbd6   :  { %v7329_v55 = vsub.f32 %v2101_v56, %v2115_v54  ;;  %v5929_v56 = vld [vmem:[%s8063_s19 + $0x18] sm:$0xff]  }
 0xbd7   :  { %5366 = vmatpush3.bf16.msra.mxu1 %v5929_v56 }
 0xbd8   :  { %2126 = vadd.xlane.f32.xlu0 %v2121_v17  ;;  %v2123_v20 = vmul.f32 %v7329_v55, %v7329_v55  ;;  %5367 = vmatprep.subr.bf16.mxu1 %v5930_v59 }
 0xbda   :  { %2130 = vadd.xlane.f32.xlu1 %v2123_v20 }
 0xbdb   :  { %5368 = vmatpush3.bf16.msra.mxu1 %v5931_v45 }
 0xbdc   :  { %2108 = vadd.xlane.f32.xlu0 %v2100_v57  ;;  %5369 = vmatprep.subr.bf16.mxu1 %v5932_v60 }
 0xbdf   :  { %5370 = vmatpush3.bf16.msra.mxu1 %v5933_v61 }
 0xbe0   :  { %5371 = vmatprep.subr.bf16.mxu1 %v5934_v3 }
 0xbe3   :  { %5372 = vmatpush3.bf16.msra.mxu1 %v5935_v4 }
 0xbe4   :  { %5373 = vmatprep.subr.bf16.mxu1 %v5936_v46 }
 0xbe7   :  { %5374 = vmatpush3.bf16.msra.mxu1 %v5937_v48 }
 0xc61   :  { %v2125_v34 = vpop.xlane.xlu0 %2124 }
 0xc62   :  { %v2132_v39 = vmul.f32 0.0078125, %v2125_v34 }
 0xc64   :  { %v2136_v49 = vadd.f32 1e-05, %v2132_v39 }
 0xc65   :  { %v2127_v53 = vpop.xlane.xlu0 %2126 }
 0xc66   :  { %6108 = vrsqrt.f32 %v2136_v49  ;;  %v2133_v12 = vmul.f32 0.0078125, %v2127_v53 }
 0xc68   :  { %v2137_v25 = vadd.f32 1e-05, %v2133_v12 }
 0xc69   :  { %v2109_v13 = vpop.xlane.xlu0 %2108 }
 0xc6a   :  { %6110 = vrsqrt.f32 %v2137_v25  ;;  %v2114_v42 = vmul.f32 0.0078125, %v2109_v13 }
 0xc6c   :  { %v2118_v15 = vsub.f32 %v2100_v57, %v2114_v42 }
 0xc6e   :  { %v2122_v16 = vmul.f32 %v2118_v15, %v2118_v15 }
 0xc70   :  { %v6109_v18 = vpop.eup %6108  ;;  %2128 = vadd.xlane.f32.xlu0 %v2122_v16 }
 0xc71   :  { %v2144_v14 = vmul.f32 %v6109_v18, %v2116_v51  ;;  %v2131_v51 = vpop.xlane.xlu1 %2130 }
 0xc73   :  { %v2154_v24 = vmul.f32 %v5072_v22, %v2144_v14 }
 0xc74   :  { %v6111_v28 = vpop.eup %6110 }
 0xc75   :  { %v2145_v38 = vmul.f32 %v6111_v28, %v2117_v9  ;;  %v7370_v30 = vadd.f32 %v5073_v47, %v2154_v24  ;;  %v2135_v9 = vmul.f32 0.0078125, %v2131_v51 }
 0xc77   :  { %v2155_v27 = vmul.f32 %v5072_v22, %v2145_v38  ;;  %v2139_v1 = vadd.f32 1e-05, %v2135_v9 }
 0xc79   :  { %v7372_v21 = vadd.f32 %v5073_v47, %v2155_v27  ;;  %6112 = vrsqrt.f32 %v2139_v1 }
 0xc7b   :  { %v2168_v6 = vpack.c.bf16 %v7372_v21, %v7370_v30 }
 0xc7d   :  { %2311 = vmatmul.mubr.bf16.vlgmr.msra.gmra.mrb[44].mxu0 %v2168_v6 }
 0xc7e   :  { %2320 = vmatprep.mubr.bf16.mxu0 %v6581_v31 }
 0xc83   :  { %v6113_v20 = vpop.eup %6112 }
 0xc84   :  { %v2147_v57 = vmul.f32 %v6113_v20, %v7329_v55  ;;  %v2191_v55 = vrot.slane %v2186_v32, %v7024_v8 }
 0xc86   :  { %v2157_v23 = vmul.f32 %v5072_v22, %v2147_v57 }
 0xc88   :  { %v7428_v58 = vadd.f32 %v5073_v47, %v2157_v23 }
 0xcfd   :  { %v2129_v52 = vpop.xlane.xlu0 %2128 }
 0xcfe   :  { %v2134_v54 = vmul.f32 0.0078125, %v2129_v52 }
 0xd00   :  { %v2138_v17 = vadd.f32 1e-05, %v2134_v54 }
 0xd02   :  { %6114 = vrsqrt.f32 %v2138_v17 }
 0xd0c   :  { %v6115_v26 = vpop.eup %6114 }
 0xd0d   :  { %v2146_v19 = vmul.f32 %v6115_v26, %v2118_v15 }
 0xd0f   :  { %v2156_v36 = vmul.f32 %v5072_v22, %v2146_v19 }
 0xd11   :  { %v7426_v2 = vadd.f32 %v5073_v47, %v2156_v36 }
 0xd13   :  { %v2169_v63 = vpack.c.bf16 %v7428_v58, %v7426_v2 }
 0xd15   :  { %2321 = vmatmul.mubr.bf16.gmra.mrb[48].mxu0 %v2169_v63 }
 0xd16   :  { %2874 = vmatprep.mubr.bf16.mxu0 %v6581_v31 }
 0xd50   :  { %v2312_v29 = vpop.f32.mrb[44].mxu0 }
 0xd51   :  { %v2313_v0 = vadd.f32 %v2312_v29, %v2191_v55  ;;  %v2314_v37 = vpop.f32.mrb[45].mxu0 }
 0xd52   :  { %v2315_v34 = vadd.f32 %v2314_v37, %v2195_v43  ;;  %v2316_v39 = vpop.f32.mrb[46].mxu0 }
 0xd53   :  { %v2331_v49 = vmul.f32 %v2313_v0, %v2313_v0  ;;  %v2317_v53 = vadd.f32 %v2316_v39, %v2191_v55  ;;  %v2318_v12 = vpop.f32.mrb[47].mxu0 }
 0xd54   :  { %v2332_v25 = vmul.f32 %v2315_v34, %v2315_v34  ;;  %v2319_v13 = vadd.f32 %v2318_v12, %v2195_v43 }
 0xd55   :  { %v2339_v42 = vmul.f32 %v2331_v49, %v2313_v0  ;;  %v2333_v15 = vmul.f32 %v2317_v53, %v2317_v53 }
 0xd56   :  { %v2340_v16 = vmul.f32 %v2332_v25, %v2315_v34  ;;  %v2334_v18 = vmul.f32 %v2319_v13, %v2319_v13 }
 0xd57   :  { %v2347_v14 = vmul.f32 0.044715, %v2339_v42  ;;  %v2341_v22 = vmul.f32 %v2333_v15, %v2317_v53 }
 0xd58   :  { %v2348_v28 = vmul.f32 0.044715, %v2340_v16  ;;  %v2342_v38 = vmul.f32 %v2334_v18, %v2319_v13 }
 0xd59   :  { %v2355_v24 = vadd.f32 %v2347_v14, %v2313_v0  ;;  %v2349_v47 = vmul.f32 0.044715, %v2341_v22 }
 0xd5a   :  { %v2356_v27 = vadd.f32 %v2348_v28, %v2315_v34  ;;  %v2350_v6 = vmul.f32 0.044715, %v2342_v38 }
 0xd5b   :  { %v2363_v50 = vmul.f32 0.7978846, %v2355_v24  ;;  %v2357_v33 = vadd.f32 %v2349_v47, %v2317_v53 }
 0xd5c   :  { %v2364_v35 = vmul.f32 0.7978846, %v2356_v27  ;;  %v2358_v40 = vadd.f32 %v2350_v6, %v2319_v13 }
 0xd5d   :  { %6116 = vtanh.f32 %v2363_v50  ;;  %v2365_v41 = vmul.f32 0.7978846, %v2357_v33 }
 0xd5e   :  { %6118 = vtanh.f32 %v2364_v35  ;;  %v2366_v62 = vmul.f32 0.7978846, %v2358_v40 }
 0xd5f   :  { %6120 = vtanh.f32 %v2365_v41 }
 0xd60   :  { %6122 = vtanh.f32 %v2366_v62 }
 0xd67   :  { %v6117_v44 = vpop.eup %6116 }
 0xd68   :  { %v6119_v56 = vpop.eup %6118  ;;  %v2379_v59 = vadd.f32 1.0, %v6117_v44 }
 0xd69   :  { %v6121_v45 = vpop.eup %6120  ;;  %v2380_v60 = vadd.f32 1.0, %v6119_v56 }
 0xd6a   :  { %v6123_v61 = vpop.eup %6122  ;;  %v2387_v3 = vmul.f32 0.5, %v2379_v59  ;;  %v2381_v4 = vadd.f32 1.0, %v6121_v45 }
 0xd6b   :  { %v2382_v46 = vadd.f32 1.0, %v6123_v61  ;;  %v2388_v48 = vmul.f32 0.5, %v2380_v60 }
 0xd6c   :  { %v2389_v51 = vmul.f32 0.5, %v2381_v4  ;;  %v2395_v1 = vmul.f32 %v2387_v3, %v2313_v0 }
 0xd6d   :  { %v2390_v9 = vmul.f32 0.5, %v2382_v46  ;;  %v2396_v54 = vmul.f32 %v2388_v48, %v2315_v34 }
 0xd6e   :  { %v2397_v52 = vmul.f32 %v2389_v51, %v2317_v53 }
 0xd6f   :  { %v2398_v17 = vmul.f32 %v2390_v9, %v2319_v13  ;;  %v5090_v9 = vld [vmem:[%s8064_s20] ss:$0 sm:$0xff] }
 0xd70   :  { %v2403_v20 = vpack.c.bf16 %v2397_v52, %v2395_v1 }
 0xd71   :  { %v2404_v57 = vpack.c.bf16 %v2398_v17, %v2396_v54 }
 0xd73   :  { %2574 = vmatprep.mubr.bf16.mxu1 %v2404_v57 }
 0xd74   :  { %2575 = vmatmul.mubr.bf16.vlgmr.msra.gmra.mrb[44].mxu1 %v2403_v20 }
 0xde8   :  { %v2322_v26 = vpop.f32.mrb[48].mxu0 }
 0xde9   :  { %v2323_v19 = vadd.f32 %v2322_v26, %v2191_v55  ;;  %v2324_v23 = vpop.f32.mrb[49].mxu0 }
 0xdea   :  { %v2325_v36 = vadd.f32 %v2324_v23, %v2195_v43  ;;  %v2326_v63 = vpop.f32.mrb[50].mxu0 }
 0xdeb   :  { %v2335_v32 = vmul.f32 %v2323_v19, %v2323_v19  ;;  %v2327_v29 = vadd.f32 %v2326_v63, %v2191_v55  ;;  %v2328_v37 = vpop.f32.mrb[51].mxu0  ;;  %v5940_v63 = vld [vmem:[%s8055_s11 + $0xc4] ss:$12 sps:$4 sm:$0xff]  }
 0xdec   :  { %v2336_v39 = vmul.f32 %v2325_v36, %v2325_v36  ;;  %v2329_v49 = vadd.f32 %v2328_v37, %v2195_v43  ;;  %2842 = vmatprep.subr.bf16.mxu0 %v5940_v63 }
 0xded   :  { %v2343_v12 = vmul.f32 %v2335_v32, %v2323_v19  ;;  %v2337_v25 = vmul.f32 %v2327_v29, %v2327_v29  ;;  %v5943_v32 = vld [vmem:[%s8055_s11 + $0xdc] ss:$12 sps:$4 sm:$0xff]  }
 0xdee   :  { %v2344_v0 = vmul.f32 %v2336_v39, %v2325_v36  ;;  %v2338_v53 = vmul.f32 %v2329_v49, %v2329_v49 }
 0xdef   :  { %v2351_v34 = vmul.f32 0.044715, %v2343_v12  ;;  %v2345_v13 = vmul.f32 %v2337_v25, %v2327_v29 }
 0xdf0   :  { %v2352_v42 = vmul.f32 0.044715, %v2344_v0  ;;  %v2346_v15 = vmul.f32 %v2338_v53, %v2329_v49 }
 0xdf1   :  { %v2359_v16 = vadd.f32 %v2351_v34, %v2323_v19  ;;  %v2353_v18 = vmul.f32 0.044715, %v2345_v13 }
 0xdf2   :  { %v2360_v14 = vadd.f32 %v2352_v42, %v2325_v36  ;;  %v2354_v22 = vmul.f32 0.044715, %v2346_v15 }
 0xdf3   :  { %v2367_v28 = vmul.f32 0.7978846, %v2359_v16  ;;  %v2361_v38 = vadd.f32 %v2353_v18, %v2327_v29 }
 0xdf4   :  { %v2368_v24 = vmul.f32 0.7978846, %v2360_v14  ;;  %v2362_v47 = vadd.f32 %v2354_v22, %v2329_v49 }
 0xdf5   :  { %6124 = vtanh.f32 %v2367_v28  ;;  %v2369_v55 = vmul.f32 0.7978846, %v2361_v38  ;;  %v5946_v38 = vld [vmem:[%s8055_s11 + $0xf4] ss:$12 sps:$4 sm:$0xff]  }
 0xdf6   :  { %6126 = vtanh.f32 %v2368_v24  ;;  %v2370_v43 = vmul.f32 0.7978846, %v2362_v47  ;;  %v5944_v24 = vld [vmem:[%s8055_s11 + $0xf0] ss:$12 sps:$4 sm:$0xff]   ;;  %v5949_v47 = vld [vmem:[%s8055_s11 + $0x10c] ss:$12 sps:$4 sm:$0xff]  }
 0xdf7   :  { %6128 = vtanh.f32 %v2369_v55  ;;  %v5950_v55 = vld [vmem:[%s8055_s11 + $0x120] ss:$12 sps:$4 sm:$0xff]  }
 0xdf8   :  { %6130 = vtanh.f32 %v2370_v43  ;;  %v5955_v43 = vld [vmem:[%s8055_s11 + $0x13c] ss:$12 sps:$4 sm:$0xff]  }
 0xdff   :  { %v6125_v27 = vpop.eup %6124 }
 0xe00   :  { %v6127_v6 = vpop.eup %6126  ;;  %v2383_v50 = vadd.f32 1.0, %v6125_v27  ;;  %v5953_v27 = vld [vmem:[%s8055_s11 + $0x138] ss:$12 sps:$4 sm:$0xff]  }
 0xe01   :  { %v6129_v33 = vpop.eup %6128  ;;  %v2384_v35 = vadd.f32 1.0, %v6127_v6  ;;  %v5958_v6 = vld [vmem:[%s8055_s11 + $0x154] ss:$12 sps:$4 sm:$0xff]  }
 0xe02   :  { %v6131_v40 = vpop.eup %6130  ;;  %v2385_v41 = vadd.f32 1.0, %v6129_v33  ;;  %v2391_v62 = vmul.f32 0.5, %v2383_v50  ;;  %v5956_v50 = vld [vmem:[%s8055_s11 + $0x150] ss:$12 sps:$4 sm:$0xff]   ;;  %v5961_v33 = vld [vmem:[%s8055_s11 + $0x16c] ss:$12 sps:$4 sm:$0xff]  }
 0xe03   :  { %v2386_v44 = vadd.f32 1.0, %v6131_v40  ;;  %v2392_v56 = vmul.f32 0.5, %v2384_v35  ;;  %v5959_v35 = vld [vmem:[%s8055_s11 + $0x168] ss:$12 sps:$4 sm:$0xff]  }
 0xe04   :  { %v2393_v59 = vmul.f32 0.5, %v2385_v41  ;;  %v2399_v60 = vmul.f32 %v2391_v62, %v2323_v19  ;;  %v5962_v40 = vld [vmem:[%s8055_s11 + $0xc8] ss:$12 sps:$4 sm:$0xff]   ;;  %v5963_v41 = vld [vmem:[%s8055_s11 + $0xe0] ss:$12 sps:$4 sm:$0xff]  }
 0xe05   :  { %v2394_v45 = vmul.f32 0.5, %v2386_v44  ;;  %v2400_v3 = vmul.f32 %v2392_v56, %v2325_v36  ;;  %v5938_v36 = vld [vmem:[%s8055_s11 + $0xc0] ss:$12 sps:$4 sm:$0xff]   ;;  %5651 = vmatprep.subr.bf16.mxu1 %v5962_v40 }
 0xe06   :  { %v2401_v61 = vmul.f32 %v2393_v59, %v2327_v29  ;;  %2843 = vmatpush1.bf16.msra.mxu0 %v5938_v36  ;;  %5652 = vmatpush3.bf16.msra.mxu1 %v5962_v40 }
 0xe07   :  { %v2402_v4 = vmul.f32 %v2394_v45, %v2329_v49  ;;  %2844 = vmatprep.subr.bf16.mxu0 %v5943_v32  ;;  %5653 = vmatprep.subr.bf16.mxu1 %v5963_v41 }
 0xe08   :  { %v2405_v46 = vpack.c.bf16 %v2401_v61, %v2399_v60 }
 0xe09   :  { %v2406_v48 = vpack.c.bf16 %v2402_v4, %v2400_v3 }
 0xe0a   :  { %5654 = vmatpush3.bf16.msra.mxu1 %v5963_v41 }
 0xe0b   :  { %2582 = vmatprep.mubr.bf16.mxu1 %v2406_v48 }
 0xe0c   :  { %2583 = vmatmul.mubr.bf16.gmra.mrb[48].mxu1 %v2405_v46 }
 0xe47   :  { %v5375_v51 = vpop.f32.mrb[44].mxu1 }
 0xe48   :  { %v5376_v1 = vpop.f32.mrb[45].mxu1 }
 0xe49   :  { %v5377_v52 = vadd.f32 %v5376_v1, %v5375_v51  ;;  %v5378_v54 = vpop.f32.mrb[46].mxu1 }
 0xe4a   :  { %v5379_v17 = vpop.f32.mrb[47].mxu1 }
 0xe4b   :  { %v2577_v20 = vadd.f32 %v5377_v52, %v5090_v9  ;;  %v5380_v57 = vadd.f32 %v5379_v17, %v5378_v54  ;;  %v5107_v54 = vld [vmem:[#allocation18] ss:$0 sm:$0xff] }
 0xe4d   :  { %v2580_v26 = vadd.f32 %v5380_v57, %v5090_v9  ;;  %v2591_v19 = vadd.f32 %v2577_v20, %v7370_v30  ;;  %v5941_v30 = vld [vmem:[%s8055_s11 + $0xd8] ss:$12 sps:$4 sm:$0xff]  }
 0xe4e   :  { %2845 = vmatpush1.bf16.msra.mxu0 %v5941_v30  ;;  %v5964_v30 = vld [vmem:[%s8055_s11 + $0xf8] ss:$12 sps:$4 sm:$0xff]  }
 0xe4f   :  { %2597 = vadd.xlane.f32.xlu0 %v2591_v19  ;;  %v2592_v23 = vadd.f32 %v2580_v26, %v7372_v21  ;;  %2846 = vmatprep.subr.bf16.mxu0 %v5946_v38 }
 0xe50   :  { %5655 = vmatprep.subr.bf16.mxu1 %v5964_v30 }
 0xe51   :  { %2599 = vadd.xlane.f32.xlu1 %v2592_v23  ;;  %5656 = vmatpush3.bf16.msra.mxu1 %v5964_v30 }
 0xe52   :  { %2847 = vmatpush1.bf16.msra.mxu0 %v5944_v24 }
 0xe53   :  { %2848 = vmatprep.subr.bf16.mxu0 %v5949_v47  ;;  %v2697_v47 = vld [vmem:[#allocation12 + $0x3] sm:$0x7] }
 0xedc   :  { %v2598_v21 = vpop.xlane.xlu0 %2597 }
 0xedd   :  { %v2605_v29 = vmul.f32 0.0078125, %v2598_v21  ;;  %v5965_v21 = vld [vmem:[%s8055_s11 + $0x110] ss:$12 sps:$4 sm:$0xff]  }
 0xede   :  { %v2600_v37 = vpop.xlane.xlu1 %2599  ;;  %5657 = vmatprep.subr.bf16.mxu1 %v5965_v21 }
 0xedf   :  { %v7455_v39 = vsub.f32 %v2591_v19, %v2605_v29  ;;  %v2606_v49 = vmul.f32 0.0078125, %v2600_v37  ;;  %v5381_v12 = vpop.f32.mrb[48].mxu1  ;;  %v5108_v19 = vld [vmem:[#allocation20] ss:$0 sm:$0xff]  ;;  %v5966_v29 = vld [vmem:[%s8055_s11 + $0x128] ss:$12 sps:$4 sm:$0xff]   ;;  %5658 = vmatpush3.bf16.msra.mxu1 %v5965_v21 }
 0xee0   :  { %v5382_v25 = vpop.f32.mrb[49].mxu1  ;;  %5659 = vmatprep.subr.bf16.mxu1 %v5966_v29  ;;  %v5967_v37 = vld [vmem:[%s8055_s11 + $0x140] ss:$12 sps:$4 sm:$0xff]  }
 0xee1   :  { %v7457_v0 = vsub.f32 %v2592_v23, %v2606_v49  ;;  %v5383_v53 = vadd.f32 %v5382_v25, %v5381_v12  ;;  %v5384_v34 = vpop.f32.mrb[50].mxu1  ;;  %v2613_v13 = vmul.f32 %v7455_v39, %v7455_v39  ;;  %v5969_v49 = vld [vmem:[%s8055_s11 + $0x170] ss:$12 sps:$4 sm:$0xff]  }
 0xee2   :  { %v5385_v42 = vpop.f32.mrb[51].mxu1 }
 0xee3   :  { %v2585_v15 = vadd.f32 %v5383_v53, %v5090_v9  ;;  %v5386_v16 = vadd.f32 %v5385_v42, %v5384_v34  ;;  %2617 = vadd.xlane.f32.xlu0 %v2613_v13  ;;  %v2614_v18 = vmul.f32 %v7457_v0, %v7457_v0  ;;  %5660 = vmatpush3.bf16.msra.mxu1 %v5966_v29 }
 0xee4   :  { %5661 = vmatprep.subr.bf16.mxu1 %v5967_v37 }
 0xee5   :  { %v2588_v14 = vadd.f32 %v5386_v16, %v5090_v9  ;;  %2619 = vadd.xlane.f32.xlu1 %v2614_v18  ;;  %v2593_v22 = vadd.f32 %v2585_v15, %v7426_v2  ;;  %v5947_v2 = vld [vmem:[%s8055_s11 + $0x108] ss:$12 sps:$4 sm:$0xff]  }
 0xee6   :  { %2849 = vmatpush1.bf16.msra.mxu0 %v5947_v2  ;;  %v2702_v2 = vrot.slane %v2697_v47, %v7024_v8 }
 0xee7   :  { %2601 = vadd.xlane.f32.xlu0 %v2593_v22  ;;  %v2594_v28 = vadd.f32 %v2588_v14, %v7428_v58  ;;  %v5952_v58 = vld [vmem:[%s8055_s11 + $0x124] ss:$12 sps:$4 sm:$0xff]   ;;  %5662 = vmatpush3.bf16.msra.mxu1 %v5967_v37 }
 0xee8   :  { %2850 = vmatprep.subr.bf16.mxu0 %v5952_v58 }
 0xee9   :  { %2603 = vadd.xlane.f32.xlu1 %v2594_v28 }
 0xeea   :  { %2851 = vmatpush1.bf16.msra.mxu0 %v5950_v55  ;;  %v2706_v55 = vrot.slane %v2697_v47, %v7027_v10 }
 0xeeb   :  { %2852 = vmatprep.subr.bf16.mxu0 %v5955_v43 }
 0xeee   :  { %2853 = vmatpush1.bf16.msra.mxu0 %v5953_v27 }
 0xeef   :  { %2854 = vmatprep.subr.bf16.mxu0 %v5958_v6 }
 0xef2   :  { %2855 = vmatpush1.bf16.msra.mxu0 %v5956_v50 }
 0xef3   :  { %2856 = vmatprep.subr.bf16.mxu0 %v5961_v33 }
 0xef6   :  { %2857 = vmatpush1.bf16.msra.mxu0 %v5959_v35 }
 0xef7   :  { %5671 = vmatprep.subr.bf16.mxu0 %v6582_v5 }
 0xf70   :  { %v2618_v62 = vpop.xlane.xlu0 %2617 }
 0xf71   :  { %v2625_v44 = vmul.f32 0.0078125, %v2618_v62 }
 0xf72   :  { %v2620_v56 = vpop.xlane.xlu1 %2619 }
 0xf73   :  { %v2629_v59 = vadd.f32 1e-05, %v2625_v44  ;;  %v2626_v45 = vmul.f32 0.0078125, %v2620_v56  ;;  %v2710_v56 = vrot.slane %v2697_v47, %v686_v11 }
 0xf74   :  { %v2602_v60 = vpop.xlane.xlu0 %2601 }
 0xf75   :  { %6132 = vrsqrt.f32 %v2629_v59  ;;  %v2630_v61 = vadd.f32 1e-05, %v2626_v45  ;;  %v2607_v3 = vmul.f32 0.0078125, %v2602_v60 }
 0xf76   :  { %v2604_v4 = vpop.xlane.xlu1 %2603 }
 0xf77   :  { %6134 = vrsqrt.f32 %v2630_v61  ;;  %v2611_v46 = vsub.f32 %v2593_v22, %v2607_v3  ;;  %v2608_v48 = vmul.f32 0.0078125, %v2604_v4 }
 0xf79   :  { %v2612_v51 = vsub.f32 %v2594_v28, %v2608_v48  ;;  %v2615_v9 = vmul.f32 %v2611_v46, %v2611_v46 }
 0xf7b   :  { %2621 = vadd.xlane.f32.xlu0 %v2615_v9  ;;  %v2616_v1 = vmul.f32 %v2612_v51, %v2612_v51 }
 0xf7d   :  { %2623 = vadd.xlane.f32.xlu1 %v2616_v1 }
 0xf7f   :  { %v6133_v52 = vpop.eup %6132 }
 0xf80   :  { %v2637_v17 = vmul.f32 %v6133_v52, %v7455_v39  ;;  %v5968_v39 = vld [vmem:[%s8055_s11 + $0x158] ss:$12 sps:$4 sm:$0xff]   ;;  %s6586_s11 = smov [#allocation22]  }
 0xf81   :  { %v6135_v20 = vpop.eup %6134  ;;  %5663 = vmatprep.subr.bf16.mxu1 %v5968_v39 }
 0xf82   :  { %v2647_v57 = vmul.f32 %v5107_v54, %v2637_v17  ;;  %v2638_v26 = vmul.f32 %v6135_v20, %v7457_v0  ;;  %5664 = vmatpush3.bf16.msra.mxu1 %v5968_v39 }
 0xf83   :  { %5665 = vmatprep.subr.bf16.mxu1 %v5969_v49 }
 0xf84   :  { %v2648_v23 = vmul.f32 %v5107_v54, %v2638_v26  ;;  %v7510_v36 = vadd.f32 %v5108_v19, %v2647_v57 }
 0xf86   :  { %v7512_v63 = vadd.f32 %v5108_v19, %v2648_v23  ;;  %5666 = vmatpush3.bf16.msra.mxu1 %v5969_v49 }
 0xf87   :  { %5689 = vmatprep.subr.bf16.mxu1 %v6582_v5 }
 0xf88   :  { %v2661_v32 = vpack.c.bf16 %v7512_v63, %v7510_v36 }
 0xf8a   :  { %2875 = vmatmul.mubr.bf16.vlgmr.msra.gmra.mrb[52].mxu0 %v2661_v32  ;;  %5667 = vmatprep.mubr.bf16.mxu1 %v2661_v32 }
 0xf8b   :  { %2884 = vmatprep.mubr.bf16.mxu0 %v6581_v31 }
0x1008   :  { %v2622_v12 = vpop.xlane.xlu0 %2621 }
0x1009   :  { %v2627_v25 = vmul.f32 0.0078125, %v2622_v12 }
0x100a   :  { %v2624_v0 = vpop.xlane.xlu1 %2623 }
0x100b   :  { %v2631_v53 = vadd.f32 1e-05, %v2627_v25  ;;  %v2628_v34 = vmul.f32 0.0078125, %v2624_v0 }
0x100d   :  { %6136 = vrsqrt.f32 %v2631_v53  ;;  %v2632_v13 = vadd.f32 1e-05, %v2628_v34 }
0x100f   :  { %6138 = vrsqrt.f32 %v2632_v13 }
0x1017   :  { %v6137_v42 = vpop.eup %6136 }
0x1018   :  { %v2639_v15 = vmul.f32 %v6137_v42, %v2611_v46 }
0x1019   :  { %v6139_v16 = vpop.eup %6138 }
0x101a   :  { %v2640_v18 = vmul.f32 %v6139_v16, %v2612_v51  ;;  %v2649_v14 = vmul.f32 %v5107_v54, %v2639_v15 }
0x101c   :  { %v2650_v22 = vmul.f32 %v5107_v54, %v2640_v18  ;;  %v7536_v28 = vadd.f32 %v5108_v19, %v2649_v14 }
0x101e   :  { %v7538_v38 = vadd.f32 %v5108_v19, %v2650_v22 }
0x1020   :  { %v2662_v24 = vpack.c.bf16 %v7538_v38, %v7536_v28 }
0x1022   :  { %2885 = vmatmul.mubr.bf16.gmra.mrb[56].mxu0 %v2662_v24  ;;  %5668 = vmatmul.mubr.bf16.vlgmr.msra.gmra.mrb[52].mxu1 %v2662_v24 }
0x1023   :  { %5673 = vmatprep.mubr.msk.bf16.mxu0 %vm6583_vm0, %v6582_v5  ;;  %5691 = vmatprep.mubr.msk.bf16.mxu1 %vm6583_vm0, %v6582_v5 }
0x105d   :  { %v2876_v58 = vpop.f32.mrb[52].mxu0 }
0x105e   :  { %v2878_v43 = vpop.f32.mrb[53].mxu0  ;;  %v2877_v6 = vadd.f32 %v2876_v58, %v2702_v2 }
0x105f   :  { %v2880_v27 = vpop.f32.mrb[54].mxu0  ;;  %v2879_v35 = vadd.f32 %v2878_v43, %v2706_v55 }
0x1060   :  { %v2881_v50 = vadd.f32 %v2880_v27, %v2702_v2  ;;  %v2882_v33 = vpop.f32.mrb[55].mxu0 }
0x1061   :  { %v2883_v40 = vadd.f32 %v2882_v33, %v2706_v55 }
0x1062   :  { %v2944_v41 = vpack.c.bf16 %v2881_v50, %v2877_v6 }
0x1063   :  { %v2946_v62 = vpack.c.bf16 %v2883_v40, %v2879_v35 }
0x1065   :  { %v2954_v44 = vsel %vm927_vm1, %v2946_v62, 0 }
0x1066   :  { %5672 = vmatpush3.bf16.xpose.msra.mxu0 %v2954_v44 }
0x1067   :  { %5677 = vmatprep.subr.bf16.mxu0 %v6582_v5 }
0x106d   :  { %5674 = vmatmul.mubr.msk.bf16.vlgmr.msra.gmra.mrb[60].mxu0 %vm927_vm1, %v2944_v41 }
0x106e   :  { %5679 = vmatprep.mubr.msk.bf16.mxu0 %vm6583_vm0, %v6582_v5 }
0x10f5   :  { %v2886_v59 = vpop.f32.mrb[56].mxu0  ;;  %v5669_v45 = vpop.f32.mrb[52].mxu1 }
0x10f6   :  { %v2938_v60 = vadd.f32 %v5669_v45, %v2710_v56  ;;  %v2888_v61 = vpop.f32.mrb[57].mxu0  ;;  %v2929_v3 = vpop.f32.mrb[53].mxu1  ;;  %v2887_v48 = vadd.f32 %v2886_v59, %v2702_v2 }
0x10f7   :  { %v2890_v4 = vpop.f32.mrb[58].mxu0  ;;  %v5670_v46 = vpop.f32.mrb[54].mxu1  ;;  %v2889_v54 = vadd.f32 %v2888_v61, %v2706_v55  ;;  %v2930_v17 = vadd.f32 %v2929_v3, %v2710_v56 }
0x10f8   :  { %v2891_v51 = vadd.f32 %v2890_v4, %v2702_v2  ;;  %v2941_v9 = vadd.f32 %v5670_v46, %v2710_v56  ;;  %v2892_v1 = vpop.f32.mrb[59].mxu0  ;;  %v2932_v52 = vpop.f32.mrb[55].mxu1 }
0x10f9   :  { %v2893_v20 = vadd.f32 %v2892_v1, %v2706_v55  ;;  %v2933_v57 = vadd.f32 %v2932_v52, %v2710_v56 }
0x10fa   :  { %v7555_v26 = vpack.c.bf16 %v2891_v51, %v2887_v48  ;;  %v7557_v7 = vpack.c.bf16 %v2941_v9, %v2938_v60 }
0x10fb   :  { %v7559_v11 = vpack.c.bf16 %v2893_v20, %v2889_v54  ;;  %v7561_v19 = vpack.c.bf16 %v2933_v57, %v2930_v17 }
0x10fd   :  { %5678 = vmatpush3.bf16.msra.mxu0 %v7561_v19  ;;  %v3474_v44 = vsel %vm927_vm1, %v7559_v11, 0 }
0x10fe   :  { %5683 = vmatprep.subr.bf16.mxu0 %v6582_v5 }
0x1140   :  { %v2990_v23 = vpop.f32.mrb[60].mxu0 }
0x1141   :  { %v2997_v32 = vmul.f32 0.17677669, %v2990_v23  ;;  %v5675_v30 = vpop.f32.mrb[61].mxu0 }
0x1142   :  { %v2993_v21 = vpop.f32.mrb[62].mxu0 }
0x1143   :  { %v2998_v29 = vmul.f32 0.17677669, %v2993_v21  ;;  %v5676_v37 = vpop.f32.mrb[63].mxu0  ;;  %v2999_v39 = vsel %vm977_vm2, %v2997_v32, -inf }
0x1144   :  { %3000 = vmax.xlane.f32.xlu0 %v2999_v39 }
0x1145   :  { %v3002_v49 = vsel %vm977_vm2, %v2998_v29, -inf }
0x1146   :  { %3003 = vmax.xlane.f32.xlu1 %v3002_v49 }
0x11d1   :  { %v3001_v12 = vpop.xlane.xlu0 %3000 }
0x11d2   :  { %v3005_v25 = vsub.f32 %v2997_v32, %v3001_v12 }
0x11d3   :  { %v3004_v0 = vpop.xlane.xlu1 %3003 }
0x11d4   :  { %v3007_v53 = vmul.f32 1.442695, %v3005_v25  ;;  %v3006_v34 = vsub.f32 %v2998_v29, %v3004_v0 }
0x11d6   :  { %6140 = vpow2.f32 %v3007_v53  ;;  %v3009_v13 = vmul.f32 1.442695, %v3006_v34 }
0x11d8   :  { %6142 = vpow2.f32 %v3009_v13 }
0x11e0   :  { %v6141_v42 = vpop.eup %6140 }
0x11e1   :  { %v3011_v15 = vsel %vm977_vm2, %v6141_v42, 0.0 }
0x11e2   :  { %v6143_v16 = vpop.eup %6142  ;;  %3012 = vadd.xlane.f32.xlu0 %v3011_v15 }
0x11e3   :  { %v3014_v18 = vsel %vm977_vm2, %v6143_v16, 0.0 }
0x11e4   :  { %3015 = vadd.xlane.f32.xlu1 %v3014_v18 }
0x11f5   :  { %3069 = vrot.lane.b32.xlu1 %v2944_v41, %s6584_s10 }
0x11f8   :  { %3072 = vrot.lane.b32.xlu0 %v2946_v62, %s6584_s10 }
0x11f9   :  { %3206 = vrot.lane.b32.xlu1 %v2946_v62, %s8097_s21 }
0x11fc   :  { %3339 = vrot.lane.b32.xlu0 %v2946_v62, %s6585_s29 }
0x11fd   :  { %3204 = vrot.lane.b32.xlu1 %v2944_v41, %s8097_s21 }
0x1200   :  { %3592 = vrot.lane.b32.xlu0 %v7559_v11, %s6584_s10 }
0x1201   :  { %3337 = vrot.lane.b32.xlu1 %v2944_v41, %s6585_s29 }
0x1204   :  { %3726 = vrot.lane.b32.xlu0 %v7559_v11, %s8097_s21 }
0x1205   :  { %3589 = vrot.lane.b32.xlu1 %v7555_v26, %s6584_s10 }
0x1208   :  { %3859 = vrot.lane.b32.xlu0 %v7559_v11, %s6585_s29 }
0x1209   :  { %3724 = vrot.lane.b32.xlu1 %v7555_v26, %s8097_s21 }
0x120d   :  { %3857 = vrot.lane.b32.xlu1 %v7555_v26, %s6585_s29 }
0x126f   :  { %v3013_v14 = vpop.xlane.xlu0 %3012 }
0x1270   :  { %6144 = vrcp.f32 %v3013_v14 }
0x1271   :  { %v3016_v22 = vpop.xlane.xlu1 %3015 }
0x1272   :  { %6146 = vrcp.f32 %v3016_v22 }
0x1273   :  { %v3073_v55 = vpop.permute.xlu0 %3072 }
0x1274   :  { %v3078_v6 = vsel %vm927_vm1, %v3073_v55, 0 }
0x1275   :  { %v3070_v27 = vpop.permute.xlu1 %3069 }
0x1277   :  { %v3340_v35 = vpop.permute.xlu0 %3339 }
0x1278   :  { %v3345_v41 = vsel %vm927_vm1, %v3340_v35, 0 }
0x1279   :  { %v3207_v50 = vpop.permute.xlu1 %3206 }
0x127a   :  { %v6145_v24 = vpop.eup %6144  ;;  %v3212_v33 = vsel %vm927_vm1, %v3207_v50, 0 }
0x127b   :  { %v3019_v2 = vmul.f32 %v6145_v24, %v6141_v42  ;;  %v3593_v56 = vpop.permute.xlu0 %3592 }
0x127c   :  { %v6147_v47 = vpop.eup %6146  ;;  %v3598_v59 = vsel %vm927_vm1, %v3593_v56, 0 }
0x127d   :  { %v3020_v58 = vmul.f32 %v6147_v47, %v6143_v16  ;;  %v3205_v40 = vpop.permute.xlu1 %3204 }
0x127f   :  { %v3021_v43 = vpack.c.bf16 %v3020_v58, %v3019_v2  ;;  %v3727_v45 = vpop.permute.xlu0 %3726 }
0x1280   :  { %v3732_v61 = vsel %vm927_vm1, %v3727_v45, 0 }
0x1281   :  { %5680 = vmatmul.mubr.msk.bf16.vlgmr.msra.gmra.mrb[64].mxu0 %vm977_vm2, %v3021_v43  ;;  %v3338_v62 = vpop.permute.xlu1 %3337 }
0x1282   :  { %5684 = vmatpush3.bf16.xpose.msra.mxu0 %v3078_v6  ;;  %5685 = vmatprep.mubr.msk.bf16.mxu0 %vm6583_vm0, %v6582_v5 }
0x1283   :  { %5695 = vmatprep.subr.bf16.mxu0 %v6582_v5  ;;  %v3860_v3 = vpop.permute.xlu0 %3859 }
0x1284   :  { %v3865_v46 = vsel %vm927_vm1, %v3860_v3, 0 }
0x1285   :  { %v3590_v60 = vpop.permute.xlu1 %3589 }
0x1289   :  { %5686 = vmatmul.mubr.msk.bf16.vlgmr.msra.gmra.mrb[68].mxu0 %vm927_vm1, %v3070_v27  ;;  %v3725_v4 = vpop.permute.xlu1 %3724 }
0x128a   :  { %5696 = vmatpush3.bf16.xpose.msra.mxu0 %v3212_v33  ;;  %5697 = vmatprep.mubr.msk.bf16.mxu0 %vm6583_vm0, %v6582_v5 }
0x128b   :  { %5707 = vmatprep.subr.bf16.mxu0 %v6582_v5 }
0x128d   :  { %v3858_v48 = vpop.permute.xlu1 %3857 }
0x1291   :  { %5698 = vmatmul.mubr.msk.bf16.vlgmr.msra.gmra.mrb[72].mxu0 %vm927_vm1, %v3205_v40 }
0x1292   :  { %5708 = vmatpush3.bf16.xpose.msra.mxu0 %v3345_v41  ;;  %5709 = vmatprep.mubr.msk.bf16.mxu0 %vm6583_vm0, %v6582_v5 }
0x1293   :  { %5719 = vmatprep.subr.bf16.mxu0 %v6582_v5 }
0x1299   :  { %5710 = vmatmul.mubr.msk.bf16.vlgmr.msra.gmra.mrb[76].mxu0 %vm927_vm1, %v3338_v62 }
0x129a   :  { %5720 = vmatpush3.bf16.xpose.msra.mxu0 %v3474_v44  ;;  %5721 = vmatprep.mubr.msk.bf16.mxu0 %vm6583_vm0, %v6582_v5 }
0x129b   :  { %5731 = vmatprep.subr.bf16.mxu0 %v6582_v5 }
0x12a1   :  { %5722 = vmatmul.mubr.msk.bf16.vlgmr.msra.gmra.mrb[80].mxu0 %vm927_vm1, %v7555_v26 }
0x12a2   :  { %5732 = vmatpush3.bf16.xpose.msra.mxu0 %v3598_v59  ;;  %5733 = vmatprep.mubr.msk.bf16.mxu0 %vm6583_vm0, %v6582_v5 }
0x12a3   :  { %5743 = vmatprep.subr.bf16.mxu0 %v6582_v5 }
0x12a9   :  { %5734 = vmatmul.mubr.msk.bf16.vlgmr.msra.gmra.mrb[84].mxu0 %vm927_vm1, %v3590_v60 }
0x12aa   :  { %5744 = vmatpush3.bf16.xpose.msra.mxu0 %v3732_v61  ;;  %5745 = vmatprep.mubr.msk.bf16.mxu0 %vm6583_vm0, %v6582_v5 }
0x12ab   :  { %5755 = vmatprep.subr.bf16.mxu0 %v6582_v5 }
0x12b1   :  { %5746 = vmatmul.mubr.msk.bf16.vlgmr.msra.gmra.mrb[88].mxu0 %vm927_vm1, %v3725_v4 }
0x12b2   :  { %5756 = vmatpush3.bf16.xpose.msra.mxu0 %v3865_v46  ;;  %5757 = vmatprep.mubr.msk.bf16.mxu0 %vm6583_vm0, %v6582_v5 }
0x12b9   :  { %5758 = vmatmul.mubr.msk.bf16.vlgmr.msra.gmra.mrb[92].mxu0 %vm927_vm1, %v3858_v48 }
0x1354   :  { %v3059_v51 = vpop.f32.mrb[64].mxu0 }
0x1355   :  { %3066 = vst.msk [vmem:[#allocation2] sm:$0xff] %vm927_vm1, %v3059_v51  ;;  %v5681_v9 = vpop.f32.mrb[65].mxu0 }
0x1356   :  { %v3062_v1 = vpop.f32.mrb[66].mxu0 }
0x1357   :  { %3067 = vst.msk [vmem:[#allocation2 + $0x8] sm:$0xff] %vm927_vm1, %v3062_v1  ;;  %v5682_v52 = vpop.f32.mrb[67].mxu0 }
0x135c   :  { %v3114_v54 = vpop.f32.mrb[68].mxu0 }
0x135d   :  { %v7626_v17 = vmul.f32 0.17677669, %v3114_v54  ;;  %v5687_v20 = vpop.f32.mrb[69].mxu0 }
0x135e   :  { %v3117_v57 = vpop.f32.mrb[70].mxu0 }
0x135f   :  { %v7628_v26 = vmul.f32 0.17677669, %v3117_v57  ;;  %v5688_v11 = vpop.f32.mrb[71].mxu0  ;;  %v3123_v23 = vsel %vm977_vm2, %v7626_v17, -inf }
0x1360   :  { %3124 = vmax.xlane.f32.xlu0 %v3123_v23 }
0x1361   :  { %v3126_v32 = vsel %vm977_vm2, %v7628_v26, -inf }
0x1362   :  { %3127 = vmax.xlane.f32.xlu1 %v3126_v32 }
0x1364   :  { %v3248_v30 = vpop.f32.mrb[72].mxu0 }
0x1365   :  { %v7634_v21 = vmul.f32 0.17677669, %v3248_v30  ;;  %v5699_v29 = vpop.f32.mrb[73].mxu0 }
0x1366   :  { %v3251_v37 = vpop.f32.mrb[74].mxu0 }
0x1367   :  { %v7636_v39 = vmul.f32 0.17677669, %v3251_v37  ;;  %v5700_v49 = vpop.f32.mrb[75].mxu0  ;;  %v3257_v12 = vsel %vm977_vm2, %v7634_v21, -inf }
0x1368   :  { %3258 = vmax.xlane.f32.xlu0 %v3257_v12 }
0x1369   :  { %v3260_v25 = vsel %vm977_vm2, %v7636_v39, -inf }
0x136c   :  { %v3381_v0 = vpop.f32.mrb[76].mxu0  ;;  %3261 = vmax.xlane.f32.xlu0 %v3260_v25 }
0x136d   :  { %v7642_v53 = vmul.f32 0.17677669, %v3381_v0  ;;  %v5711_v34 = vpop.f32.mrb[77].mxu0 }
0x136e   :  { %v3384_v13 = vpop.f32.mrb[78].mxu0 }
0x136f   :  { %v7644_v42 = vmul.f32 0.17677669, %v3384_v13  ;;  %v5712_v15 = vpop.f32.mrb[79].mxu0  ;;  %v3390_v16 = vsel %vm977_vm2, %v7642_v53, -inf }
0x1370   :  { %3391 = vmax.xlane.f32.xlu0 %v3390_v16 }
0x1371   :  { %v3393_v18 = vsel %vm977_vm2, %v7644_v42, -inf }
0x1372   :  { %3394 = vmax.xlane.f32.xlu1 %v3393_v18 }
0x1374   :  { %v3510_v14 = vpop.f32.mrb[80].mxu0 }
0x1375   :  { %v7650_v22 = vmul.f32 0.17677669, %v3510_v14  ;;  %v5723_v24 = vpop.f32.mrb[81].mxu0 }
0x1376   :  { %v3513_v47 = vpop.f32.mrb[82].mxu0 }
0x1377   :  { %v7652_v2 = vmul.f32 0.17677669, %v3513_v47  ;;  %v5724_v58 = vpop.f32.mrb[83].mxu0  ;;  %v3519_v55 = vsel %vm977_vm2, %v7650_v22, -inf }
0x1378   :  { %3520 = vmax.xlane.f32.xlu0 %v3519_v55 }
0x1379   :  { %v3522_v43 = vsel %vm977_vm2, %v7652_v2, -inf }
0x137a   :  { %3523 = vmax.xlane.f32.xlu1 %v3522_v43 }
0x137c   :  { %v3634_v27 = vpop.f32.mrb[84].mxu0 }
0x137d   :  { %v7658_v6 = vmul.f32 0.17677669, %v3634_v27  ;;  %v5735_v50 = vpop.f32.mrb[85].mxu0 }
0x137e   :  { %v3637_v33 = vpop.f32.mrb[86].mxu0 }
0x137f   :  { %v7660_v35 = vmul.f32 0.17677669, %v3637_v33  ;;  %v5736_v40 = vpop.f32.mrb[87].mxu0  ;;  %v3643_v41 = vsel %vm977_vm2, %v7658_v6, -inf }
0x1380   :  { %3644 = vmax.xlane.f32.xlu0 %v3643_v41 }
0x1381   :  { %v3646_v62 = vsel %vm977_vm2, %v7660_v35, -inf }
0x1382   :  { %3647 = vmax.xlane.f32.xlu1 %v3646_v62 }
0x1384   :  { %v3768_v44 = vpop.f32.mrb[88].mxu0 }
0x1385   :  { %v7666_v56 = vmul.f32 0.17677669, %v3768_v44  ;;  %v5747_v59 = vpop.f32.mrb[89].mxu0 }
0x1386   :  { %v3771_v45 = vpop.f32.mrb[90].mxu0 }
0x1387   :  { %v7668_v60 = vmul.f32 0.17677669, %v3771_v45  ;;  %v5748_v61 = vpop.f32.mrb[91].mxu0  ;;  %v3777_v3 = vsel %vm977_vm2, %v7666_v56, -inf }
0x1388   :  { %3778 = vmax.xlane.f32.xlu0 %v3777_v3 }
0x1389   :  { %v3780_v4 = vsel %vm977_vm2, %v7668_v60, -inf }
0x138a   :  { %3781 = vmax.xlane.f32.xlu1 %v3780_v4 }
0x138c   :  { %v3901_v46 = vpop.f32.mrb[92].mxu0 }
0x138d   :  { %v7674_v48 = vmul.f32 0.17677669, %v3901_v46  ;;  %v5759_v51 = vpop.f32.mrb[93].mxu0 }
0x138e   :  { %v3904_v9 = vpop.f32.mrb[94].mxu0 }
0x138f   :  { %v7676_v1 = vmul.f32 0.17677669, %v3904_v9  ;;  %v5760_v52 = vpop.f32.mrb[95].mxu0  ;;  %v3910_v54 = vsel %vm977_vm2, %v7674_v48, -inf }
0x1390   :  { %3911 = vmax.xlane.f32.xlu0 %v3910_v54 }
0x1391   :  { %v3913_v20 = vsel %vm977_vm2, %v7676_v1, -inf }
0x1392   :  { %3914 = vmax.xlane.f32.xlu1 %v3913_v20 }
0x13a3   :  { %3280 = vrot.lane.b32.xlu1 %v7561_v19, %s8097_s21 }
0x13a6   :  { %3147 = vrot.lane.b32.xlu0 %v7561_v19, %s6584_s10 }
0x13ed   :  { %v3125_v57 = vpop.xlane.xlu0 %3124 }
0x13ee   :  { %v3129_v11 = vsub.f32 %v7626_v17, %v3125_v57 }
0x13ef   :  { %v3128_v23 = vpop.xlane.xlu1 %3127 }
0x13f0   :  { %v3131_v32 = vmul.f32 1.442695, %v3129_v11  ;;  %v3130_v30 = vsub.f32 %v7628_v26, %v3128_v23 }
0x13f2   :  { %6148 = vpow2.f32 %v3131_v32  ;;  %v3133_v29 = vmul.f32 1.442695, %v3130_v30 }
0x13f4   :  { %6150 = vpow2.f32 %v3133_v29 }
0x13f5   :  { %v3259_v37 = vpop.xlane.xlu0 %3258 }
0x13f6   :  { %v3263_v49 = vsub.f32 %v7634_v21, %v3259_v37 }
0x13f8   :  { %v3265_v12 = vmul.f32 1.442695, %v3263_v49 }
0x13f9   :  { %v3262_v25 = vpop.xlane.xlu0 %3261 }
0x13fa   :  { %6152 = vpow2.f32 %v3265_v12  ;;  %v3264_v0 = vsub.f32 %v7636_v39, %v3262_v25 }
0x13fc   :  { %v7690_v34 = vpop.eup %6148  ;;  %v3267_v13 = vmul.f32 1.442695, %v3264_v0 }
0x13fd   :  { %v3392_v15 = vpop.xlane.xlu0 %3391  ;;  %v3135_v17 = vsel %vm977_vm2, %v7690_v34, 0.0 }
0x13fe   :  { %v7694_v16 = vpop.eup %6150  ;;  %6154 = vpow2.f32 %v3267_v13  ;;  %v3396_v26 = vsub.f32 %v7642_v53, %v3392_v15  ;;  %3136 = vadd.xlane.f32.xlu0 %v3135_v17 }
0x13ff   :  { %v3395_v18 = vpop.xlane.xlu1 %3394  ;;  %v3138_v21 = vsel %vm977_vm2, %v7694_v16, 0.0 }
0x1400   :  { %v3398_v14 = vmul.f32 1.442695, %v3396_v26  ;;  %v3397_v39 = vsub.f32 %v7644_v42, %v3395_v18  ;;  %3139 = vadd.xlane.f32.xlu1 %v3138_v21 }
0x1402   :  { %6156 = vpow2.f32 %v3398_v14  ;;  %v3400_v24 = vmul.f32 1.442695, %v3397_v39 }
0x1404   :  { %v7700_v47 = vpop.eup %6152  ;;  %6158 = vpow2.f32 %v3400_v24 }
0x1405   :  { %v3521_v58 = vpop.xlane.xlu0 %3520  ;;  %v3269_v55 = vsel %vm977_vm2, %v7700_v47, 0.0 }
0x1406   :  { %v3525_v53 = vsub.f32 %v7650_v22, %v3521_v58  ;;  %3270 = vadd.xlane.f32.xlu0 %v3269_v55 }
0x1407   :  { %v3524_v43 = vpop.xlane.xlu1 %3523 }
0x1408   :  { %v7705_v27 = vpop.eup %6154  ;;  %v3527_v50 = vmul.f32 1.442695, %v3525_v53  ;;  %v3526_v33 = vsub.f32 %v7652_v2, %v3524_v43 }
0x1409   :  { %v3272_v42 = vsel %vm977_vm2, %v7705_v27, 0.0 }
0x140a   :  { %6160 = vpow2.f32 %v3527_v50  ;;  %v3529_v40 = vmul.f32 1.442695, %v3526_v33  ;;  %3273 = vadd.xlane.f32.xlu1 %v3272_v42 }
0x140c   :  { %v7710_v41 = vpop.eup %6156  ;;  %6162 = vpow2.f32 %v3529_v40 }
0x140d   :  { %v3645_v62 = vpop.xlane.xlu0 %3644  ;;  %v3402_v22 = vsel %vm977_vm2, %v7710_v41, 0.0 }
0x140e   :  { %v7714_v44 = vpop.eup %6158  ;;  %v3649_v59 = vsub.f32 %v7658_v6, %v3645_v62  ;;  %3403 = vadd.xlane.f32.xlu0 %v3402_v22 }
0x140f   :  { %v3648_v45 = vpop.xlane.xlu1 %3647  ;;  %v3405_v2 = vsel %vm977_vm2, %v7714_v44, 0.0 }
0x1410   :  { %v3651_v61 = vmul.f32 1.442695, %v3649_v59  ;;  %v3650_v3 = vsub.f32 %v7660_v35, %v3648_v45  ;;  %3406 = vadd.xlane.f32.xlu1 %v3405_v2 }
0x1412   :  { %6164 = vpow2.f32 %v3651_v61  ;;  %v3653_v4 = vmul.f32 1.442695, %v3650_v3 }
0x1414   :  { %v7720_v46 = vpop.eup %6160  ;;  %6166 = vpow2.f32 %v3653_v4 }
0x1415   :  { %v3531_v51 = vsel %vm977_vm2, %v7720_v46, 0.0  ;;  %v3779_v35 = vpop.xlane.xlu0 %3778 }
0x1416   :  { %v7724_v9 = vpop.eup %6162  ;;  %3532 = vadd.xlane.f32.xlu0 %v3531_v51  ;;  %v3783_v26 = vsub.f32 %v7666_v56, %v3779_v35 }
0x1417   :  { %v3782_v6 = vpop.xlane.xlu1 %3781  ;;  %v3534_v52 = vsel %vm977_vm2, %v7724_v9, 0.0 }
0x1418   :  { %v3784_v54 = vsub.f32 %v7668_v60, %v3782_v6  ;;  %3535 = vadd.xlane.f32.xlu1 %v3534_v52  ;;  %v3785_v18 = vmul.f32 1.442695, %v3783_v26 }
0x141a   :  { %v3787_v20 = vmul.f32 1.442695, %v3784_v54 }
0x141c   :  { %v7729_v57 = vpop.eup %6164  ;;  %6168 = vpow2.f32 %v3787_v20 }
0x141d   :  { %v3912_v11 = vpop.xlane.xlu0 %3911  ;;  %v3655_v23 = vsel %vm977_vm2, %v7729_v57, 0.0 }
0x141e   :  { %v7733_v32 = vpop.eup %6166  ;;  %v3916_v30 = vsub.f32 %v7674_v48, %v3912_v11  ;;  %3656 = vadd.xlane.f32.xlu1 %v3655_v23 }
0x141f   :  { %v3915_v29 = vpop.xlane.xlu1 %3914  ;;  %v3658_v12 = vsel %vm977_vm2, %v7733_v32, 0.0 }
0x1420   :  { %v3918_v37 = vmul.f32 1.442695, %v3916_v30  ;;  %v3917_v49 = vsub.f32 %v7676_v1, %v3915_v29 }
0x1421   :  { %v3148_v60 = vpop.permute.xlu0 %3147 }
0x1422   :  { %6170 = vpow2.f32 %v3918_v37  ;;  %v3920_v25 = vmul.f32 1.442695, %v3917_v49  ;;  %5690 = vmatpush3.bf16.msra.mxu1 %v3148_v60  ;;  %3659 = vadd.xlane.f32.xlu1 %v3658_v12 }
0x1423   :  { %5701 = vmatprep.subr.bf16.mxu1 %v6582_v5  ;;  %v3281_v14 = vpop.permute.xlu1 %3280 }
0x1424   :  { %6172 = vpow2.f32 %v3920_v25 }
0x1425   :  { %6174 = vpow2.f32 %v3785_v18 }
0x1426   :  { %v7740_v0 = vpop.eup %6168 }
0x1427   :  { %v3792_v48 = vsel %vm977_vm2, %v7740_v0, 0.0 }
0x1428   :  { %3793 = vadd.xlane.f32.xlu1 %v3792_v48 }
0x142c   :  { %v7744_v13 = vpop.eup %6170  ;;  %3413 = vrot.lane.b32.xlu0 %v7561_v19, %s6585_s29 }
0x142d   :  { %v3922_v1 = vsel %vm977_vm2, %v7744_v13, 0.0 }
0x142e   :  { %v7750_v15 = vpop.eup %6172  ;;  %3923 = vadd.xlane.f32.xlu1 %v3922_v1 }
0x142f   :  { %v3925_v17 = vsel %vm977_vm2, %v7750_v15, 0.0  ;;  %v7757_v21 = vpop.eup %6174 }
0x1430   :  { %v3789_v19 = vsel %vm977_vm2, %v7757_v21, 0.0 }
0x1432   :  { %3926 = vadd.xlane.f32.xlu1 %v3925_v17 }
0x1443   :  { %3667 = vrot.lane.b32.xlu1 %v7557_v7, %s6584_s10 }
0x144b   :  { %3790 = vadd.xlane.f32.xlu0 %v3789_v19 }
0x1461   :  { %3800 = vrot.lane.b32.xlu0 %v7557_v7, %s8097_s21 }
0x1465   :  { %3933 = vrot.lane.b32.xlu0 %v7557_v7, %s6585_s29 }
0x148b   :  { %v3137_v39 = vpop.xlane.xlu0 %3136 }
0x148c   :  { %6176 = vrcp.f32 %v3137_v39 }
0x148d   :  { %v3140_v56 = vpop.xlane.xlu1 %3139 }
0x148e   :  { %6178 = vrcp.f32 %v3140_v56 }
0x1493   :  { %v3271_v24 = vpop.xlane.xlu0 %3270 }
0x1494   :  { %6180 = vrcp.f32 %v3271_v24 }
0x1496   :  { %v6177_v58 = vpop.eup %6176 }
0x1497   :  { %v3274_v55 = vpop.xlane.xlu1 %3273  ;;  %v3143_v43 = vmul.f32 %v6177_v58, %v7690_v34 }
0x1498   :  { %v6179_v53 = vpop.eup %6178  ;;  %6182 = vrcp.f32 %v3274_v55 }
0x1499   :  { %v3144_v50 = vmul.f32 %v6179_v53, %v7694_v16 }
0x149b   :  { %v3404_v33 = vpop.xlane.xlu0 %3403  ;;  %v3145_v42 = vpack.c.bf16 %v3144_v50, %v3143_v43 }
0x149c   :  { %6184 = vrcp.f32 %v3404_v33 }
0x149d   :  { %5692 = vmatmul.mubr.msk.bf16.vlgmr.msra.gmra.mrb[56].mxu1 %vm977_vm2, %v3145_v42  ;;  %v3407_v40 = vpop.xlane.xlu1 %3406 }
0x149e   :  { %5702 = vmatpush3.bf16.msra.mxu1 %v3281_v14  ;;  %6186 = vrcp.f32 %v3407_v40  ;;  %5703 = vmatprep.mubr.msk.bf16.mxu1 %vm6583_vm0, %v6582_v5  ;;  %v6181_v62 = vpop.eup %6180 }
0x149f   :  { %5713 = vmatprep.subr.bf16.mxu1 %v6582_v5  ;;  %v3277_v59 = vmul.f32 %v6181_v62, %v7700_v47 }
0x14a2   :  { %v6183_v22 = vpop.eup %6182 }
0x14a3   :  { %v3278_v34 = vmul.f32 %v6183_v22, %v7705_v27  ;;  %v3533_v16 = vpop.xlane.xlu0 %3532 }
0x14a4   :  { %6188 = vrcp.f32 %v3533_v16  ;;  %v5972_v16 = vld [vmem:[#allocation14 + $0x50] sm:$0xff]  }
0x14a5   :  { %v3536_v45 = vpop.xlane.xlu1 %3535  ;;  %v3279_v2 = vpack.c.bf16 %v3278_v34, %v3277_v59  ;;  %v5970_v59 = vld [vmem:[#allocation14 + $0x40] sm:$0xff]   ;;  %v5971_v34 = vld [vmem:[#allocation14 + $0x48] sm:$0xff]  }
0x14a6   :  { %6190 = vrcp.f32 %v3536_v45  ;;  %v6185_v61 = vpop.eup %6184  ;;  %5767 = vmatprep.subr.bf16.mxu0 %v5970_v59 }
0x14a7   :  { %v3414_v3 = vpop.permute.xlu0 %3413  ;;  %5704 = vmatmul.mubr.msk.bf16.vlgmr.msra.gmra.mrb[60].mxu1 %vm977_vm2, %v3279_v2  ;;  %v3410_v47 = vmul.f32 %v6185_v61, %v7710_v41  ;;  %5768 = vmatpush3.bf16.msra.mxu0 %v5970_v59 }
0x14a8   :  { %v6187_v4 = vpop.eup %6186  ;;  %5714 = vmatpush3.bf16.msra.mxu1 %v3414_v3  ;;  %5715 = vmatprep.mubr.msk.bf16.mxu1 %vm6583_vm0, %v6582_v5 }
0x14a9   :  { %v3411_v51 = vmul.f32 %v6187_v4, %v7714_v44  ;;  %5725 = vmatprep.subr.bf16.mxu1 %v6582_v5  ;;  %5769 = vmatprep.subr.bf16.mxu0 %v5971_v34  ;;  %v5973_v4 = vld [vmem:[#allocation14 + $0x58] sm:$0xff]  }
0x14ab   :  { %v3657_v27 = vpop.xlane.xlu1 %3656  ;;  %v3412_v6 = vpack.c.bf16 %v3411_v51, %v3410_v47  ;;  %5770 = vmatpush3.bf16.msra.mxu0 %v5971_v34  ;;  %v5974_v51 = vld [vmem:[#allocation14 + $0x60] sm:$0xff]   ;;  %v5975_v47 = vld [vmem:[#allocation14 + $0x68] sm:$0xff]  }
0x14ac   :  { %5771 = vmatprep.subr.bf16.mxu0 %v5972_v16 }
0x14ae   :  { %v6189_v52 = vpop.eup %6188 }
0x14af   :  { %5716 = vmatmul.mubr.msk.bf16.vlgmr.msra.gmra.mrb[64].mxu1 %vm977_vm2, %v3412_v6  ;;  %v3660_v20 = vpop.xlane.xlu1 %3659  ;;  %v3539_v44 = vmul.f32 %v6189_v52, %v7720_v46  ;;  %5772 = vmatpush3.bf16.msra.mxu0 %v5972_v16  ;;  %v5977_v52 = vld [vmem:[#allocation14 + $0x78] sm:$0xff]  }
0x14b0   :  { %v6191_v54 = vpop.eup %6190  ;;  %5726 = vmatpush3.bf16.msra.mxu1 %v7557_v7  ;;  %5727 = vmatprep.mubr.msk.bf16.mxu1 %vm6583_vm0, %v6582_v5  ;;  %6192 = vrcp.f32 %v3660_v20 }
0x14b1   :  { %v3540_v35 = vmul.f32 %v6191_v54, %v7724_v9  ;;  %5737 = vmatprep.subr.bf16.mxu1 %v6582_v5  ;;  %6194 = vrcp.f32 %v3657_v27  ;;  %5773 = vmatprep.subr.bf16.mxu0 %v5973_v4  ;;  %v5976_v27 = vld [vmem:[#allocation14 + $0x70] sm:$0xff]  }
0x14b3   :  { %v3541_v41 = vpack.c.bf16 %v3540_v35, %v3539_v44  ;;  %5774 = vmatpush3.bf16.msra.mxu0 %v5973_v4 }
0x14b4   :  { %5775 = vmatprep.subr.bf16.mxu0 %v5974_v51 }
0x14b5   :  { %v3794_v11 = vpop.xlane.xlu1 %3793 }
0x14b6   :  { %6196 = vrcp.f32 %v3794_v11 }
0x14b7   :  { %5728 = vmatmul.mubr.msk.bf16.vlgmr.msra.gmra.mrb[68].mxu1 %vm977_vm2, %v3541_v41  ;;  %5776 = vmatpush3.bf16.msra.mxu0 %v5974_v51  ;;  %v5986_v51 = vld [vmem:[%s8061_s17 + $0xa4] ss:$8 sps:$4 sm:$0xff]  }
0x14b8   :  { %5739 = vmatprep.mubr.msk.bf16.mxu1 %vm6583_vm0, %v6582_v5  ;;  %5777 = vmatprep.subr.bf16.mxu0 %v5975_v47 }
0x14ba   :  { %v6193_v23 = vpop.eup %6192 }
0x14bb   :  { %v3924_v7 = vpop.xlane.xlu1 %3923  ;;  %v6195_v29 = vpop.eup %6194  ;;  %v3664_v9 = vmul.f32 %v6193_v23, %v7733_v32  ;;  %5778 = vmatpush3.bf16.msra.mxu0 %v5975_v47  ;;  %v5984_v47 = vld [vmem:[%s8061_s17 + $0xa0] ss:$8 sps:$4 sm:$0xff]  }
0x14bc   :  { %v3663_v37 = vmul.f32 %v6195_v29, %v7729_v57  ;;  %5779 = vmatprep.subr.bf16.mxu0 %v5976_v27 }
0x14be   :  { %v3665_v46 = vpack.c.bf16 %v3664_v9, %v3663_v37 }
0x14bf   :  { %v3927_v30 = vpop.xlane.xlu1 %3926  ;;  %5780 = vmatpush3.bf16.msra.mxu0 %v5976_v27  ;;  %v5989_v27 = vld [vmem:[%s8061_s17 + $0xb4] ss:$8 sps:$4 sm:$0xff]  }
0x14c0   :  { %v6197_v57 = vpop.eup %6196  ;;  %5781 = vmatprep.subr.bf16.mxu0 %v5977_v52 }
0x14c1   :  { %v3798_v25 = vmul.f32 %v6197_v57, %v7740_v0 }
0x14c3   :  { %v3668_v49 = vpop.permute.xlu1 %3667  ;;  %5782 = vmatpush3.bf16.msra.mxu0 %v5977_v52  ;;  %v5990_v52 = vld [vmem:[%s8061_s17 + $0xc0] ss:$8 sps:$4 sm:$0xff]  }
0x14c4   :  { %5738 = vmatpush3.bf16.msra.mxu1 %v3668_v49 }
0x14c5   :  { %5749 = vmatprep.subr.bf16.mxu1 %v6582_v5 }
0x14c7   :  { %5740 = vmatmul.mubr.msk.bf16.vlgmr.msra.gmra.mrb[72].mxu1 %vm977_vm2, %v3665_v46 }
0x14c8   :  { %5751 = vmatprep.mubr.msk.bf16.mxu1 %vm6583_vm0, %v6582_v5 }
0x14d8   :  { %v3791_v60 = vpop.xlane.xlu0 %3790 }
0x14d9   :  { %6198 = vrcp.f32 %v3791_v60 }
0x14da   :  { %6200 = vrcp.f32 %v3927_v30 }
0x14db   :  { %6202 = vrcp.f32 %v3924_v7 }
0x14dc   :  { %v3801_v12 = vpop.permute.xlu0 %3800 }
0x14dd   :  { %5750 = vmatpush3.bf16.msra.mxu1 %v3801_v12 }
0x14de   :  { %5761 = vmatprep.subr.bf16.mxu1 %v6582_v5 }
0x14e0   :  { %v3934_v26 = vpop.permute.xlu0 %3933 }
0x14e3   :  { %v6199_v32 = vpop.eup %6198 }
0x14e4   :  { %v3797_v48 = vmul.f32 %v6199_v32, %v7757_v21  ;;  %v6201_v17 = vpop.eup %6200 }
0x14e5   :  { %v6203_v18 = vpop.eup %6202  ;;  %v3931_v19 = vmul.f32 %v6201_v17, %v7750_v15 }
0x14e6   :  { %v3799_v1 = vpack.c.bf16 %v3798_v25, %v3797_v48  ;;  %v3930_v14 = vmul.f32 %v6203_v18, %v7744_v13 }
0x14e8   :  { %5752 = vmatmul.mubr.msk.bf16.vlgmr.msra.gmra.mrb[76].mxu1 %vm977_vm2, %v3799_v1  ;;  %v3932_v39 = vpack.c.bf16 %v3931_v19, %v3930_v14  ;;  %v5182_v14 = vld [vmem:[%s8058_s14 + $0x1] ss:$0 sm:$0xff] }
0x14e9   :  { %5762 = vmatpush3.bf16.msra.mxu1 %v3934_v26  ;;  %5763 = vmatprep.mubr.msk.bf16.mxu1 %vm6583_vm0, %v6582_v5 }
0x14f0   :  { %5764 = vmatmul.mubr.msk.bf16.vlgmr.msra.gmra.mrb[80].mxu1 %vm977_vm2, %v3932_v39 }
0x14f1   :  { %4334 = vmatprep.mubr.bf16.mxu1 %v6581_v31 }
0x1570   :  { %v3187_v0 = vpop.f32.mrb[56].mxu1 }
0x1571   :  { %3196 = vrot.lane.b32.xlu0 %v3187_v0, %s6585_s29  ;;  %v5693_v21 = vpop.f32.mrb[57].mxu1 }
0x1572   :  { %v3190_v56 = vpop.f32.mrb[58].mxu1 }
0x1573   :  { %3198 = vrot.lane.b32.xlu1 %v3190_v56, %s6585_s29  ;;  %v5694_v24 = vpop.f32.mrb[59].mxu1 }
0x157a   :  { %v3320_v58 = vpop.f32.mrb[60].mxu1 }
0x157b   :  { %3329 = vrot.lane.b32.xlu0 %v3320_v58, %s8097_s21  ;;  %v5705_v55 = vpop.f32.mrb[61].mxu1 }
0x157c   :  { %v3323_v15 = vpop.f32.mrb[62].mxu1 }
0x157d   :  { %3331 = vrot.lane.b32.xlu1 %v3323_v15, %s8097_s21  ;;  %v5706_v13 = vpop.f32.mrb[63].mxu1 }
0x1582   :  { %v3453_v53 = vpop.f32.mrb[64].mxu1 }
0x1583   :  { %3462 = vrot.lane.b32.xlu0 %v3453_v53, %s6584_s10  ;;  %v5717_v43 = vpop.f32.mrb[65].mxu1 }
0x1584   :  { %v3456_v50 = vpop.f32.mrb[66].mxu1 }
0x1585   :  { %3464 = vrot.lane.b32.xlu1 %v3456_v50, %s6584_s10  ;;  %v5718_v33 = vpop.f32.mrb[67].mxu1  ;;  %v5978_v50 = vld [vmem:[%s8061_s17 + $0x80] ss:$8 sps:$4 sm:$0xff]  }
0x1586   :  { %v5980_v33 = vld [vmem:[%s8061_s17 + $0x84] ss:$8 sps:$4 sm:$0xff]  }
0x1587   :  { %4302 = vmatprep.subr.bf16.mxu1 %v5980_v33  ;;  %v6014_v33 = vld [vmem:[%s8063_s19 + $0xf0] sm:$0xff]  }
0x1588   :  { %4303 = vmatpush1.bf16.msra.mxu1 %v5978_v50  ;;  %v6013_v50 = vld [vmem:[%s8063_s19 + $0xa8] sm:$0xff]  }
0x158a   :  { %v3579_v42 = vpop.f32.mrb[68].mxu1 }
0x158b   :  { %3586 = vst.msk [vmem:[#allocation2 + $0x10] sm:$0xff] %vm927_vm1, %v3579_v42  ;;  %v5729_v40 = vpop.f32.mrb[69].mxu1 }
0x158c   :  { %v3582_v62 = vpop.f32.mrb[70].mxu1 }
0x158d   :  { %3587 = vst.msk [vmem:[#allocation2 + $0x18] sm:$0xff] %vm927_vm1, %v3582_v62  ;;  %v5730_v22 = vpop.f32.mrb[71].mxu1 }
0x159a   :  { %v3707_v45 = vpop.f32.mrb[72].mxu1 }
0x159b   :  { %3716 = vrot.lane.b32.xlu0 %v3707_v45, %s6585_s29  ;;  %v5741_v2 = vpop.f32.mrb[73].mxu1 }
0x159c   :  { %v3710_v61 = vpop.f32.mrb[74].mxu1 }
0x159d   :  { %3718 = vrot.lane.b32.xlu1 %v3710_v61, %s6585_s29  ;;  %v5742_v3 = vpop.f32.mrb[75].mxu1 }
0x15bb   :  { %v3840_v6 = vpop.f32.mrb[76].mxu1 }
0x15bc   :  { %3849 = vrot.lane.b32.xlu0 %v3840_v6, %s8097_s21  ;;  %v5753_v54 = vpop.f32.mrb[77].mxu1  ;;  %v5992_v6 = vld [vmem:[%s8061_s17 + $0xc4] ss:$8 sps:$4 sm:$0xff]  }
0x15bd   :  { %v3843_v35 = vpop.f32.mrb[78].mxu1  ;;  %v5995_v54 = vld [vmem:[%s8061_s17 + $0xd4] ss:$8 sps:$4 sm:$0xff]  }
0x15be   :  { %3851 = vrot.lane.b32.xlu1 %v3843_v35, %s8097_s21  ;;  %v5754_v20 = vpop.f32.mrb[79].mxu1  ;;  %v5993_v35 = vld [vmem:[%s8061_s17 + $0xd0] ss:$8 sps:$4 sm:$0xff]   ;;  %s4967_s21 = sshll.u32 %s6586_s11, 4  ;;  %s4968_s21 = int_to_ptr.vmem [resolvable:$true] %s4967_s21 }
0x15bf   :  { %v5996_v20 = vld [vmem:[%s8061_s17 + $0xe0] ss:$8 sps:$4 sm:$0xff]   ;;  %s6482_s14 = scalar_lea.vmem %s4968_s21, 512  ;;  %p6487_p5 = scmp.lt.s32.totalorder %s4968_s21, %s4968_s21 }
0x15c0   :  { %p6483_p4 = scmp.ne.s32.totalorder %s4968_s21, %s6482_s14  ;;  %p6488_p6 = scmp.lt.s32.totalorder %s6482_s14, %s6482_s14 }
0x15c2   :  { %p6489_p7 = por %p6488_p6, %p6487_p5 }
0x15c3   :  { %v3973_v44 = vpop.f32.mrb[80].mxu1 }
0x15c4   :  { %3982 = vrot.lane.b32.xlu0 %v3973_v44, %s6584_s10  ;;  %v5765_v41 = vpop.f32.mrb[81].mxu1  ;;  %v5998_v44 = vld [vmem:[%s8061_s17 + $0xe4] ss:$8 sps:$4 sm:$0xff]   ;;  %p6490_p8 = pnand %p6489_p7, %p6483_p4 }
0x15c5   :  { %v3976_v11 = vpop.f32.mrb[82].mxu1  ;;  %v6001_v41 = vld [vmem:[%s8061_s17 + $0xf4] ss:$8 sps:$4 sm:$0xff]  }
0x15c6   :  { %3984 = vrot.lane.b32.xlu1 %v3976_v11, %s6584_s10  ;;  %v5766_v7 = vpop.f32.mrb[83].mxu1  ;;  %v5999_v11 = vld [vmem:[%s8061_s17 + $0xf0] ss:$8 sps:$4 sm:$0xff]   ;;  %s6587_s10 = smov [#allocation21]  }
0x15c7   :  { %s4955_s29 = sshll.u32 %s6587_s10, 4  ;;  %s8001_s29 = int_to_ptr.vmem [resolvable:$true] %s4955_s29 }
0x15e3   :  { %v3197_v23 = vpop.permute.xlu0 %3196 }
0x15e4   :  { %3202 = vst.msk [vmem:[#allocation2] sm:$0xff] %vm1181_vm3, %v3197_v23 }
0x15e5   :  { %v3199_v30 = vpop.permute.xlu1 %3198 }
0x15e6   :  { %3203 = vst.msk [vmem:[#allocation2 + $0x8] sm:$0xff] %vm1181_vm3, %v3199_v30 }
0x15ed   :  { %v3330_v29 = vpop.permute.xlu0 %3329 }
0x15ee   :  { %3335 = vst.msk [vmem:[#allocation2] sm:$0xff] %vm1315_vm4, %v3330_v29 }
0x15ef   :  { %v3332_v9 = vpop.permute.xlu1 %3331 }
0x15f0   :  { %3336 = vst.msk [vmem:[#allocation2 + $0x8] sm:$0xff] %vm1315_vm4, %v3332_v9 }
0x15f5   :  { %v3463_v37 = vpop.permute.xlu0 %3462 }
0x15f6   :  { %3468 = vst.msk [vmem:[#allocation2] sm:$0xff] %vm1449_vm5, %v3463_v37 }
0x15f7   :  { %v3465_v49 = vpop.permute.xlu1 %3464 }
0x15f8   :  { %3469 = vst.msk [vmem:[#allocation2 + $0x8] sm:$0xff] %vm1449_vm5, %v3465_v49 }
0x15fd   :  { %v3990_v46 = vld [vmem:[#allocation2] sm:$0xff] }
0x15ff   :  { %v3991_v60 = vld [vmem:[#allocation2 + $0x8] sm:$0xff] }
0x1600   :  { %v3994_v12 = vpack.c.bf16 %v3991_v60, %v3990_v46 }
0x1602   :  { %5783 = vmatprep.mubr.bf16.mxu0 %v3994_v12 }
0x160d   :  { %v3717_v57 = vpop.permute.xlu0 %3716 }
0x160e   :  { %3722 = vst.msk [vmem:[#allocation2 + $0x10] sm:$0xff] %vm1181_vm3, %v3717_v57 }
0x160f   :  { %v3719_v32 = vpop.permute.xlu1 %3718 }
0x1610   :  { %3723 = vst.msk [vmem:[#allocation2 + $0x18] sm:$0xff] %vm1181_vm3, %v3719_v32 }
0x162e   :  { %v3850_v25 = vpop.permute.xlu0 %3849 }
0x162f   :  { %3855 = vst.msk [vmem:[#allocation2 + $0x10] sm:$0xff] %vm1315_vm4, %v3850_v25  ;;  %v5191_v25 = vld [vmem:[#allocation15 + $0x1] ss:$0 sm:$0xff] }
0x1630   :  { %v3852_v48 = vpop.permute.xlu1 %3851 }
0x1631   :  { %3856 = vst.msk [vmem:[#allocation2 + $0x18] sm:$0xff] %vm1315_vm4, %v3852_v48 }
0x1636   :  { %v3983_v1 = vpop.permute.xlu0 %3982 }
0x1637   :  { %3988 = vst.msk [vmem:[#allocation2 + $0x10] sm:$0xff] %vm1449_vm5, %v3983_v1 }
0x1638   :  { %v3985_v17 = vpop.permute.xlu1 %3984 }
0x1639   :  { %3989 = vst.msk [vmem:[#allocation2 + $0x18] sm:$0xff] %vm1449_vm5, %v3985_v17 }
0x163e   :  { %v3992_v26 = vld [vmem:[#allocation2 + $0x10] sm:$0xff] }
0x1640   :  { %v3993_v18 = vld [vmem:[#allocation2 + $0x18] sm:$0xff] }
0x1641   :  { %v3995_v19 = vpack.c.bf16 %v3993_v18, %v3992_v26  ;;  %v5192_v26 = vld [vmem:[#allocation17 + $0x1] ss:$0 sm:$0xff] }
0x1643   :  { %5784 = vmatmul.mubr.bf16.vlgmr.msra.gmra.mrb[96].mxu0 %v3995_v19 }
0x1716   :  { %v5785_v39 = vpop.f32.mrb[96].mxu0 }
0x1717   :  { %v4112_v0 = vadd.f32 %v5785_v39, %v5182_v14  ;;  %v4103_v21 = vpop.f32.mrb[97].mxu0 }
0x1718   :  { %v4104_v56 = vadd.f32 %v5182_v14, %v4103_v21  ;;  %v5786_v24 = vpop.f32.mrb[98].mxu0  ;;  %v6003_v21 = vld [vmem:[%s8063_s19 + $0x80] sm:$0xff]  }
0x1719   :  { %v4106_v58 = vpop.f32.mrb[99].mxu0  ;;  %v4115_v13 = vadd.f32 %v5786_v24, %v5182_v14  ;;  %v4120_v4 = vadd.f32 %v4112_v0, %v7536_v28  ;;  %v5987_v28 = vld [vmem:[%s8061_s17 + $0xb0] ss:$8 sps:$4 sm:$0xff]   ;;  %v6002_v0 = vld [vmem:[%s8063_s19 + $0xc0] sm:$0xff]   ;;  %v6005_v24 = vld [vmem:[%s8063_s19 + $0x88] sm:$0xff]  }
0x171a   :  { %v4118_v55 = vadd.f32 %v4104_v56, %v7510_v36  ;;  %v4107_v15 = vadd.f32 %v5182_v14, %v4106_v58  ;;  %v5983_v36 = vld [vmem:[%s8061_s17 + $0x94] ss:$8 sps:$4 sm:$0xff]   ;;  %5439 = vmatprep.subr.bf16.mxu0 %v6002_v0  ;;  %v6004_v56 = vld [vmem:[%s8063_s19 + $0xc8] sm:$0xff]  }
0x171b   :  { %v4121_v43 = vadd.f32 %v4115_v13, %v7538_v38  ;;  %4304 = vmatprep.subr.bf16.mxu1 %v5983_v36  ;;  %5440 = vmatpush3.bf16.msra.mxu0 %v6003_v21  ;;  %v6007_v58 = vld [vmem:[%s8063_s19 + $0x90] sm:$0xff]   ;;  %v6010_v13 = vld [vmem:[%s8063_s19 + $0xe0] sm:$0xff]  }
0x171c   :  { %v4119_v53 = vadd.f32 %v4107_v15, %v7512_v63  ;;  %4126 = vadd.xlane.f32.xlu0 %v4118_v55  ;;  %v5981_v63 = vld [vmem:[%s8061_s17 + $0x90] ss:$8 sps:$4 sm:$0xff]   ;;  %5441 = vmatprep.subr.bf16.mxu0 %v6004_v56 }
0x171d   :  { %4305 = vmatpush1.bf16.msra.mxu1 %v5981_v63  ;;  %v6009_v15 = vld [vmem:[%s8063_s19 + $0x98] sm:$0xff]   ;;  %v6015_v36 = vld [vmem:[%s8063_s19 + $0xb0] sm:$0xff]  }
0x171e   :  { %4128 = vadd.xlane.f32.xlu1 %v4119_v53  ;;  %4306 = vmatprep.subr.bf16.mxu1 %v5986_v51  ;;  %v6016_v63 = vld [vmem:[%s8063_s19 + $0xf8] sm:$0xff]  }
0x171f   :  { %5442 = vmatpush3.bf16.msra.mxu0 %v6005_v24 }
0x1721   :  { %4307 = vmatpush1.bf16.msra.mxu1 %v5984_v47 }
0x1722   :  { %4132 = vadd.xlane.f32.xlu1 %v4121_v43  ;;  %4308 = vmatprep.subr.bf16.mxu1 %v5989_v27 }
0x1725   :  { %4309 = vmatpush1.bf16.msra.mxu1 %v5987_v28 }
0x1726   :  { %4310 = vmatprep.subr.bf16.mxu1 %v5992_v6  ;;  %v5209_v6 = vld [vmem:[%s8062_s18 + $0x2] sm:$0x3] }
0x1729   :  { %4311 = vmatpush1.bf16.msra.mxu1 %v5990_v52  ;;  %v4219_v52 = vrot.slane %v5209_v6, %v7027_v10 }
0x172a   :  { %4312 = vmatprep.subr.bf16.mxu1 %v5995_v54 }
0x172d   :  { %4313 = vmatpush1.bf16.msra.mxu1 %v5993_v35 }
0x172e   :  { %4314 = vmatprep.subr.bf16.mxu1 %v5998_v44 }
0x1731   :  { %4315 = vmatpush1.bf16.msra.mxu1 %v5996_v20 }
0x1732   :  { %4316 = vmatprep.subr.bf16.mxu1 %v6001_v41 }
0x1735   :  { %4317 = vmatpush1.bf16.msra.mxu1 %v5999_v11 }
0x1736   :  { %5787 = vmatprep.subr.bf16.mxu1 %v6582_v5 }
0x17a9   :  { %v4127_v38 = vpop.xlane.xlu0 %4126 }
0x17aa   :  { %v4134_v42 = vmul.f32 0.0078125, %v4127_v38  ;;  %v6017_v38 = vld [vmem:[%s8063_s19 + $0xb8] sm:$0xff]  }
0x17ab   :  { %v4129_v40 = vpop.xlane.xlu1 %4128 }
0x17ac   :  { %v4138_v62 = vsub.f32 %v4118_v55, %v4134_v42  ;;  %v4135_v22 = vmul.f32 0.0078125, %v4129_v40  ;;  %v6008_v55 = vld [vmem:[%s8063_s19 + $0xd8] sm:$0xff]  }
0x17ae   :  { %v4139_v59 = vsub.f32 %v4119_v53, %v4135_v22  ;;  %v4142_v34 = vmul.f32 %v4138_v62, %v4138_v62  ;;  %v6011_v53 = vld [vmem:[%s8063_s19 + $0xa0] sm:$0xff]  }
0x17af   :  { %v4133_v16 = vpop.xlane.xlu1 %4132 }
0x17b0   :  { %v4137_v45 = vmul.f32 0.0078125, %v4133_v16  ;;  %4146 = vadd.xlane.f32.xlu0 %v4142_v34  ;;  %v4143_v61 = vmul.f32 %v4139_v59, %v4139_v59 }
0x17b2   :  { %v7849_v2 = vsub.f32 %v4121_v43, %v4137_v45  ;;  %v6012_v43 = vld [vmem:[%s8063_s19 + $0xe8] sm:$0xff]  }
0x17b4   :  { %4148 = vadd.xlane.f32.xlu0 %v4143_v61  ;;  %v4145_v3 = vmul.f32 %v7849_v2, %v7849_v2 }
0x17b6   :  { %4152 = vadd.xlane.f32.xlu1 %v4145_v3 }
0x17b8   :  { %4130 = vadd.xlane.f32.xlu0 %v4120_v4 }
0x183d   :  { %v4147_v7 = vpop.xlane.xlu0 %4146 }
0x183e   :  { %v4154_v23 = vmul.f32 0.0078125, %v4147_v7 }
0x1840   :  { %v4158_v30 = vadd.f32 1e-05, %v4154_v23 }
0x1841   :  { %v4149_v29 = vpop.xlane.xlu0 %4148 }
0x1842   :  { %6204 = vrsqrt.f32 %v4158_v30  ;;  %v4155_v9 = vmul.f32 0.0078125, %v4149_v29 }
0x1843   :  { %v4153_v42 = vpop.xlane.xlu1 %4152 }
0x1844   :  { %v4159_v37 = vadd.f32 1e-05, %v4155_v9  ;;  %v4157_v40 = vmul.f32 0.0078125, %v4153_v42 }
0x1845   :  { %v4131_v49 = vpop.xlane.xlu0 %4130 }
0x1846   :  { %6206 = vrsqrt.f32 %v4159_v37  ;;  %v4136_v46 = vmul.f32 0.0078125, %v4131_v49 }
0x1848   :  { %v4140_v60 = vsub.f32 %v4120_v4, %v4136_v46 }
0x184a   :  { %v4144_v12 = vmul.f32 %v4140_v60, %v4140_v60 }
0x184c   :  { %v6205_v57 = vpop.eup %6204  ;;  %4150 = vadd.xlane.f32.xlu0 %v4144_v12 }
0x184d   :  { %v4166_v32 = vmul.f32 %v6205_v57, %v4138_v62  ;;  %v4161_v62 = vadd.f32 1e-05, %v4157_v40 }
0x184f   :  { %v4176_v17 = vmul.f32 %v5191_v25, %v4166_v32  ;;  %6208 = vrsqrt.f32 %v4161_v62 }
0x1850   :  { %v6207_v48 = vpop.eup %6206 }
0x1851   :  { %v4167_v1 = vmul.f32 %v6207_v48, %v4139_v59  ;;  %v7891_v19 = vadd.f32 %v5192_v26, %v4176_v17 }
0x1853   :  { %v4177_v18 = vmul.f32 %v5191_v25, %v4167_v1 }
0x1855   :  { %v7893_v14 = vadd.f32 %v5192_v26, %v4177_v18 }
0x1857   :  { %v4190_v39 = vpack.c.bf16 %v7893_v14, %v7891_v19 }
0x1859   :  { %4335 = vmatmul.mubr.bf16.vlgmr.msra.gmra.mrb[84].mxu1 %v4190_v39  ;;  %v6209_v16 = vpop.eup %6208 }
0x185a   :  { %4344 = vmatprep.mubr.bf16.mxu1 %v6581_v31  ;;  %v6006_v31 = vld [vmem:[%s8063_s19 + $0xd0] sm:$0xff]   ;;  %v4169_v45 = vmul.f32 %v6209_v16, %v7849_v2  ;;  %v4215_v2 = vrot.slane %v5209_v6, %v7024_v8 }
0x185b   :  { %5443 = vmatprep.subr.bf16.mxu0 %v6006_v31 }
0x185c   :  { %5444 = vmatpush3.bf16.msra.mxu0 %v6007_v58  ;;  %v4179_v4 = vmul.f32 %v5191_v25, %v4169_v45 }
0x185d   :  { %5445 = vmatprep.subr.bf16.mxu0 %v6008_v55 }
0x185e   :  { %v7949_v27 = vadd.f32 %v5192_v26, %v4179_v4 }
0x1860   :  { %5446 = vmatpush3.bf16.msra.mxu0 %v6009_v15 }
0x1861   :  { %5447 = vmatprep.subr.bf16.mxu0 %v6010_v13 }
0x1864   :  { %5448 = vmatpush3.bf16.msra.mxu0 %v6011_v53 }
0x1865   :  { %5449 = vmatprep.subr.bf16.mxu0 %v6012_v43 }
0x1868   :  { %5450 = vmatpush3.bf16.msra.mxu0 %v6013_v50 }
0x1869   :  { %5451 = vmatprep.subr.bf16.mxu0 %v6014_v33 }
0x186c   :  { %5452 = vmatpush3.bf16.msra.mxu0 %v6015_v36 }
0x186d   :  { %5453 = vmatprep.subr.bf16.mxu0 %v6016_v63 }
0x1870   :  { %5454 = vmatpush3.bf16.msra.mxu0 %v6017_v38 }
0x18d9   :  { %v4151_v22 = vpop.xlane.xlu0 %4150 }
0x18da   :  { %v4156_v59 = vmul.f32 0.0078125, %v4151_v22 }
0x18dc   :  { %v4160_v34 = vadd.f32 1e-05, %v4156_v59 }
0x18de   :  { %6210 = vrsqrt.f32 %v4160_v34 }
0x18e8   :  { %v6211_v61 = vpop.eup %6210 }
0x18e9   :  { %v4168_v3 = vmul.f32 %v6211_v61, %v4140_v60 }
0x18eb   :  { %v4178_v51 = vmul.f32 %v5191_v25, %v4168_v3 }
0x18ed   :  { %v7947_v47 = vadd.f32 %v5192_v26, %v4178_v51 }
0x18ef   :  { %v4191_v28 = vpack.c.bf16 %v7949_v27, %v7947_v47 }
0x18f1   :  { %4345 = vmatmul.mubr.bf16.gmra.mrb[88].mxu1 %v4191_v28 }
0x18f2   :  { %5789 = vmatprep.mubr.msk.bf16.mxu1 %vm6583_vm0, %v6582_v5 }
0x192c   :  { %v4336_v54 = vpop.f32.mrb[84].mxu1 }
0x192d   :  { %v4337_v35 = vadd.f32 %v4336_v54, %v4215_v2  ;;  %v4338_v20 = vpop.f32.mrb[85].mxu1 }
0x192e   :  { %v4339_v44 = vadd.f32 %v4338_v20, %v4219_v52  ;;  %v4340_v41 = vpop.f32.mrb[86].mxu1 }
0x192f   :  { %v4355_v11 = vmul.f32 %v4337_v35, %v4337_v35  ;;  %v4341_v7 = vadd.f32 %v4340_v41, %v4215_v2  ;;  %v4342_v23 = vpop.f32.mrb[87].mxu1 }
0x1930   :  { %v4356_v30 = vmul.f32 %v4339_v44, %v4339_v44  ;;  %v4343_v29 = vadd.f32 %v4342_v23, %v4219_v52 }
0x1931   :  { %v4363_v9 = vmul.f32 %v4355_v11, %v4337_v35  ;;  %v4357_v37 = vmul.f32 %v4341_v7, %v4341_v7 }
0x1932   :  { %v4364_v49 = vmul.f32 %v4356_v30, %v4339_v44  ;;  %v4358_v46 = vmul.f32 %v4343_v29, %v4343_v29 }
0x1933   :  { %v4371_v60 = vmul.f32 0.044715, %v4363_v9  ;;  %v4365_v12 = vmul.f32 %v4357_v37, %v4341_v7 }
0x1934   :  { %v4372_v57 = vmul.f32 0.044715, %v4364_v49  ;;  %v4366_v8 = vmul.f32 %v4358_v46, %v4343_v29 }
0x1935   :  { %v4379_v32 = vadd.f32 %v4371_v60, %v4337_v35  ;;  %v4373_v10 = vmul.f32 0.044715, %v4365_v12 }
0x1936   :  { %v4380_v25 = vadd.f32 %v4372_v57, %v4339_v44  ;;  %v4374_v48 = vmul.f32 0.044715, %v4366_v8 }
0x1937   :  { %v4387_v1 = vmul.f32 0.7978846, %v4379_v32  ;;  %v4381_v17 = vadd.f32 %v4373_v10, %v4341_v7 }
0x1938   :  { %v4388_v26 = vmul.f32 0.7978846, %v4380_v25  ;;  %v4382_v18 = vadd.f32 %v4374_v48, %v4343_v29 }
0x1939   :  { %6212 = vtanh.f32 %v4387_v1  ;;  %v4389_v39 = vmul.f32 0.7978846, %v4381_v17 }
0x193a   :  { %6214 = vtanh.f32 %v4388_v26  ;;  %v4390_v0 = vmul.f32 0.7978846, %v4382_v18 }
0x193b   :  { %6216 = vtanh.f32 %v4389_v39 }
0x193c   :  { %6218 = vtanh.f32 %v4390_v0 }
0x1943   :  { %v6213_v21 = vpop.eup %6212 }
0x1944   :  { %v6215_v56 = vpop.eup %6214  ;;  %v4403_v24 = vadd.f32 1.0, %v6213_v21 }
0x1945   :  { %v6217_v31 = vpop.eup %6216  ;;  %v4404_v58 = vadd.f32 1.0, %v6215_v56 }
0x1946   :  { %v6219_v55 = vpop.eup %6218  ;;  %v4411_v15 = vmul.f32 0.5, %v4403_v24  ;;  %v4405_v13 = vadd.f32 1.0, %v6217_v31 }
0x1947   :  { %v4406_v53 = vadd.f32 1.0, %v6219_v55  ;;  %v4412_v43 = vmul.f32 0.5, %v4404_v58 }
0x1948   :  { %v4413_v50 = vmul.f32 0.5, %v4405_v13  ;;  %v4419_v36 = vmul.f32 %v4411_v15, %v4337_v35  ;;  %v5259_v15 = vld [vmem:[%s8064_s20 + $0x1] ss:$0 sm:$0xff] }
0x1949   :  { %v4414_v33 = vmul.f32 0.5, %v4406_v53  ;;  %v4420_v38 = vmul.f32 %v4412_v43, %v4339_v44 }
0x194a   :  { %v4421_v63 = vmul.f32 %v4413_v50, %v4341_v7 }
0x194b   :  { %v4422_v42 = vmul.f32 %v4414_v33, %v4343_v29 }
0x194c   :  { %v4427_v40 = vpack.c.bf16 %v4421_v63, %v4419_v36 }
0x194d   :  { %v4428_v62 = vpack.c.bf16 %v4422_v42, %v4420_v38 }
0x194f   :  { %4600 = vmatprep.mubr.bf16.mxu0 %v4428_v62 }
0x1950   :  { %4601 = vmatmul.mubr.bf16.vlgmr.msra.gmra.mrb[100].mxu0 %v4427_v40 }
0x19c4   :  { %v4346_v22 = vpop.f32.mrb[88].mxu1 }
0x19c5   :  { %v4347_v59 = vadd.f32 %v4346_v22, %v4215_v2  ;;  %v4348_v34 = vpop.f32.mrb[89].mxu1 }
0x19c6   :  { %v4349_v16 = vadd.f32 %v4348_v34, %v4219_v52  ;;  %v4350_v45 = vpop.f32.mrb[90].mxu1 }
0x19c7   :  { %v4359_v61 = vmul.f32 %v4347_v59, %v4347_v59  ;;  %v4351_v3 = vadd.f32 %v4350_v45, %v4215_v2  ;;  %v4352_v4 = vpop.f32.mrb[91].mxu1 }
0x19c8   :  { %v4360_v51 = vmul.f32 %v4349_v16, %v4349_v16  ;;  %v4353_v28 = vadd.f32 %v4352_v4, %v4219_v52 }
0x19c9   :  { %v4367_v6 = vmul.f32 %v4359_v61, %v4347_v59  ;;  %v4361_v54 = vmul.f32 %v4351_v3, %v4351_v3 }
0x19ca   :  { %v4368_v35 = vmul.f32 %v4360_v51, %v4349_v16  ;;  %v4362_v20 = vmul.f32 %v4353_v28, %v4353_v28 }
0x19cb   :  { %v4375_v44 = vmul.f32 0.044715, %v4367_v6  ;;  %v4369_v41 = vmul.f32 %v4361_v54, %v4351_v3 }
0x19cc   :  { %v4376_v11 = vmul.f32 0.044715, %v4368_v35  ;;  %v4370_v7 = vmul.f32 %v4362_v20, %v4353_v28 }
0x19cd   :  { %v4383_v23 = vadd.f32 %v4375_v44, %v4347_v59  ;;  %v4377_v30 = vmul.f32 0.044715, %v4369_v41  ;;  %v4693_v44 = vld [vmem:[%s8104_s2] sm:$0xf] }
0x19ce   :  { %v4384_v29 = vadd.f32 %v4376_v11, %v4349_v16  ;;  %v4378_v9 = vmul.f32 0.044715, %v4370_v7  ;;  %v4740_v41 = vunpack.c.l.bf16 %v4693_v44 }
0x19cf   :  { %v4391_v37 = vmul.f32 0.7978846, %v4383_v23  ;;  %v4385_v49 = vadd.f32 %v4377_v30, %v4351_v3 }
0x19d0   :  { %v4392_v46 = vmul.f32 0.7978846, %v4384_v29  ;;  %v4386_v60 = vadd.f32 %v4378_v9, %v4353_v28  ;;  %v4741_v11 = vsel %vm977_vm2, %v4740_v41, 0.0 }
0x19d1   :  { %6220 = vtanh.f32 %v4391_v37  ;;  %v4393_v2 = vmul.f32 0.7978846, %v4385_v49 }
0x19d2   :  { %6222 = vtanh.f32 %v4392_v46  ;;  %v4394_v52 = vmul.f32 0.7978846, %v4386_v60 }
0x19d3   :  { %6224 = vtanh.f32 %v4393_v2 }
0x19d4   :  { %6226 = vtanh.f32 %v4394_v52 }
0x19db   :  { %v6221_v12 = vpop.eup %6220 }
0x19dc   :  { %v6223_v57 = vpop.eup %6222  ;;  %v4407_v8 = vadd.f32 1.0, %v6221_v12 }
0x19dd   :  { %v6225_v32 = vpop.eup %6224  ;;  %v4408_v10 = vadd.f32 1.0, %v6223_v57 }
0x19de   :  { %v6227_v25 = vpop.eup %6226  ;;  %v4409_v48 = vadd.f32 1.0, %v6225_v32  ;;  %v4415_v1 = vmul.f32 0.5, %v4407_v8  ;;  %v5276_v8 = vld [vmem:[#allocation18 + $0x1] ss:$0 sm:$0xff] }
0x19df   :  { %v4410_v17 = vadd.f32 1.0, %v6227_v25  ;;  %v4416_v26 = vmul.f32 0.5, %v4408_v10  ;;  %v5277_v25 = vld [vmem:[#allocation20 + $0x1] ss:$0 sm:$0xff] }
0x19e0   :  { %v4417_v18 = vmul.f32 0.5, %v4409_v48  ;;  %v4423_v0 = vmul.f32 %v4415_v1, %v4347_v59 }
0x19e1   :  { %v4418_v39 = vmul.f32 0.5, %v4410_v17  ;;  %v4424_v56 = vmul.f32 %v4416_v26, %v4349_v16 }
0x19e2   :  { %v4425_v21 = vmul.f32 %v4417_v18, %v4351_v3 }
0x19e3   :  { %v4426_v24 = vmul.f32 %v4418_v39, %v4353_v28 }
0x19e4   :  { %v4429_v31 = vpack.c.bf16 %v4425_v21, %v4423_v0  ;;  %v5281_v0 = vld [vmem:[%s8104_s2 + $0x4] sm:$0xf] }
0x19e5   :  { %v4430_v58 = vpack.c.bf16 %v4426_v24, %v4424_v56  ;;  %v4869_v21 = vunpack.c.l.bf16 %v5281_v0 }
0x19e7   :  { %4608 = vmatprep.mubr.bf16.mxu0 %v4430_v58  ;;  %v4870_v56 = vsel %vm977_vm2, %v4869_v21, 0.0 }
0x19e8   :  { %4609 = vmatmul.mubr.bf16.gmra.mrb[104].mxu0 %v4429_v31 }
0x1a23   :  { %v5455_v55 = vpop.f32.mrb[100].mxu0 }
0x1a24   :  { %v5456_v13 = vpop.f32.mrb[101].mxu0 }
0x1a25   :  { %v5457_v53 = vadd.f32 %v5456_v13, %v5455_v55  ;;  %v5458_v43 = vpop.f32.mrb[102].mxu0 }
0x1a26   :  { %v5459_v50 = vpop.f32.mrb[103].mxu0 }
0x1a27   :  { %v4603_v33 = vadd.f32 %v5457_v53, %v5259_v15  ;;  %v5460_v36 = vadd.f32 %v5459_v50, %v5458_v43 }
0x1a29   :  { %v4606_v63 = vadd.f32 %v5460_v36, %v5259_v15  ;;  %v4617_v38 = vadd.f32 %v4603_v33, %v7891_v19 }
0x1a2b   :  { %4625 = vadd.xlane.f32.xlu0 %v4617_v38  ;;  %v4618_v42 = vadd.f32 %v4606_v63, %v7893_v14 }
0x1a2d   :  { %4627 = vadd.xlane.f32.xlu1 %v4618_v42 }
0x1ab8   :  { %v4626_v40 = vpop.xlane.xlu0 %4625 }
0x1ab9   :  { %v4633_v62 = vmul.f32 0.0078125, %v4626_v40 }
0x1aba   :  { %v4628_v22 = vpop.xlane.xlu1 %4627 }
0x1abb   :  { %v4637_v59 = vsub.f32 %v4617_v38, %v4633_v62  ;;  %v4634_v34 = vmul.f32 0.0078125, %v4628_v22  ;;  %v5461_v16 = vpop.f32.mrb[104].mxu0 }
0x1abc   :  { %v5462_v45 = vpop.f32.mrb[105].mxu0 }
0x1abd   :  { %v4638_v61 = vsub.f32 %v4618_v42, %v4634_v34  ;;  %v5463_v3 = vadd.f32 %v5462_v45, %v5461_v16  ;;  %v5464_v4 = vpop.f32.mrb[106].mxu0  ;;  %v4641_v51 = vmul.f32 %v4637_v59, %v4637_v59 }
0x1abe   :  { %v5465_v28 = vpop.f32.mrb[107].mxu0 }
0x1abf   :  { %v4611_v6 = vadd.f32 %v5463_v3, %v5259_v15  ;;  %v5466_v54 = vadd.f32 %v5465_v28, %v5464_v4  ;;  %4645 = vadd.xlane.f32.xlu0 %v4641_v51  ;;  %v4642_v19 = vmul.f32 %v4638_v61, %v4638_v61  ;;  %v6018_v51 = vld [vmem:[%s8105_s28] sm:$0xff]  }
0x1ac1   :  { %v4614_v35 = vadd.f32 %v5466_v54, %v5259_v15  ;;  %4647 = vadd.xlane.f32.xlu1 %v4642_v19  ;;  %v4619_v14 = vadd.f32 %v4611_v6, %v7947_v47 }
0x1ac3   :  { %4629 = vadd.xlane.f32.xlu0 %v4619_v14  ;;  %v4620_v20 = vadd.f32 %v4614_v35, %v7949_v27 }
0x1ac5   :  { %4631 = vadd.xlane.f32.xlu1 %v4620_v20 }
0x1ac7   :  { %4742 = vadd.xlane.f32.xlu0 %v4741_v11 }
0x1b4c   :  { %v4646_v7 = vpop.xlane.xlu0 %4645 }
0x1b4d   :  { %v4653_v23 = vmul.f32 0.0078125, %v4646_v7 }
0x1b4e   :  { %v4648_v30 = vpop.xlane.xlu1 %4647 }
0x1b4f   :  { %v4657_v29 = vadd.f32 1e-05, %v4653_v23  ;;  %v4654_v9 = vmul.f32 0.0078125, %v4648_v30 }
0x1b50   :  { %v4630_v37 = vpop.xlane.xlu0 %4629 }
0x1b51   :  { %6228 = vrsqrt.f32 %v4657_v29  ;;  %v4658_v47 = vadd.f32 1e-05, %v4654_v9  ;;  %v4635_v49 = vmul.f32 0.0078125, %v4630_v37 }
0x1b52   :  { %v4632_v46 = vpop.xlane.xlu1 %4631 }
0x1b53   :  { %6230 = vrsqrt.f32 %v4658_v47  ;;  %v4639_v27 = vsub.f32 %v4619_v14, %v4635_v49  ;;  %v4636_v60 = vmul.f32 0.0078125, %v4632_v46 }
0x1b54   :  { %v4743_v24 = vpop.xlane.xlu0 %4742 }
0x1b55   :  { %v4640_v2 = vsub.f32 %v4620_v20, %v4636_v60  ;;  %v4643_v52 = vmul.f32 %v4639_v27, %v4639_v27  ;;  %v4744_v62 = vmax.f32 %v4743_v24, 1.0 }
0x1b57   :  { %4649 = vadd.xlane.f32.xlu1 %v4643_v52  ;;  %v4644_v12 = vmul.f32 %v4640_v2, %v4640_v2 }
0x1b59   :  { %4651 = vadd.xlane.f32.xlu0 %v4644_v12 }
0x1b5b   :  { %v6229_v57 = vpop.eup %6228  ;;  %4871 = vadd.xlane.f32.xlu1 %v4870_v56 }
0x1b5c   :  { %v4665_v32 = vmul.f32 %v6229_v57, %v4637_v59 }
0x1b5d   :  { %v6231_v10 = vpop.eup %6230 }
0x1b5e   :  { %v4666_v48 = vmul.f32 %v6231_v10, %v4638_v61  ;;  %v4675_v1 = vmul.f32 %v5276_v8, %v4665_v32 }
0x1b60   :  { %v4676_v17 = vmul.f32 %v5276_v8, %v4666_v48  ;;  %v4685_v26 = vadd.f32 %v5277_v25, %v4675_v1 }
0x1b62   :  { %v4686_v18 = vadd.f32 %v5277_v25, %v4676_v17  ;;  %4689 = vst [vmem:[#allocation21] sm:$0xff] %v4685_v26 }
0x1b64   :  { %v4696_v39 = vpack.c.bf16 %v4686_v18, %v4685_v26  ;;  %4690 = vst [vmem:[#allocation21 + $0x8] sm:$0xff] %v4686_v18 }
0x1b66   :  { %5788 = vmatpush3.bf16.msra.mxu1 %v4696_v39 }
0x1b67   :  { %5793 = vmatprep.subr.bf16.mxu1 %v6582_v5 }
0x1b69   :  { %5790 = vmatmul.mubr.msk.bf16.vlgmr.msra.gmra.mrb[92].mxu1 %vm977_vm2, %v4693_v44 }
0x1b6a   :  { %5795 = vmatprep.mubr.msk.bf16.mxu1 %vm6583_vm0, %v6582_v5 }
0x1be4   :  { %v4650_v31 = vpop.xlane.xlu1 %4649 }
0x1be5   :  { %v4655_v58 = vmul.f32 0.0078125, %v4650_v31 }
0x1be6   :  { %v4652_v55 = vpop.xlane.xlu0 %4651 }
0x1be7   :  { %v4659_v15 = vadd.f32 1e-05, %v4655_v58  ;;  %v4656_v13 = vmul.f32 0.0078125, %v4652_v55 }
0x1be8   :  { %v4872_v6 = vpop.xlane.xlu1 %4871 }
0x1be9   :  { %6232 = vrsqrt.f32 %v4659_v15  ;;  %v4660_v53 = vadd.f32 1e-05, %v4656_v13  ;;  %v4873_v54 = vmax.f32 %v4872_v6, 1.0 }
0x1beb   :  { %6234 = vrsqrt.f32 %v4660_v53 }
0x1bec   :  { %6236 = vrcp.f32 %v4744_v62 }
0x1bed   :  { %6238 = vrcp.f32 %v4873_v54 }
0x1bf3   :  { %v6233_v43 = vpop.eup %6232 }
0x1bf4   :  { %v4667_v50 = vmul.f32 %v6233_v43, %v4639_v27  ;;  %v6019_v27 = vld [vmem:[%s8105_s28 + $0x8] sm:$0xff]  }
0x1bf5   :  { %v6235_v33 = vpop.eup %6234 }
0x1bf6   :  { %v4668_v36 = vmul.f32 %v6235_v33, %v4640_v2  ;;  %v4677_v63 = vmul.f32 %v5276_v8, %v4667_v50  ;;  %v6237_v22 = vpop.eup %6236 }
0x1bf7   :  { %v6239_v23 = vpop.eup %6238 }
0x1bf8   :  { %v4678_v38 = vmul.f32 %v5276_v8, %v4668_v36  ;;  %v4687_v42 = vadd.f32 %v5277_v25, %v4677_v63 }
0x1bfa   :  { %v7979_v40 = vadd.f32 %v5277_v25, %v4678_v38  ;;  %4691 = vst [vmem:[#allocation21 + $0x10] sm:$0xff] %v4687_v42 }
0x1bfc   :  { %4692 = vst [vmem:[#allocation21 + $0x18] sm:$0xff] %v7979_v40  ;;  %v4825_v28 = vpack.c.bf16 %v7979_v40, %v4687_v42 }
0x1c3c   :  { %v4734_v59 = vpop.f32.mrb[92].mxu1 }
0x1c3d   :  { %v4746_v34 = vmul.f32 %v6237_v22, %v4734_v59  ;;  %v5791_v16 = vpop.f32.mrb[93].mxu1 }
0x1c3e   :  { %v4737_v45 = vpop.f32.mrb[94].mxu1 }
0x1c3f   :  { %v4747_v61 = vpack.c.bf16 %v4746_v34, %v4746_v34  ;;  %v5792_v3 = vpop.f32.mrb[95].mxu1 }
0x1c41   :  { %v4759_v4 = vsel %vm4757_vm6, %v4747_v61, 0 }
0x1c42   :  { %5794 = vmatpush3.bf16.msra.mxu1 %v4759_v4 }
0x1c43   :  { %5799 = vmatprep.subr.bf16.mxu1 %v6582_v5 }
0x1c45   :  { %5796 = vmatmul.mubr.msk.bf16.vlgmr.msra.gmra.mrb[96].mxu1 %vm4753_vm7, %v6018_v51 }
0x1c46   :  { %5800 = vmatpush3.bf16.msra.mxu1 %v4825_v28  ;;  %5801 = vmatprep.mubr.msk.bf16.mxu1 %vm6583_vm0, %v6582_v5 }
0x1c47   :  { %5805 = vmatprep.subr.bf16.mxu1 %v6582_v5 }
0x1c4d   :  { %5802 = vmatmul.mubr.msk.bf16.vlgmr.msra.gmra.mrb[100].mxu1 %vm977_vm2, %v5281_v0 }
0x1c4e   :  { %5807 = vmatprep.mubr.msk.bf16.mxu1 %vm6583_vm0, %v6582_v5 }
0x1d18   :  { %v4795_v19 = vpop.f32.mrb[96].mxu1 }
0x1d19   :  { %4802 = vst [vmem:[#allocation22] sm:$0xff] %v4795_v19  ;;  %v4804_v35 = vsub.f32 %v4685_v26, %v4795_v19  ;;  %v5797_v14 = vpop.f32.mrb[97].mxu1 }
0x1d1a   :  { %v4798_v20 = vpop.f32.mrb[98].mxu1 }
0x1d1b   :  { %4803 = vst [vmem:[#allocation22 + $0x8] sm:$0xff] %v4798_v20  ;;  %v4805_v44 = vsub.f32 %v4686_v18, %v4798_v20  ;;  %v5798_v41 = vpop.f32.mrb[99].mxu1  ;;  %v4806_v11 = vmul.f32 %v4804_v35, %v4804_v35 }
0x1d1d   :  { %v4807_v7 = vmul.f32 %v4805_v44, %v4805_v44 }
0x1d1f   :  { %v4808_v30 = vadd.f32 %v4807_v7, %v4806_v11 }
0x1d20   :  { %v4863_v29 = vpop.f32.mrb[100].mxu1 }
0x1d21   :  { %v4875_v9 = vmul.f32 %v6239_v23, %v4863_v29  ;;  %4809 = vadd.xlane.f32.xlu0 %v4808_v30  ;;  %v5803_v37 = vpop.f32.mrb[101].mxu1 }
0x1d22   :  { %v4866_v5 = vpop.f32.mrb[102].mxu1 }
0x1d23   :  { %v4876_v47 = vpack.c.bf16 %v4875_v9, %v4875_v9  ;;  %v5804_v49 = vpop.f32.mrb[103].mxu1 }
0x1d25   :  { %v4886_v46 = vsel %vm4757_vm6, %v4876_v47, 0 }
0x1d26   :  { %5806 = vmatpush3.bf16.msra.mxu1 %v4886_v46 }
0x1d29   :  { %5808 = vmatmul.mubr.msk.bf16.vlgmr.msra.gmra.mrb[104].mxu1 %vm4753_vm7, %v6019_v27 }
0x1dae   :  { %v4810_v60 = vpop.xlane.xlu0 %4809 }
0x1daf   :  { %v4811_v2 = vrot.slane %v4810_v60, 4 }
0x1db1   :  { %v4812_v52 = vadd.f32 %v4811_v2, %v4810_v60 }
0x1db3   :  { %v4813_v12 = vrot.slane %v4812_v52, 2 }
0x1db5   :  { %v4814_v57 = vadd.f32 %v4813_v12, %v4812_v52 }
0x1db7   :  { %v4815_v8 = vrot.slane %v4814_v57, 1 }
0x1db9   :  { %v4816_v32 = vadd.f32 %v4815_v8, %v4814_v57 }
0x1dbb   :  { %5811 = vpush %v4816_v32 }
0x1dfc   :  { %v4922_v10 = vpop.f32.mrb[104].mxu1 }
0x1dfd   :  { %4929 = vst [vmem:[#allocation22 + $0x10] sm:$0xff] %v4922_v10  ;;  %v4931_v25 = vsub.f32 %v4687_v42, %v4922_v10  ;;  %v5809_v48 = vpop.f32.mrb[105].mxu1 }
0x1dfe   :  { %v4925_v1 = vpop.f32.mrb[106].mxu1 }
0x1dff   :  { %4930 = vst [vmem:[#allocation22 + $0x18] sm:$0xff] %v4925_v1  ;;  %v4932_v17 = vsub.f32 %v7979_v40, %v4925_v1  ;;  %v5810_v26 = vpop.f32.mrb[107].mxu1  ;;  %v4933_v18 = vmul.f32 %v4931_v25, %v4931_v25 }
0x1e01   :  { %v4934_v39 = vmul.f32 %v4932_v17, %v4932_v17 }
0x1e03   :  { %v4935_v0 = vadd.f32 %v4934_v39, %v4933_v18 }
0x1e05   :  { %4936 = vadd.xlane.f32.xlu1 %v4935_v0 }
0x1e06   :  { %6493 = shalt.err (!%p6490_p8)
}
0x1e07   :  { %s6494_s7 = scalar_lea.hbm %s8068_s24, 512 }
0x1e08   :  { %p6495_p9 = scmp.ne.s32.totalorder %s8068_s24, %s6494_s7  ;;  %p6498_p10 = scmp.lt.u32.totalorder %s6494_s7, %s8068_s24 }
0x1e0a   :  { %p6500_p11 = pnand %p6498_p10, %p6495_p9 }
0x1e0c   :  { %6503 = shalt.err (!%p6500_p11)
}
0x1e0d   :  { %s6588_s9 = smov 128   ;;  %s6589_s25 = smov 8  }
0x1e0e   :  { %4973 = dma.vmem_to_hbm [thread:$0]  %s4968_s21, 512, %s8068_s24, [#allocation23], %s6588_s9, %s6588_s9, %s6589_s25  }
0x1e0f   :  { %s6504_s27 = scalar_lea.vmem %s8001_s29, 512  ;;  %p6509_p13 = scmp.lt.s32.totalorder %s8001_s29, %s8001_s29 }
0x1e10   :  { %p6505_p12 = scmp.ne.s32.totalorder %s8001_s29, %s6504_s27  ;;  %p6510_p0 = scmp.lt.s32.totalorder %s6504_s27, %s6504_s27 }
0x1e12   :  { %p6511_p1 = por %p6510_p0, %p6509_p13 }
0x1e14   :  { %p6512_p2 = pnand %p6511_p1, %p6505_p12 }
0x1e16   :  { %6515 = shalt.err (!%p6512_p2)
}
0x1e17   :  { %s6516_s20 = scalar_lea.hbm %s8067_s23, 512 }
0x1e18   :  { %p6517_p3 = scmp.ne.s32.totalorder %s8067_s23, %s6516_s20  ;;  %p6520_p4 = scmp.lt.u32.totalorder %s6516_s20, %s8067_s23 }
0x1e1a   :  { %p6522_p5 = pnand %p6520_p4, %p6517_p3 }
0x1e1c   :  { %6525 = shalt.err (!%p6522_p5)
}
0x1e1d   :  { %4961 = dma.vmem_to_hbm [thread:$0]  %s8001_s29, 512, %s8067_s23, [#allocation5], %s6588_s9, %s6588_s9, %s6589_s25   ;;  %vm4948_vm8 = vcmask 0  }
0x1e1e   :  { %s5812_s5 = spop %5811  ;;  %s6590_s16 = smov [#allocation24]  }
0x1e1f   :  { %v4818_v13 = vstv %s5812_s5  ;;  %s4980_s15 = sshll.u32 %s6590_s16, 4  ;;  %s4981_s15 = int_to_ptr.vmem [resolvable:$true] %s4980_s15 }
0x1e20   :  { %s6526_s23 = scalar_lea.vmem %s4981_s15, 16  ;;  %s6530_s11 = scalar_lea.vmem %s4981_s15, 32 }
0x1e21   :  { %p6527_p6 = scmp.ne.s32.totalorder %s4981_s15, %s6526_s23  ;;  %p6531_p7 = scmp.lt.s32.totalorder %s4981_s15, %s4981_s15 }
0x1e22   :  { %p6532_p8 = scmp.lt.s32.totalorder %s6530_s11, %s6526_s23 }
0x1e24   :  { %p6533_p9 = por %p6532_p8, %p6531_p7 }
0x1e26   :  { %p6534_p10 = pnand %p6533_p9, %p6527_p6 }
0x1e92   :  { %v4937_v21 = vpop.xlane.xlu1 %4936 }
0x1e93   :  { %v4938_v56 = vrot.slane %v4937_v21, 4 }
0x1e95   :  { %v4939_v24 = vadd.f32 %v4938_v56, %v4937_v21 }
0x1e97   :  { %v4940_v31 = vrot.slane %v4939_v24, 2 }
0x1e99   :  { %v4941_v58 = vadd.f32 %v4940_v31, %v4939_v24 }
0x1e9b   :  { %v4942_v55 = vrot.slane %v4941_v58, 1 }
0x1e9d   :  { %v4943_v15 = vadd.f32 %v4942_v55, %v4941_v58 }
0x1e9f   :  { %5813 = vpush %v4943_v15 }
0x1ed0   :  { %s5814_s28 = spop %5813 }
0x1ed1   :  { %v4945_v53 = vstv %s5814_s28 }
0x1ed2   :  { %v4946_v43 = vadd.f32 %v4945_v53, %v4818_v13 }
0x1ed4   :  { %v4947_v50 = vmul.f32 0.03125, %v4946_v43 }
0x1ed6   :  { %4949 = vst.msk [vmem:[#allocation24] sm:$0x1] %vm4948_vm8, %v4947_v50 }
0x1ed7   :  { %6537 = shalt.err (!%p6534_p10)
}
0x1ed8   :  { %s8106_s29 = sld [smem:[#allocation43_spill]] }
0x1ede   :  { %s6538_s14 = scalar_lea.hbm %s8106_s29, 16 }
0x1edf   :  { %p6539_p11 = scmp.ne.s32.totalorder %s8106_s29, %s6538_s14  ;;  %p6542_p12 = scmp.lt.u32.totalorder %s6538_s14, %s8106_s29 }
0x1ee1   :  { %p6544_p13 = pnand %p6542_p12, %p6539_p11 }
0x1ee3   :  { %6547 = shalt.err (!%p6544_p13)
}
0x1ee4   :  { %4983 = dma.vmem_to_hbm [thread:$0]  %s4981_s15, 16, %s8106_s29, [#allocation23]  }
0x1ee5   :  { %6560 = dma.done.wait [#allocation5], 512  }
0x1ee6   :  { %6561 = vsyncadd [#allocation5], 4294966784 }
0x1ee7   :  { %6562 = dma.done.wait [#allocation23], 528  }
0x1ee8   :  { %6563 = vsyncadd [#allocation23], 4294966768 }
0x1ee9   :  { %4993 = vsyncpa [#allocation4], 1 }
0x1eea   :  { %4994 = vsyncpa [#allocation7], 1 }
0x1eeb   :  { %4995 = vsyncpa [#allocation10], 1 }
0x1eec   :  { %4996 = vsyncpa [#allocation13], 1 }
0x1eed   :  { %4997 = vsyncpa [#allocation16], 1 }
0x1eee   :  { %4998 = vsyncpa [#allocation19], 1 }
0x1eef   :  { %4999 = vsyncpa [#allocation5], 1 }
0x1ef0   :  { %5000 = vsyncpa [#allocation23], 1 }

</bundles_post_ra>
